<compile_context>
chip_gen: v5e
topology: v5e:2x2
jax: 0.10.0
libtpu: 0.0.40
codegen_flags: <defaults>
</compile_context>

<pallas_src>
import functools

import jax
import jax.numpy as jnp
import numpy as np
from jax import lax
from jax.experimental import pallas as pl
from jax.experimental.pallas import tpu as pltpu

PAD_C = 8      # augmented coordinate width (zero tail, lane-friendly)
_BIG = 1e30    # sentinel "norm" for padded points (never wins a min; safe in f32)


def _round_up(x, m):
    return (x + m - 1) // m * m


def _augment_x(pts, n_pad):
    """(B, n, 3) -> (B, n_pad, 8):  [x0, x1, x2, ||x||^2, 1, 0, 0, 0]."""
    b, n, _ = pts.shape
    pts = pts.astype(jnp.float32)
    pts_p = jnp.pad(pts, ((0, 0), (0, n_pad - n), (0, 0)))          # (B, n_pad, 3)
    sq = jnp.sum(pts_p * pts_p, axis=-1, keepdims=True)             # (B, n_pad, 1)
    valid = (jnp.arange(n_pad) < n)[None, :, None]
    sq = jnp.where(valid, sq, _BIG)
    ones = jnp.ones_like(sq)
    zeros = jnp.zeros((b, n_pad, PAD_C - 5), jnp.float32)
    return jnp.concatenate([pts_p, sq, ones, zeros], axis=-1)


def _augment_y_t(pts, m_pad):
    """(B, m, 3) -> (B, 8, m_pad) transposed lane-dense augmented coords.

    Column j (along the last axis) is [-2y0, -2y1, -2y2, 1, ||y||^2, 0, 0, 0]
    so that x_aug @ y_aug == ||x||^2 + ||y||^2 - 2 x.y.
    """
    b, m, _ = pts.shape
    pts = pts.astype(jnp.float32)
    pts_p = jnp.pad(pts, ((0, 0), (0, m_pad - m), (0, 0)))          # (B, m_pad, 3)
    sq = jnp.sum(pts_p * pts_p, axis=-1)                            # (B, m_pad)
    valid = (jnp.arange(m_pad) < m)[None, :]
    sq = jnp.where(valid, sq, _BIG)
    neg2 = jnp.transpose(-2.0 * pts_p, (0, 2, 1))                   # (B, 3, m_pad)
    ones = jnp.ones((b, 1, m_pad), jnp.float32)
    zeros = jnp.zeros((b, PAD_C - 5, m_pad), jnp.float32)
    return jnp.concatenate([neg2, ones, sq[:, None, :], zeros], axis=1)


def _emd_surrogate_kernel(x_ref, y_ref, d1_ref, d2_ref, acc_ref, *, tm, ts):
    # x_ref : (1, TN, 8)    augmented pcs1 tile (resident across j)
    # y_ref : (1, 8, TM)    augmented pcs2 tile, transposed / lane-dense
    # d1_ref: (1, 1, TN)    lane-dense; resident across the j (M-tile) axis
    # d2_ref: (1, 1, TM)    per-(b, i, j) partial column-min block
    # acc_ref: (TN, 128)    VMEM scratch: running per-lane-group row min
    j = pl.program_id(2)

    x = x_ref[0]                                               # (TN, 8)

    @pl.when(j == 0)
    def _():
        acc_ref[...] = jnp.full(acc_ref.shape, _BIG, dtype=acc_ref.dtype)

    # Strip-mine the M tile: each strip is one MXU matmul whose product is
    # consumed immediately by the two min folds (never spilled as a whole).
    for s in range(tm // ts):
        off = s * ts
        ystrip = y_ref[0, :, off:off + ts]                     # (8, TS)
        p = jnp.dot(x, ystrip, preferred_element_type=jnp.float32)  # (TN, TS)

        # dist1: fold this strip's lane groups into the (TN, 128) accumulator
        # with pure elementwise minimum (VPU only; cross-lane reduce deferred).
        m = p[:, 0:128]
        for g in range(1, ts // 128):
            m = jnp.minimum(m, p[:, g * 128:(g + 1) * 128])
        acc_ref[...] = jnp.minimum(acc_ref[...], m)

        # dist2 partial for this N tile: min over the N (sublane) axis of the
        # strip; clamp >= 0 commutes with the later cross-i min.
        d2_ref[0, 0, off:off + ts] = jnp.maximum(jnp.min(p, axis=0), 0.0)

    # Cross-lane min + relayout + clamp + lane-dense store: once per (b, i).
    @pl.when(j == pl.num_programs(2) - 1)
    def _():
        d1_ref[0, 0, :] = jnp.maximum(jnp.min(acc_ref[...], axis=1), 0.0)


def emd_loss(pcs1, pcs2, *, tn=1024, tm=2048):
    """JAX/Pallas surrogate for EMDLoss.forward (see module-level TODO)."""
    assert pcs1.shape[2] == 3 and pcs2.shape[2] == 3
    B, N, _ = pcs1.shape
    B2, M, _ = pcs2.shape
    assert B == B2

    # Tile sizes: multiples of 128.  With strip-mining the per-step VMEM
    # footprint is only a few MiB, so these large defaults are safe on
    # v5e / v6e / v7x (64 MiB physical VMEM on v7x is the tightest budget).
    TN = min(tn, _round_up(N, 128))
    TM = min(tm, _round_up(M, 128))
    N_pad = _round_up(N, TN)
    M_pad = _round_up(M, TM)
    NI = N_pad // TN
    NJ = M_pad // TM
    TS = 256 if TM % 256 == 0 else 128          # strip width (lane groups)

    x_aug = _augment_x(pcs1, N_pad)             # (B, N_pad, 8)
    y_aug = _augment_y_t(pcs2, M_pad)           # (B, 8, M_pad) lane-dense

    kernel = functools.partial(_emd_surrogate_kernel, tm=TM, ts=TS)

    # Advisory cost estimate so XLA can overlap the augmentation / mean HLO.
    cost = pl.CostEstimate(
        flops=2 * B * NI * M_pad * TN * PAD_C,
        transcendentals=0,
        bytes_accessed=4 * (B * N_pad * PAD_C            # x_aug
                            + B * NI * PAD_C * M_pad     # y_aug (re-fetched per i)
                            + B * N_pad                  # d1
                            + B * NI * M_pad),           # d2 partials
    )

    d1, d2p = pl.pallas_call(
        kernel,
        out_shape=(
            jax.ShapeDtypeStruct((B, 1, N_pad), jnp.float32),
            # dist2 per-i partials, flattened so the block's trailing two dims
            # satisfy the (8, 128) / full-dim rule; min-combined in the wrapper.
            jax.ShapeDtypeStruct((B * NI, 1, M_pad), jnp.float32),
        ),
        grid_spec=pltpu.PrefetchScalarGridSpec(
            num_scalar_prefetch=0,
            grid=(B, NI, NJ),
            in_specs=[
                pl.BlockSpec((1, TN, PAD_C), lambda b, i, j: (b, i, 0)),
                pl.BlockSpec((1, PAD_C, TM), lambda b, i, j: (b, 0, j)),
            ],
            out_specs=[
                pl.BlockSpec((1, 1, TN), lambda b, i, j: (b, 0, i)),
                pl.BlockSpec((1, 1, TM), lambda b, i, j: (b * NI + i, 0, j)),
            ],
            scratch_shapes=[pltpu.VMEM((TN, 128), jnp.float32)],
        ),
        # dist2 partials carry no cross-i dependence, so both the batch axis
        # and the N-tile axis may be split across TensorCores (v7x megacore
        # even when B is small); only the j axis must stay "arbitrary".
        compiler_params=pltpu.CompilerParams(
            dimension_semantics=("parallel", "parallel", "arbitrary"),
            vmem_limit_bytes=32 * 1024 * 1024),
        cost_estimate=cost,
    )(x_aug, y_aug)

    dist1 = d1[:, 0, :N]
    dist2 = jnp.min(d2p.reshape(B, NI, M_pad), axis=1)[:, :M]
    # TODO(synk): aggregation of the external EMD extension is not in the
    # provided source; (mean(dist1)+mean(dist2))/2 kept from the prior kernel.
    loss = (jnp.mean(dist1) + jnp.mean(dist2)) * 0.5
    return loss, dist1, dist2


def _reference(pcs1, pcs2):
    diff = pcs1[:, :, None, :] - pcs2[:, None, :, :]          # (B, N, M, 3)
    p = jnp.sum(diff * diff, axis=-1)                         # (B, N, M)
    dist1 = jnp.min(p, axis=2)
    dist2 = jnp.min(p, axis=1)
    loss = (jnp.mean(dist1) + jnp.mean(dist2)) * 0.5
    return loss, dist1, dist2


if __name__ == "__main__":
    key = jax.random.PRNGKey(0)
    k1, k2 = jax.random.split(key)
    B, N, M = 2, 384, 640
    pcs1 = jax.random.normal(k1, (B, N, 3), dtype=jnp.float32)
    pcs2 = jax.random.normal(k2, (B, M, 3), dtype=jnp.float32)

    ref_loss, ref_d1, ref_d2 = _reference(pcs1, pcs2)

    fn = jax.jit(emd_loss, static_argnames=("tn", "tm"))

    # Config 1: default large tiles (single tile per batch at these sizes).
    loss, dist1, dist2 = jax.block_until_ready(fn(pcs1, pcs2))
    np.testing.assert_allclose(np.asarray(dist1), np.asarray(ref_d1),
                               rtol=1e-4, atol=1e-4)
    np.testing.assert_allclose(np.asarray(dist2), np.asarray(ref_d2),
                               rtol=1e-4, atol=1e-4)
    np.testing.assert_allclose(np.asarray(loss), np.asarray(ref_loss),
                               rtol=1e-4, atol=1e-4)

    # Config 2: small tiles -> exercises multi-tile j accumulation for dist1,
    # per-i dist2 partials + wrapper min-combine, and tail padding on M.
    loss2, d1b, d2b = jax.block_until_ready(fn(pcs1, pcs2, tn=128, tm=256))
    np.testing.assert_allclose(np.asarray(d1b), np.asarray(ref_d1),
                               rtol=1e-4, atol=1e-4)
    np.testing.assert_allclose(np.asarray(d2b), np.asarray(ref_d2),
                               rtol=1e-4, atol=1e-4)
    np.testing.assert_allclose(np.asarray(loss2), np.asarray(ref_loss),
                               rtol=1e-4, atol=1e-4)

    print("KERNEL_OK")
</pallas_src>

<mosaic_0001>
module attributes {stable_mosaic.version = 11 : i64} {
  func.func @_emd_surrogate_kernel(%arg0: i32, %arg1: i32, %arg2: i32, %arg3: memref<1x384x8xf32, #tpu.memory_space<vmem>>, %arg4: memref<1x8x640xf32, #tpu.memory_space<vmem>>, %arg5: memref<1x1x384xf32, #tpu.memory_space<vmem>>, %arg6: memref<1x1x640xf32, #tpu.memory_space<vmem>>, %arg7: memref<384x128xf32, #tpu.memory_space<vmem>>) attributes {dimension_semantics = [#tpu.dimension_semantics<parallel>, #tpu.dimension_semantics<parallel>, #tpu.dimension_semantics<arbitrary>], iteration_bounds = array<i64: 2, 1, 1>, scalar_prefetch = 0 : i64, scratch_operands = 1 : i64, tpu.core_type = #tpu.core_type<tc>, window_params = [{transform_indices = @transform_0, window_bounds = array<i64: 1, 384, 8>}, {transform_indices = @transform_1, window_bounds = array<i64: 1, 8, 640>}, {transform_indices = @transform_2, window_bounds = array<i64: 1, 1, 384>}, {transform_indices = @transform_3, window_bounds = array<i64: 1, 1, 640>}]} {
    %c0 = arith.constant 0 : index
    %c0_0 = arith.constant 0 : index
    %c0_1 = arith.constant 0 : index
    %0 = vector.load %arg3[%c0, %c0_0, %c0_1] : memref<1x384x8xf32, #tpu.memory_space<vmem>>, vector<1x384x8xf32>
    %1 = vector.shape_cast %0 : vector<1x384x8xf32> to vector<384x8xf32>
    %c0_i32 = arith.constant 0 : i32
    %2 = arith.cmpi eq, %arg2, %c0_i32 : i32
    %3 = arith.extui %2 : i1 to i32
    %c0_i32_2 = arith.constant 0 : i32
    %4 = arith.cmpi ne, %3, %c0_i32_2 : i32
    scf.if %4 {
      %cst_65 = arith.constant 1.000000e+30 : f32
      %68 = vector.broadcast %cst_65 : f32 to vector<384x128xf32>
      %c0_66 = arith.constant 0 : index
      %c0_67 = arith.constant 0 : index
      %69 = vector.load %arg7[%c0_66, %c0_67] : memref<384x128xf32, #tpu.memory_space<vmem>>, vector<384x128xf32>
      tpu.vector_store %arg7[%c0_66, %c0_67], %68 {strides = array<i32>} : memref<384x128xf32, #tpu.memory_space<vmem>>, vector<384x128xf32>,
    } else {
    }
    %c0_3 = arith.constant 0 : index
    %c0_4 = arith.constant 0 : index
    %c0_5 = arith.constant 0 : index
    %5 = vector.load %arg4[%c0_3, %c0_4, %c0_5] : memref<1x8x640xf32, #tpu.memory_space<vmem>>, vector<1x8x128xf32>
    %6 = vector.shape_cast %5 : vector<1x8x128xf32> to vector<8x128xf32>
    %cst = arith.constant dense<0.000000e+00> : vector<384x128xf32>
    %7 = tpu.matmul %1, %6, %cst {dimension_numbers = #tpu.dot_dimension_numbers<[1], [0], [0], [1], [0, 0, 1, 1], [], []>} : vector<384x8xf32>, vector<8x128xf32>, vector<384x128xf32> -> vector<384x128xf32>
    %c0_6 = arith.constant 0 : index
    %c0_7 = arith.constant 0 : index
    %8 = vector.load %arg7[%c0_6, %c0_7] : memref<384x128xf32, #tpu.memory_space<vmem>>, vector<384x128xf32>
    %9 = arith.minimumf %8, %7 : vector<384x128xf32>
    %c0_8 = arith.constant 0 : index
    %c0_9 = arith.constant 0 : index
    %10 = vector.load %arg7[%c0_8, %c0_9] : memref<384x128xf32, #tpu.memory_space<vmem>>, vector<384x128xf32>
    tpu.vector_store %arg7[%c0_8, %c0_9], %9 {strides = array<i32>} : memref<384x128xf32, #tpu.memory_space<vmem>>, vector<384x128xf32>,
    %cst_10 = arith.constant dense<0x7F800000> : vector<128xf32>
    %11 = vector.multi_reduction <minimumf>, %7, %cst_10 [0] : vector<384x128xf32> to vector<128xf32>
    %cst_11 = arith.constant 0.000000e+00 : f32
    %12 = vector.broadcast %cst_11 : f32 to vector<128xf32>
    %13 = arith.maximumf %11, %12 : vector<128xf32>
    %c0_12 = arith.constant 0 : index
    %c0_13 = arith.constant 0 : index
    %c0_14 = arith.constant 0 : index
    %14 = vector.load %arg6[%c0_12, %c0_13, %c0_14] : memref<1x1x640xf32, #tpu.memory_space<vmem>>, vector<1x1x128xf32>
    %15 = vector.shape_cast %14 : vector<1x1x128xf32> to vector<128xf32>
    %16 = vector.shape_cast %13 : vector<128xf32> to vector<1x1x128xf32>
    tpu.vector_store %arg6[%c0_12, %c0_13, %c0_14], %16 {strides = array<i32>} : memref<1x1x640xf32, #tpu.memory_space<vmem>>, vector<1x1x128xf32>,
    %c0_15 = arith.constant 0 : index
    %c0_16 = arith.constant 0 : index
    %c128 = arith.constant 128 : index
    %17 = vector.load %arg4[%c0_15, %c0_16, %c128] : memref<1x8x640xf32, #tpu.memory_space<vmem>>, vector<1x8x128xf32>
    %18 = vector.shape_cast %17 : vector<1x8x128xf32> to vector<8x128xf32>
    %cst_17 = arith.constant dense<0.000000e+00> : vector<384x128xf32>
    %19 = tpu.matmul %1, %18, %cst_17 {dimension_numbers = #tpu.dot_dimension_numbers<[1], [0], [0], [1], [0, 0, 1, 1], [], []>} : vector<384x8xf32>, vector<8x128xf32>, vector<384x128xf32> -> vector<384x128xf32>
    %c0_18 = arith.constant 0 : index
    %c0_19 = arith.constant 0 : index
    %20 = vector.load %arg7[%c0_18, %c0_19] : memref<384x128xf32, #tpu.memory_space<vmem>>, vector<384x128xf32>
    %21 = arith.minimumf %20, %19 : vector<384x128xf32>
    %c0_20 = arith.constant 0 : index
    %c0_21 = arith.constant 0 : index
    %22 = vector.load %arg7[%c0_20, %c0_21] : memref<384x128xf32, #tpu.memory_space<vmem>>, vector<384x128xf32>
    tpu.vector_store %arg7[%c0_20, %c0_21], %21 {strides = array<i32>} : memref<384x128xf32, #tpu.memory_space<vmem>>, vector<384x128xf32>,
    %cst_22 = arith.constant dense<0x7F800000> : vector<128xf32>
    %23 = vector.multi_reduction <minimumf>, %19, %cst_22 [0] : vector<384x128xf32> to vector<128xf32>
    %cst_23 = arith.constant 0.000000e+00 : f32
    %24 = vector.broadcast %cst_23 : f32 to vector<128xf32>
    %25 = arith.maximumf %23, %24 : vector<128xf32>
    %c0_24 = arith.constant 0 : index
    %c0_25 = arith.constant 0 : index
    %c128_26 = arith.constant 128 : index
    %26 = vector.load %arg6[%c0_24, %c0_25, %c128_26] : memref<1x1x640xf32, #tpu.memory_space<vmem>>, vector<1x1x128xf32>
    %27 = vector.shape_cast %26 : vector<1x1x128xf32> to vector<128xf32>
    %28 = vector.shape_cast %25 : vector<128xf32> to vector<1x1x128xf32>
    tpu.vector_store %arg6[%c0_24, %c0_25, %c128_26], %28 {strides = array<i32>} : memref<1x1x640xf32, #tpu.memory_space<vmem>>, vector<1x1x128xf32>,
    %c0_27 = arith.constant 0 : index
    %c0_28 = arith.constant 0 : index
    %c256 = arith.constant 256 : index
    %29 = vector.load %arg4[%c0_27, %c0_28, %c256] : memref<1x8x640xf32, #tpu.memory_space<vmem>>, vector<1x8x128xf32>
    %30 = vector.shape_cast %29 : vector<1x8x128xf32> to vector<8x128xf32>
    %cst_29 = arith.constant dense<0.000000e+00> : vector<384x128xf32>
    %31 = tpu.matmul %1, %30, %cst_29 {dimension_numbers = #tpu.dot_dimension_numbers<[1], [0], [0], [1], [0, 0, 1, 1], [], []>} : vector<384x8xf32>, vector<8x128xf32>, vector<384x128xf32> -> vector<384x128xf32>
    %c0_30 = arith.constant 0 : index
    %c0_31 = arith.constant 0 : index
    %32 = vector.load %arg7[%c0_30, %c0_31] : memref<384x128xf32, #tpu.memory_space<vmem>>, vector<384x128xf32>
    %33 = arith.minimumf %32, %31 : vector<384x128xf32>
    %c0_32 = arith.constant 0 : index
    %c0_33 = arith.constant 0 : index
    %34 = vector.load %arg7[%c0_32, %c0_33] : memref<384x128xf32, #tpu.memory_space<vmem>>, vector<384x128xf32>
    tpu.vector_store %arg7[%c0_32, %c0_33], %33 {strides = array<i32>} : memref<384x128xf32, #tpu.memory_space<vmem>>, vector<384x128xf32>,
    %cst_34 = arith.constant dense<0x7F800000> : vector<128xf32>
    %35 = vector.multi_reduction <minimumf>, %31, %cst_34 [0] : vector<384x128xf32> to vector<128xf32>
    %cst_35 = arith.constant 0.000000e+00 : f32
    %36 = vector.broadcast %cst_35 : f32 to vector<128xf32>
    %37 = arith.maximumf %35, %36 : vector<128xf32>
    %c0_36 = arith.constant 0 : index
    %c0_37 = arith.constant 0 : index
    %c256_38 = arith.constant 256 : index
    %38 = vector.load %arg6[%c0_36, %c0_37, %c256_38] : memref<1x1x640xf32, #tpu.memory_space<vmem>>, vector<1x1x128xf32>
    %39 = vector.shape_cast %38 : vector<1x1x128xf32> to vector<128xf32>
    %40 = vector.shape_cast %37 : vector<128xf32> to vector<1x1x128xf32>
    tpu.vector_store %arg6[%c0_36, %c0_37, %c256_38], %40 {strides = array<i32>} : memref<1x1x640xf32, #tpu.memory_space<vmem>>, vector<1x1x128xf32>,
    %c0_39 = arith.constant 0 : index
    %c0_40 = arith.constant 0 : index
    %c384 = arith.constant 384 : index
    %41 = vector.load %arg4[%c0_39, %c0_40, %c384] : memref<1x8x640xf32, #tpu.memory_space<vmem>>, vector<1x8x128xf32>
    %42 = vector.shape_cast %41 : vector<1x8x128xf32> to vector<8x128xf32>
    %cst_41 = arith.constant dense<0.000000e+00> : vector<384x128xf32>
    %43 = tpu.matmul %1, %42, %cst_41 {dimension_numbers = #tpu.dot_dimension_numbers<[1], [0], [0], [1], [0, 0, 1, 1], [], []>} : vector<384x8xf32>, vector<8x128xf32>, vector<384x128xf32> -> vector<384x128xf32>
    %c0_42 = arith.constant 0 : index
    %c0_43 = arith.constant 0 : index
    %44 = vector.load %arg7[%c0_42, %c0_43] : memref<384x128xf32, #tpu.memory_space<vmem>>, vector<384x128xf32>
    %45 = arith.minimumf %44, %43 : vector<384x128xf32>
    %c0_44 = arith.constant 0 : index
    %c0_45 = arith.constant 0 : index
    %46 = vector.load %arg7[%c0_44, %c0_45] : memref<384x128xf32, #tpu.memory_space<vmem>>, vector<384x128xf32>
    tpu.vector_store %arg7[%c0_44, %c0_45], %45 {strides = array<i32>} : memref<384x128xf32, #tpu.memory_space<vmem>>, vector<384x128xf32>,
    %cst_46 = arith.constant dense<0x7F800000> : vector<128xf32>
    %47 = vector.multi_reduction <minimumf>, %43, %cst_46 [0] : vector<384x128xf32> to vector<128xf32>
    %cst_47 = arith.constant 0.000000e+00 : f32
    %48 = vector.broadcast %cst_47 : f32 to vector<128xf32>
    %49 = arith.maximumf %47, %48 : vector<128xf32>
    %c0_48 = arith.constant 0 : index
    %c0_49 = arith.constant 0 : index
    %c384_50 = arith.constant 384 : index
    %50 = vector.load %arg6[%c0_48, %c0_49, %c384_50] : memref<1x1x640xf32, #tpu.memory_space<vmem>>, vector<1x1x128xf32>
    %51 = vector.shape_cast %50 : vector<1x1x128xf32> to vector<128xf32>
    %52 = vector.shape_cast %49 : vector<128xf32> to vector<1x1x128xf32>
    tpu.vector_store %arg6[%c0_48, %c0_49, %c384_50], %52 {strides = array<i32>} : memref<1x1x640xf32, #tpu.memory_space<vmem>>, vector<1x1x128xf32>,
    %c0_51 = arith.constant 0 : index
    %c0_52 = arith.constant 0 : index
    %c512 = arith.constant 512 : index
    %53 = vector.load %arg4[%c0_51, %c0_52, %c512] : memref<1x8x640xf32, #tpu.memory_space<vmem>>, vector<1x8x128xf32>
    %54 = vector.shape_cast %53 : vector<1x8x128xf32> to vector<8x128xf32>
    %cst_53 = arith.constant dense<0.000000e+00> : vector<384x128xf32>
    %55 = tpu.matmul %1, %54, %cst_53 {dimension_numbers = #tpu.dot_dimension_numbers<[1], [0], [0], [1], [0, 0, 1, 1], [], []>} : vector<384x8xf32>, vector<8x128xf32>, vector<384x128xf32> -> vector<384x128xf32>
    %c0_54 = arith.constant 0 : index
    %c0_55 = arith.constant 0 : index
    %56 = vector.load %arg7[%c0_54, %c0_55] : memref<384x128xf32, #tpu.memory_space<vmem>>, vector<384x128xf32>
    %57 = arith.minimumf %56, %55 : vector<384x128xf32>
    %c0_56 = arith.constant 0 : index
    %c0_57 = arith.constant 0 : index
    %58 = vector.load %arg7[%c0_56, %c0_57] : memref<384x128xf32, #tpu.memory_space<vmem>>, vector<384x128xf32>
    tpu.vector_store %arg7[%c0_56, %c0_57], %57 {strides = array<i32>} : memref<384x128xf32, #tpu.memory_space<vmem>>, vector<384x128xf32>,
    %cst_58 = arith.constant dense<0x7F800000> : vector<128xf32>
    %59 = vector.multi_reduction <minimumf>, %55, %cst_58 [0] : vector<384x128xf32> to vector<128xf32>
    %cst_59 = arith.constant 0.000000e+00 : f32
    %60 = vector.broadcast %cst_59 : f32 to vector<128xf32>
    %61 = arith.maximumf %59, %60 : vector<128xf32>
    %c0_60 = arith.constant 0 : index
    %c0_61 = arith.constant 0 : index
    %c512_62 = arith.constant 512 : index
    %62 = vector.load %arg6[%c0_60, %c0_61, %c512_62] : memref<1x1x640xf32, #tpu.memory_space<vmem>>, vector<1x1x128xf32>
    %63 = vector.shape_cast %62 : vector<1x1x128xf32> to vector<128xf32>
    %64 = vector.shape_cast %61 : vector<128xf32> to vector<1x1x128xf32>
    tpu.vector_store %arg6[%c0_60, %c0_61, %c512_62], %64 {strides = array<i32>} : memref<1x1x640xf32, #tpu.memory_space<vmem>>, vector<1x1x128xf32>,
    %c0_i32_63 = arith.constant 0 : i32
    %65 = arith.cmpi eq, %arg2, %c0_i32_63 : i32
    %66 = arith.extui %65 : i1 to i32
    %c0_i32_64 = arith.constant 0 : i32
    %67 = arith.cmpi ne, %66, %c0_i32_64 : i32
    scf.if %67 {
      %c0_65 = arith.constant 0 : index
      %c0_66 = arith.constant 0 : index
      %68 = vector.load %arg7[%c0_65, %c0_66] : memref<384x128xf32, #tpu.memory_space<vmem>>, vector<384x128xf32>
      %cst_67 = arith.constant dense<0x7F800000> : vector<384xf32>
      %69 = vector.multi_reduction <minimumf>, %68, %cst_67 [1] : vector<384x128xf32> to vector<384xf32>
      %cst_68 = arith.constant 0.000000e+00 : f32
      %70 = vector.broadcast %cst_68 : f32 to vector<384xf32>
      %71 = arith.maximumf %69, %70 : vector<384xf32>
      %c0_69 = arith.constant 0 : index
      %c0_70 = arith.constant 0 : index
      %c0_71 = arith.constant 0 : index
      %72 = vector.load %arg5[%c0_69, %c0_70, %c0_71] : memref<1x1x384xf32, #tpu.memory_space<vmem>>, vector<1x1x384xf32>
      %73 = vector.shape_cast %72 : vector<1x1x384xf32> to vector<384xf32>
      %74 = vector.shape_cast %71 : vector<384xf32> to vector<1x1x384xf32>
      tpu.vector_store %arg5[%c0_69, %c0_70, %c0_71], %74 {strides = array<i32>} : memref<1x1x384xf32, #tpu.memory_space<vmem>>, vector<1x1x384xf32>,
    } else {
    }
    return
  }
  func.func @transform_0(%arg0: i32, %arg1: i32, %arg2: i32) -> (i32, i32, i32) {
    %c0_i32 = arith.constant 0 : i32
    %c0_i32_0 = arith.constant 0 : i32
    return %arg0, %arg1, %c0_i32 : i32, i32, i32
  }
  func.func @transform_1(%arg0: i32, %arg1: i32, %arg2: i32) -> (i32, i32, i32) {
    %c0_i32 = arith.constant 0 : i32
    %c0_i32_0 = arith.constant 0 : i32
    return %arg0, %c0_i32, %arg2 : i32, i32, i32
  }
  func.func @transform_2(%arg0: i32, %arg1: i32, %arg2: i32) -> (i32, i32, i32) {
    %c0_i32 = arith.constant 0 : i32
    %c0_i32_0 = arith.constant 0 : i32
    return %arg0, %c0_i32, %arg1 : i32, i32, i32
  }
  func.func @transform_3(%arg0: i32, %arg1: i32, %arg2: i32) -> (i32, i32, i32) {
    %c1_i32 = arith.constant 1 : i32
    %0 = arith.muli %arg0, %c1_i32 : i32
    %1 = arith.addi %0, %arg1 : i32
    %c0_i32 = arith.constant 0 : i32
    %c0_i32_0 = arith.constant 0 : i32
    return %1, %c0_i32, %arg2 : i32, i32, i32
  }
}

</mosaic_0001>

<bundles_post_ra>
// kernel: emd_loss.1
= control target key start
LH: loop header
LB: loop body
LE: loop exit
PB: predicated region body
PF: predicated region fallthrough
CT: control target
= control target key end

     0   :  { %s4169_s12 = smov 0   ;;  %s4171_s13 = smov 0   ;;  %s5975_s0 = inlined_call_operand.vmem [shape: f32[2,384,8], index: 0, kind: input, shape index: {}]   ;;  %s5976_s1 = inlined_call_operand.vmem [shape: f32[2,8,640], index: 1, kind: input, shape index: {}]   ;;  %s5977_s2 = inlined_call_operand.vmem [shape: f32[2,1,384], index: 2, kind: output, shape index: {0}]   ;;  %s5978_s3 = inlined_call_operand.vmem [shape: f32[2,1,640], index: 3, kind: output, shape index: {1}]  }
   0x1   :  { %s4173_s14 = smov 0  }
   0x2 LB: > { %s33_s15 = sadd.s32 1, %s4142_s13  ;;  %p3830_p0 = scmp.ge.s32.totalorder %s4146_s14, 1  ;;  %s4146_s14 = sphi %s4173_s14, %s14_s14   ;;  %s4142_s13 = sphi %s4171_s13, %s6144_s13   ;;  %s4138_s12 = sphi %s4169_s12, %s6143_s12  }
   0x3   : > { %p35_p1 = scmp.ge.s32.totalorder %s33_s15, 2  ;;  %p189_p2 = scmp.lt.s32.totalorder %s4146_s14, 3 }
   0x5   : > { %s6146_s15 = smov (%p35_p1, %s33_s15), 0  ;;  %p190_p3 = pnand %p3830_p0, %p189_p2 }
   0x7   : > { %193 = sbr.rel (%p190_p3) target bundleno = 1324 (0x52c), region = 28 }
   0xc   : > { %p239_p4 = scmp.lt.s32.totalorder %s4138_s12, 1  ;;  %vm379_vm0 = vcmask 64512   ;;  %vm3547_vm2 = vcmask 130112   ;;  %vm3551_vm3 = vcmask 195712   ;;  %vm3555_vm4 = vcmask 261312  }
   0xd   : > { %vm3559_vm5 = vcmask 326912   ;;  %vm3563_vm6 = vcmask 392512   ;;  %vm3567_vm7 = vcmask 458112   ;;  %vm3571_vm8 = vcmask 523712  }
   0xe   : > { %s6148_s12 = smov (!%p239_p4, %s4138_s12), 1  ;;  %vm3575_vm9 = vcmask 589312   ;;  %vm3579_vm10 = vcmask 654912   ;;  %vm3583_vm11 = vcmask 720512   ;;  %vm3587_vm12 = vcmask 786112  }
   0xf   : > { %s4078_s16 = smul.u32 384, %s6148_s12  ;;  %vm3591_vm13 = vcmask 851712   ;;  %vm3595_vm14 = vcmask 917312   ;;  %vm3599_vm15 = vcmask 982912  }
  0x10   : > { %s4079_s17 = smul.u32 40, %s6148_s12 }
  0x11   : > { %s4194_s20 = scalar_lea.vmem %s5975_s0, %s4078_s16  ;;  %s4081_s24 = smul.u32 5, %s6148_s12 }
  0x12   : > { %s256_s23 = scalar_lea.vmem %s5976_s1, %s4079_s17  ;;  %v4200_v1 = vld [vmem:[%s4194_s20] sm:$0xff]  ;;  %v4217_v9 = vld [vmem:[%s4194_s20 + $0x8] sm:$0xff]  ;;  %v4234_v13 = vld [vmem:[%s4194_s20 + $0x10] sm:$0xff]  ;;  %s4080_s28 = smul.u32 3, %s6148_s12 }
  0x13   : > { %v378_v0 = vld [vmem:[%s256_s23] sm:$0xff]  ;;  %v1249_v5 = vld [vmem:[%s256_s23 + $0x10] sm:$0xff]  ;;  %v1610_v6 = vld [vmem:[%s256_s23 + $0x18] sm:$0xff]  ;;  %s4711_s27 = scalar_lea.vmem %s5978_s3, %s4081_s24 }
  0x14   : > { %v4203_v2 = vld [vmem:[%s4194_s20 + $0x60] sm:$0xff]  ;;  %539 = vmatpush.msra.mxu0 %v378_v0  ;;  %4075 = vmatpush.msra.mxu1 %v378_v0  ;;  %v888_v7 = vld [vmem:[%s256_s23 + $0x8] sm:$0xff]  ;;  %v4237_v14 = vld [vmem:[%s4194_s20 + $0x70] sm:$0xff]  ;;  %s265_s4 = scalar_lea.vmem %s5977_s2, %s4080_s28 }
  0x15   : > { %v4206_v3 = vld [vmem:[%s4194_s20 + $0xc0] sm:$0xff]  ;;  %4076 = vmatpush.msra.mxu2 %v378_v0  ;;  %4077 = vmatpush.msra.mxu3 %v378_v0  ;;  %v4220_v10 = vld [vmem:[%s4194_s20 + $0x68] sm:$0xff]  ;;  %v4240_v15 = vld [vmem:[%s4194_s20 + $0xd0] sm:$0xff] }
  0x16   : > { %v314_v4 = vld [vmem:[%s4194_s20 + $0x120] sm:$0xff]  ;;  %3833 = vmatmul.msk.f32.vlgmr.msra.gmra.mxu0 %vm379_vm0, %v4200_v1  ;;  %3845 = vmatmul.msk.f32.vlgmr.msra.gmra.mxu1 %vm379_vm0, %v4203_v2  ;;  %v4223_v11 = vld [vmem:[%s4194_s20 + $0xc8] sm:$0xff]  ;;  %v316_v16 = vld [vmem:[%s4194_s20 + $0x130] sm:$0xff] }
  0x17   : > { %v1971_v8 = vld [vmem:[%s256_s23 + $0x20] sm:$0xff]  ;;  %3857 = vmatmul.msk.f32.vlgmr.msra.gmra.mxu2 %vm379_vm0, %v4206_v3  ;;  %3869 = vmatmul.msk.f32.vlgmr.msra.gmra.mxu3 %vm379_vm0, %v314_v4  ;;  %v315_v12 = vld [vmem:[%s4194_s20 + $0x128] sm:$0xff]  ;;  %v4251_v17 = vld [vmem:[%s4194_s20 + $0x18] sm:$0xff] }
  0x18   : > { %1265 = vmatpush.msrb.mxu2 %v1249_v5  ;;  %1626 = vmatpush.msrb.mxu3 %v1610_v6  ;;  %v4254_v18 = vld [vmem:[%s4194_s20 + $0x78] sm:$0xff]  ;;  %v4268_v21 = vld [vmem:[%s4194_s20 + $0x20] sm:$0xff]  ;;  %v4285_v25 = vld [vmem:[%s4194_s20 + $0x28] sm:$0xff] }
  0x19   : > { %904 = vmatpush.msrb.mxu1 %v888_v7  ;;  %1987 = vmatpush.msrb.mxu0 %v1971_v8  ;;  %v4257_v19 = vld [vmem:[%s4194_s20 + $0xd8] sm:$0xff]  ;;  %v4271_v22 = vld [vmem:[%s4194_s20 + $0x80] sm:$0xff]  ;;  %v4288_v26 = vld [vmem:[%s4194_s20 + $0x88] sm:$0xff] }
  0x1a   : > { %v317_v20 = vld [vmem:[%s4194_s20 + $0x138] sm:$0xff]  ;;  %v4274_v23 = vld [vmem:[%s4194_s20 + $0xe0] sm:$0xff]  ;;  %v4291_v27 = vld [vmem:[%s4194_s20 + $0xe8] sm:$0xff] }
  0x1b   : > { %v318_v24 = vld [vmem:[%s4194_s20 + $0x140] sm:$0xff]  ;;  %v319_v28 = vld [vmem:[%s4194_s20 + $0x148] sm:$0xff]  ;;  %v4302_v29 = vld [vmem:[%s4194_s20 + $0x30] sm:$0xff] }
  0x1c   : > { %v4305_v30 = vld [vmem:[%s4194_s20 + $0x90] sm:$0xff]  ;;  %v4319_v33 = vld [vmem:[%s4194_s20 + $0x38] sm:$0xff]  ;;  %v4336_v37 = vld [vmem:[%s4194_s20 + $0x40] sm:$0xff] }
  0x1d   : > { %v4308_v31 = vld [vmem:[%s4194_s20 + $0xf0] sm:$0xff]  ;;  %v4322_v34 = vld [vmem:[%s4194_s20 + $0x98] sm:$0xff]  ;;  %v4339_v38 = vld [vmem:[%s4194_s20 + $0xa0] sm:$0xff] }
  0x1e   : > { %3834 = vmatmul.msk.f32.gmra.mxu0 %vm379_vm0, %v4217_v9  ;;  %3846 = vmatmul.msk.f32.gmra.mxu1 %vm379_vm0, %v4220_v10  ;;  %v320_v32 = vld [vmem:[%s4194_s20 + $0x150] sm:$0xff]  ;;  %v4325_v35 = vld [vmem:[%s4194_s20 + $0xf8] sm:$0xff]  ;;  %v4342_v39 = vld [vmem:[%s4194_s20 + $0x100] sm:$0xff] }
  0x1f   : > { %3858 = vmatmul.msk.f32.gmra.mxu2 %vm379_vm0, %v4223_v11  ;;  %3870 = vmatmul.msk.f32.gmra.mxu3 %vm379_vm0, %v315_v12  ;;  %v321_v36 = vld [vmem:[%s4194_s20 + $0x158] sm:$0xff]  ;;  %v322_v40 = vld [vmem:[%s4194_s20 + $0x160] sm:$0xff]  ;;  %v4353_v41 = vld [vmem:[%s4194_s20 + $0x48] sm:$0xff] }
  0x20   : > { %v4356_v42 = vld [vmem:[%s4194_s20 + $0xa8] sm:$0xff]  ;;  %v4370_v45 = vld [vmem:[%s4194_s20 + $0x50] sm:$0xff]  ;;  %v4387_v49 = vld [vmem:[%s4194_s20 + $0x58] sm:$0xff] }
  0x21   : > { %v4359_v43 = vld [vmem:[%s4194_s20 + $0x108] sm:$0xff]  ;;  %v4373_v46 = vld [vmem:[%s4194_s20 + $0xb0] sm:$0xff]  ;;  %v4390_v50 = vld [vmem:[%s4194_s20 + $0xb8] sm:$0xff] }
  0x22   : > { %v323_v44 = vld [vmem:[%s4194_s20 + $0x168] sm:$0xff]  ;;  %v4376_v47 = vld [vmem:[%s4194_s20 + $0x110] sm:$0xff]  ;;  %v313_v51 = vld [vmem:[%s4194_s20 + $0x118] sm:$0xff] }
  0x23   : > { %v324_v48 = vld [vmem:[%s4194_s20 + $0x170] sm:$0xff]  ;;  %v325_v52 = vld [vmem:[%s4194_s20 + $0x178] sm:$0xff] }
  0x26   : > { %3835 = vmatmul.msk.f32.gmra.mxu0 %vm379_vm0, %v4234_v13  ;;  %3847 = vmatmul.msk.f32.gmra.mxu1 %vm379_vm0, %v4237_v14 }
  0x27   : > { %3859 = vmatmul.msk.f32.gmra.mxu2 %vm379_vm0, %v4240_v15  ;;  %3871 = vmatmul.msk.f32.gmra.mxu3 %vm379_vm0, %v316_v16 }
  0x2e   : > { %3836 = vmatmul.msk.f32.gmra.mxu0 %vm379_vm0, %v4251_v17  ;;  %3848 = vmatmul.msk.f32.gmra.mxu1 %vm379_vm0, %v4254_v18 }
  0x2f   : > { %3860 = vmatmul.msk.f32.gmra.mxu2 %vm379_vm0, %v4257_v19  ;;  %3872 = vmatmul.msk.f32.gmra.mxu3 %vm379_vm0, %v317_v20 }
  0x36   : > { %3837 = vmatmul.msk.f32.gmra.mxu0 %vm379_vm0, %v4268_v21  ;;  %3849 = vmatmul.msk.f32.gmra.mxu1 %vm379_vm0, %v4271_v22 }
  0x37   : > { %3861 = vmatmul.msk.f32.gmra.mxu2 %vm379_vm0, %v4274_v23  ;;  %3873 = vmatmul.msk.f32.gmra.mxu3 %vm379_vm0, %v318_v24 }
  0x3e   : > { %3838 = vmatmul.msk.f32.gmra.mxu0 %vm379_vm0, %v4285_v25  ;;  %3850 = vmatmul.msk.f32.gmra.mxu1 %vm379_vm0, %v4288_v26 }
  0x3f   : > { %3862 = vmatmul.msk.f32.gmra.mxu2 %vm379_vm0, %v4291_v27  ;;  %3874 = vmatmul.msk.f32.gmra.mxu3 %vm379_vm0, %v319_v28 }
  0x46   : > { %3839 = vmatmul.msk.f32.gmra.mxu0 %vm379_vm0, %v4302_v29  ;;  %3851 = vmatmul.msk.f32.gmra.mxu1 %vm379_vm0, %v4305_v30 }
  0x47   : > { %3863 = vmatmul.msk.f32.gmra.mxu2 %vm379_vm0, %v4308_v31  ;;  %3875 = vmatmul.msk.f32.gmra.mxu3 %vm379_vm0, %v320_v32 }
  0x4e   : > { %3840 = vmatmul.msk.f32.gmra.mxu0 %vm379_vm0, %v4319_v33  ;;  %3852 = vmatmul.msk.f32.gmra.mxu1 %vm379_vm0, %v4322_v34 }
  0x4f   : > { %3864 = vmatmul.msk.f32.gmra.mxu2 %vm379_vm0, %v4325_v35  ;;  %3876 = vmatmul.msk.f32.gmra.mxu3 %vm379_vm0, %v321_v36 }
  0x56   : > { %3841 = vmatmul.msk.f32.gmra.mxu0 %vm379_vm0, %v4336_v37  ;;  %3853 = vmatmul.msk.f32.gmra.mxu1 %vm379_vm0, %v4339_v38 }
  0x57   : > { %3865 = vmatmul.msk.f32.gmra.mxu2 %vm379_vm0, %v4342_v39  ;;  %3877 = vmatmul.msk.f32.gmra.mxu3 %vm379_vm0, %v322_v40 }
  0x5e   : > { %3842 = vmatmul.msk.f32.gmra.mxu0 %vm379_vm0, %v4353_v41  ;;  %3854 = vmatmul.msk.f32.gmra.mxu1 %vm379_vm0, %v4356_v42 }
  0x5f   : > { %3866 = vmatmul.msk.f32.gmra.mxu2 %vm379_vm0, %v4359_v43  ;;  %3878 = vmatmul.msk.f32.gmra.mxu3 %vm379_vm0, %v323_v44 }
  0x66   : > { %3843 = vmatmul.msk.f32.gmra.mxu0 %vm379_vm0, %v4370_v45  ;;  %3855 = vmatmul.msk.f32.gmra.mxu1 %vm379_vm0, %v4373_v46 }
  0x67   : > { %3867 = vmatmul.msk.f32.gmra.mxu2 %vm379_vm0, %v4376_v47  ;;  %3879 = vmatmul.msk.f32.gmra.mxu3 %vm379_vm0, %v324_v48 }
  0x6e   : > { %3844 = vmatmul.msk.f32.gmra.mxu0 %vm379_vm0, %v4387_v49  ;;  %3856 = vmatmul.msk.f32.gmra.mxu1 %vm379_vm0, %v4390_v50 }
  0x6f   : > { %3868 = vmatmul.msk.f32.gmra.mxu2 %vm379_vm0, %v313_v51  ;;  %3880 = vmatmul.msk.f32.gmra.mxu3 %vm379_vm0, %v325_v52 }
  0x76   : > { %3881 = vmatmul.msk.f32.vlgmr.msrb.gmra.mxu1 %vm379_vm0, %v4200_v1  ;;  %4025 = vmatmul.msk.f32.vlgmr.msrb.gmra.mxu0 %vm379_vm0, %v4200_v1 }
  0x77   : > { %3929 = vmatmul.msk.f32.vlgmr.msrb.gmra.mxu2 %vm379_vm0, %v4200_v1  ;;  %3977 = vmatmul.msk.f32.vlgmr.msrb.gmra.mxu3 %vm379_vm0, %v4200_v1 }
  0x7e   : > { %3882 = vmatmul.msk.f32.gmra.mxu1 %vm379_vm0, %v4217_v9  ;;  %4026 = vmatmul.msk.f32.gmra.mxu0 %vm379_vm0, %v4217_v9 }
  0x7f   : > { %3930 = vmatmul.msk.f32.gmra.mxu2 %vm379_vm0, %v4217_v9  ;;  %3978 = vmatmul.msk.f32.gmra.mxu3 %vm379_vm0, %v4217_v9 }
  0x86   : > { %3883 = vmatmul.msk.f32.gmra.mxu1 %vm379_vm0, %v4234_v13  ;;  %4027 = vmatmul.msk.f32.gmra.mxu0 %vm379_vm0, %v4234_v13 }
  0x87   : > { %3931 = vmatmul.msk.f32.gmra.mxu2 %vm379_vm0, %v4234_v13  ;;  %3979 = vmatmul.msk.f32.gmra.mxu3 %vm379_vm0, %v4234_v13 }
  0x8e   : > { %3884 = vmatmul.msk.f32.gmra.mxu1 %vm379_vm0, %v4251_v17  ;;  %4028 = vmatmul.msk.f32.gmra.mxu0 %vm379_vm0, %v4251_v17 }
  0x8f   : > { %3932 = vmatmul.msk.f32.gmra.mxu2 %vm379_vm0, %v4251_v17  ;;  %3980 = vmatmul.msk.f32.gmra.mxu3 %vm379_vm0, %v4251_v17 }
  0x93   : > { %v4432_v53 = vpop.f32.mrf.mxu0  ;;  %v4434_v54 = vpop.f32.mrf.mxu1 }
  0x96   : > { %3885 = vmatmul.msk.f32.gmra.mxu1 %vm379_vm0, %v4268_v21  ;;  %4029 = vmatmul.msk.f32.gmra.mxu0 %vm379_vm0, %v4268_v21 }
  0x97   : > { %3933 = vmatmul.msk.f32.gmra.mxu2 %vm379_vm0, %v4268_v21  ;;  %3981 = vmatmul.msk.f32.gmra.mxu3 %vm379_vm0, %v4268_v21 }
  0x9a   : > { %v4444_v55 = vpop.f32.mrf.mxu2  ;;  %v4446_v56 = vpop.f32.mrf.mxu3 }
  0x9b   : > { %6031 = vst [vmem:[#allocation3_spill] sm:$0xff] %v4444_v55  ;;  %v837_v57 = vmin.f32 %v4444_v55, %v4434_v54  ;;  %v4450_v58 = vpop.f32.mrf.mxu0  ;;  %v4452_v59 = vpop.f32.mrf.mxu1 }
  0x9c   : > { %6032 = vst [vmem:[#allocation4_spill] sm:$0xff] %v4446_v56 }
  0x9d   : > { %v841_v60 = vmin.f32 %v837_v57, %v4446_v56 }
  0x9e   : > { %3886 = vmatmul.msk.f32.gmra.mxu1 %vm379_vm0, %v4285_v25  ;;  %4030 = vmatmul.msk.f32.gmra.mxu0 %vm379_vm0, %v4285_v25 }
  0x9f   : > { %3934 = vmatmul.msk.f32.gmra.mxu2 %vm379_vm0, %v4285_v25  ;;  %3982 = vmatmul.msk.f32.gmra.mxu3 %vm379_vm0, %v4285_v25  ;;  %v845_v61 = vmin.f32 %v841_v60, %v4452_v59 }
  0xa2   : > { %v4464_v62 = vpop.f32.mrf.mxu2  ;;  %v4466_v63 = vpop.f32.mrf.mxu3 }
  0xa3   : > { %6033 = vst [vmem:[#allocation5_spill] sm:$0xff] %v4464_v62  ;;  %v849_v0 = vmin.f32 %v845_v61, %v4464_v62  ;;  %v4469_v1 = vpop.f32.mrf.mxu0  ;;  %v4471_v4 = vpop.f32.mrf.mxu1  ;;  %v5997_v62 = vlaneseq }
  0xa4   : > { %6034 = vst [vmem:[#allocation6_spill] sm:$0xff] %v4466_v63 }
  0xa5   : > { %v853_v5 = vmin.f32 %v849_v0, %v4466_v63  ;;  %vm4714_vm1 = vcmp.lt.s32.totalorder %v5997_v62, 128 }
  0xa6   : > { %3887 = vmatmul.msk.f32.gmra.mxu1 %vm379_vm0, %v4302_v29  ;;  %4031 = vmatmul.msk.f32.gmra.mxu0 %vm379_vm0, %v4302_v29 }
  0xa7   : > { %3935 = vmatmul.msk.f32.gmra.mxu2 %vm379_vm0, %v4302_v29  ;;  %3983 = vmatmul.msk.f32.gmra.mxu3 %vm379_vm0, %v4302_v29  ;;  %v857_v6 = vmin.f32 %v853_v5, %v4471_v4 }
  0xaa   : > { %v4483_v7 = vpop.f32.mrf.mxu2  ;;  %v4485_v8 = vpop.f32.mrf.mxu3 }
  0xab   : > { %6035 = vst [vmem:[#allocation7_spill] sm:$0xff] %v4483_v7  ;;  %v861_v9 = vmin.f32 %v857_v6, %v4483_v7  ;;  %v4488_v12 = vpop.f32.mrf.mxu0  ;;  %v4490_v13 = vpop.f32.mrf.mxu1 }
  0xac   : > { %6036 = vst [vmem:[#allocation8_spill] sm:$0xff] %v4485_v8 }
  0xad   : > { %v865_v16 = vmin.f32 %v861_v9, %v4485_v8 }
  0xae   : > { %3888 = vmatmul.msk.f32.gmra.mxu1 %vm379_vm0, %v4319_v33  ;;  %4032 = vmatmul.msk.f32.gmra.mxu0 %vm379_vm0, %v4319_v33 }
  0xaf   : > { %3936 = vmatmul.msk.f32.gmra.mxu2 %vm379_vm0, %v4319_v33  ;;  %3984 = vmatmul.msk.f32.gmra.mxu3 %vm379_vm0, %v4319_v33  ;;  %v869_v17 = vmin.f32 %v865_v16, %v4490_v13 }
  0xb2   : > { %v4502_v20 = vpop.f32.mrf.mxu2  ;;  %v4504_v21 = vpop.f32.mrf.mxu3 }
  0xb3   : > { %6037 = vst [vmem:[#allocation9_spill] sm:$0xff] %v4502_v20  ;;  %v838_v24 = vmin.f32 %v4502_v20, %v869_v17  ;;  %v4507_v25 = vpop.f32.mrf.mxu0  ;;  %v4509_v28 = vpop.f32.mrf.mxu1 }
  0xb4   : > { %6038 = vst [vmem:[#allocation10_spill] sm:$0xff] %v4504_v21 }
  0xb5   : > { %v842_v29 = vmin.f32 %v838_v24, %v4504_v21 }
  0xb6   : > { %3889 = vmatmul.msk.f32.gmra.mxu1 %vm379_vm0, %v4336_v37  ;;  %4033 = vmatmul.msk.f32.gmra.mxu0 %vm379_vm0, %v4336_v37 }
  0xb7   : > { %3937 = vmatmul.msk.f32.gmra.mxu2 %vm379_vm0, %v4336_v37  ;;  %3985 = vmatmul.msk.f32.gmra.mxu3 %vm379_vm0, %v4336_v37  ;;  %v846_v32 = vmin.f32 %v842_v29, %v4509_v28 }
  0xba   : > { %v4521_v33 = vpop.f32.mrf.mxu2  ;;  %v4523_v36 = vpop.f32.mrf.mxu3 }
  0xbb   : > { %6039 = vst [vmem:[#allocation11_spill] sm:$0xff] %v4521_v33  ;;  %v850_v40 = vmin.f32 %v846_v32, %v4521_v33  ;;  %v4526_v44 = vpop.f32.mrf.mxu0  ;;  %v4528_v48 = vpop.f32.mrf.mxu1 }
  0xbc   : > { %6040 = vst [vmem:[#allocation12_spill] sm:$0xff] %v4523_v36 }
  0xbd   : > { %v854_v51 = vmin.f32 %v850_v40, %v4523_v36 }
  0xbe   : > { %3890 = vmatmul.msk.f32.gmra.mxu1 %vm379_vm0, %v4353_v41  ;;  %4034 = vmatmul.msk.f32.gmra.mxu0 %vm379_vm0, %v4353_v41 }
  0xbf   : > { %3938 = vmatmul.msk.f32.gmra.mxu2 %vm379_vm0, %v4353_v41  ;;  %3986 = vmatmul.msk.f32.gmra.mxu3 %vm379_vm0, %v4353_v41  ;;  %v858_v37 = vmin.f32 %v854_v51, %v4528_v48 }
  0xc2   : > { %v4540_v52 = vpop.f32.mrf.mxu2  ;;  %v4542_v57 = vpop.f32.mrf.mxu3 }
  0xc3   : > { %6041 = vst [vmem:[#allocation13_spill] sm:$0xff] %v4540_v52  ;;  %v862_v60 = vmin.f32 %v858_v37, %v4540_v52  ;;  %v4545_v61 = vpop.f32.mrf.mxu0  ;;  %v4547_v0 = vpop.f32.mrf.mxu1 }
  0xc4   : > { %6042 = vst [vmem:[#allocation14_spill] sm:$0xff] %v4542_v57  ;;  %v831_v5 = vmin.f32 %v4469_v1, %v4545_v61 }
  0xc5   : > { %v866_v6 = vmin.f32 %v862_v60, %v4542_v57  ;;  %v829_v60 = vmin.f32 %v4432_v53, %v4507_v25 }
  0xc6   : > { %3891 = vmatmul.msk.f32.gmra.mxu1 %vm379_vm0, %v4370_v45  ;;  %4035 = vmatmul.msk.f32.gmra.mxu0 %vm379_vm0, %v4370_v45 }
  0xc7   : > { %v870_v41 = vmin.f32 %v866_v6, %v831_v5  ;;  %3939 = vmatmul.msk.f32.gmra.mxu2 %vm379_vm0, %v4370_v45  ;;  %3987 = vmatmul.msk.f32.gmra.mxu3 %vm379_vm0, %v4370_v45 }
  0xc9   : > { %v873_v9 = vmin.f32 %v4547_v0, %v870_v41 }
  0xca   : > { %v4561_v16 = vpop.f32.mrf.mxu2  ;;  %v4563_v17 = vpop.f32.mrf.mxu3 }
  0xcb   : > { %6043 = vst [vmem:[#allocation15_spill] sm:$0xff] %v4561_v16  ;;  %v835_v24 = vmin.f32 %v4561_v16, %v873_v9  ;;  %v4566_v29 = vpop.f32.mrf.mxu0  ;;  %v4568_v32 = vpop.f32.mrf.mxu1 }
  0xcc   : > { %6044 = vst [vmem:[#allocation16_spill] sm:$0xff] %v4563_v17  ;;  %v832_v40 = vmin.f32 %v4488_v12, %v4566_v29 }
  0xcd   : > { %v839_v51 = vmin.f32 %v835_v24, %v4563_v17 }
  0xce   : > { %3892 = vmatmul.msk.f32.gmra.mxu1 %vm379_vm0, %v4387_v49  ;;  %4036 = vmatmul.msk.f32.gmra.mxu0 %vm379_vm0, %v4387_v49 }
  0xcf   : > { %v843_v45 = vmin.f32 %v839_v51, %v832_v40  ;;  %3940 = vmatmul.msk.f32.gmra.mxu2 %vm379_vm0, %v4387_v49  ;;  %3988 = vmatmul.msk.f32.gmra.mxu3 %vm379_vm0, %v4387_v49 }
  0xd1   : > { %v847_v37 = vmin.f32 %v843_v45, %v4568_v32 }
  0xd2   : > { %v4584_v5 = vpop.f32.mrf.mxu2  ;;  %v4586_v6 = vpop.f32.mrf.mxu3 }
  0xd3   : > { %6045 = vst [vmem:[#allocation17_spill] sm:$0xff] %v4584_v5  ;;  %v851_v41 = vmin.f32 %v847_v37, %v4584_v5  ;;  %v4589_v9 = vpop.f32.mrf.mxu0  ;;  %v4591_v24 = vpop.f32.mrf.mxu1  ;;  %v830_v37 = vmin.f32 %v4450_v58, %v4526_v44 }
  0xd4   : > { %6046 = vst [vmem:[#allocation18_spill] sm:$0xff] %v4586_v6  ;;  %v833_v40 = vmin.f32 %v829_v60, %v4589_v9 }
  0xd5   : > { %6047 = vst [vmem:[#allocation19_spill] sm:$0xff] %v4591_v24  ;;  %v855_v51 = vmin.f32 %v851_v41, %v4586_v6 }
  0xd6   : > { %3893 = vmatmul.msk.f32.gmra.mxu1 %vm379_vm0, %v4203_v2  ;;  %4037 = vmatmul.msk.f32.gmra.mxu0 %vm379_vm0, %v4203_v2 }
  0xd7   : > { %v859_v49 = vmin.f32 %v855_v51, %v833_v40  ;;  %3941 = vmatmul.msk.f32.gmra.mxu2 %vm379_vm0, %v4203_v2  ;;  %3989 = vmatmul.msk.f32.gmra.mxu3 %vm379_vm0, %v4203_v2 }
  0xd9   : > { %v863_v45 = vmin.f32 %v859_v49, %v4591_v24 }
  0xda   : > { %v4606_v60 = vpop.f32.mrf.mxu2  ;;  %v4608_v41 = vpop.f32.mrf.mxu3 }
  0xdb   : > { %6048 = vst [vmem:[#allocation20_spill] sm:$0xff] %v4606_v60  ;;  %v867_v6 = vmin.f32 %v863_v45, %v4606_v60  ;;  %v4611_v17 = vpop.f32.mrf.mxu0  ;;  %v4613_v40 = vpop.f32.mrf.mxu1 }
  0xdc   : > { %6049 = vst [vmem:[#allocation21_spill] sm:$0xff] %v4608_v41  ;;  %v834_v51 = vmin.f32 %v830_v37, %v4611_v17 }
  0xdd   : > { %v871_v57 = vmin.f32 %v867_v6, %v4608_v41 }
  0xde   : > { %3894 = vmatmul.msk.f32.gmra.mxu1 %vm379_vm0, %v4220_v10  ;;  %4038 = vmatmul.msk.f32.gmra.mxu0 %vm379_vm0, %v4220_v10 }
  0xdf   : > { %v836_v2 = vmin.f32 %v834_v51, %v871_v57  ;;  %3942 = vmatmul.msk.f32.gmra.mxu2 %vm379_vm0, %v4220_v10  ;;  %3990 = vmatmul.msk.f32.gmra.mxu3 %vm379_vm0, %v4220_v10 }
  0xe1   : > { %v840_v49 = vmin.f32 %v836_v2, %v4613_v40 }
  0xe2   : > { %v4626_v45 = vpop.f32.mrf.mxu2  ;;  %v4628_v37 = vpop.f32.mrf.mxu3 }
  0xe3   : > { %6050 = vst [vmem:[#allocation22_spill] sm:$0xff] %v4626_v45  ;;  %v844_v6 = vmin.f32 %v840_v49, %v4626_v45  ;;  %v4631_v41 = vpop.f32.mrf.mxu0  ;;  %v4633_v36 = vpop.f32.mrf.mxu1 }
  0xe4   : > { %6051 = vst [vmem:[#allocation23_spill] sm:$0xff] %v4628_v37 }
  0xe5   : > { %6052 = vst [vmem:[#allocation24_spill] sm:$0xff] %v4633_v36  ;;  %v848_v57 = vmin.f32 %v844_v6, %v4628_v37 }
  0xe6   : > { %3895 = vmatmul.msk.f32.gmra.mxu1 %vm379_vm0, %v4237_v14  ;;  %4039 = vmatmul.msk.f32.gmra.mxu0 %vm379_vm0, %v4237_v14 }
  0xe7   : > { %v852_v10 = vmin.f32 %v848_v57, %v4631_v41  ;;  %3943 = vmatmul.msk.f32.gmra.mxu2 %vm379_vm0, %v4237_v14  ;;  %3991 = vmatmul.msk.f32.gmra.mxu3 %vm379_vm0, %v4237_v14 }
  0xe9   : > { %v856_v51 = vmin.f32 %v852_v10, %v4633_v36 }
  0xea   : > { %v4646_v2 = vpop.f32.mrf.mxu2  ;;  %v4648_v49 = vpop.f32.mrf.mxu3 }
  0xeb   : > { %6053 = vst [vmem:[#allocation25_spill] sm:$0xff] %v4646_v2  ;;  %v860_v6 = vmin.f32 %v856_v51, %v4646_v2  ;;  %v4651_v37 = vpop.f32.mrf.mxu0  ;;  %v4653_v21 = vpop.f32.mrf.mxu1 }
  0xec   : > { %6054 = vst [vmem:[#allocation26_spill] sm:$0xff] %v4648_v49 }
  0xed   : > { %6055 = vst [vmem:[#allocation27_spill] sm:$0xff] %v4653_v21  ;;  %v864_v57 = vmin.f32 %v860_v6, %v4648_v49 }
  0xee   : > { %3896 = vmatmul.msk.f32.gmra.mxu1 %vm379_vm0, %v4254_v18  ;;  %4040 = vmatmul.msk.f32.gmra.mxu0 %vm379_vm0, %v4254_v18 }
  0xef   : > { %v868_v14 = vmin.f32 %v864_v57, %v4651_v37  ;;  %3944 = vmatmul.msk.f32.gmra.mxu2 %vm379_vm0, %v4254_v18  ;;  %3992 = vmatmul.msk.f32.gmra.mxu3 %vm379_vm0, %v4254_v18  ;;  %v733_v18 = vmin.f32 %v4432_v53, 1e+30 }
  0xf1   : > { %v872_v10 = vmin.f32 %v868_v14, %v4653_v21 }
  0xf2   : > { %v4666_v51 = vpop.f32.mrf.mxu2  ;;  %v4668_v8 = vpop.f32.mrf.mxu3 }
  0xf3   : > { %6056 = vst [vmem:[#allocation28_spill] sm:$0xff] %v4666_v51  ;;  %v874_v6 = vmin.f32 %v4666_v51, %v872_v10  ;;  %v4671_v49 = vpop.f32.mrf.mxu1  ;;  %v4673_v63 = vpop.f32.mrf.mxu0 }
  0xf4   : > { %6057 = vst [vmem:[#allocation29_spill] sm:$0xff] %v4668_v8  ;;  %v1098_v56 = vmin.f32 %v733_v18, %v4671_v49 }
  0xf5   : > { %v875_v57 = vmin.f32 %v4668_v8, %v874_v6 }
  0xf6   : > { %3897 = vmatmul.msk.f32.gmra.mxu1 %vm379_vm0, %v4271_v22  ;;  %4041 = vmatmul.msk.f32.gmra.mxu0 %vm379_vm0, %v4271_v22 }
  0xf7   : > { %v876_v14 = vrot.slane %v875_v57, 4  ;;  %3945 = vmatmul.msk.f32.gmra.mxu2 %vm379_vm0, %v4271_v22  ;;  %3993 = vmatmul.msk.f32.gmra.mxu3 %vm379_vm0, %v4271_v22  ;;  %v734_v22 = vmin.f32 %v4450_v58, 1e+30  ;;  %v6058_v58 = vmov 0 }
  0xf8   : > { %v6059_v58 = vsel %vm4714_vm1, 4294967295, %v6058_v58 }
  0xf9   : > { %v877_v10 = vmin.f32 %v875_v57, %v876_v14  ;;  %6060 = vst [vmem:[#allocation30_spill] sm:$0xff] %v6059_v58 }
  0xfa   : > { %v4686_v6 = vpop.f32.mrf.mxu2  ;;  %v4688_v8 = vpop.f32.mrf.mxu3 }
  0xfb   : > { %v878_v51 = vrot.slane %v877_v10, 2  ;;  %v1459_v2 = vmin.f32 %v1098_v56, %v4686_v6  ;;  %v4691_v45 = vpop.f32.mrf.mxu1  ;;  %v4693_v53 = vpop.f32.mrf.mxu0 }
  0xfd   : > { %v879_v7 = vmin.f32 %v877_v10, %v878_v51  ;;  %v1820_v20 = vmin.f32 %v1459_v2, %v4688_v8  ;;  %v1099_v51 = vmin.f32 %v734_v22, %v4691_v45 }
  0xfe   : > { %3898 = vmatmul.msk.f32.gmra.mxu1 %vm379_vm0, %v4288_v26  ;;  %4042 = vmatmul.msk.f32.gmra.mxu0 %vm379_vm0, %v4288_v26 }
  0xff   : > { %v880_v57 = vrot.slane %v879_v7, 1  ;;  %3946 = vmatmul.msk.f32.gmra.mxu2 %vm379_vm0, %v4288_v26  ;;  %3994 = vmatmul.msk.f32.gmra.mxu3 %vm379_vm0, %v4288_v26  ;;  %v2181_v56 = vmin.f32 %v1820_v20, %v4673_v63 }
 0x101   : > { %v881_v2 = vmin.f32 %v879_v7, %v880_v57  ;;  %2383 = vmin.xlane.f32.xlu0 %v2181_v56  ;;  %v735_v57 = vmin.f32 %v4469_v1, 1e+30 }
 0x102   : > { %v4718_v18 = vpop.f32.mrf.mxu2  ;;  %v4720_v26 = vpop.f32.mrf.mxu3 }
 0x103   : > { %v882_v20 = vmax.f32 %v881_v2, 0.0  ;;  %v1460_v7 = vmin.f32 %v1099_v51, %v4718_v18  ;;  %v4723_v14 = vpop.f32.mrf.mxu1  ;;  %v4725_v10 = vpop.f32.mrf.mxu0 }
 0x104   : > { %v1100_v2 = vmin.f32 %v735_v57, %v4723_v14 }
 0x105   : > { %887 = vst.msk [vmem:[%s4711_s27] sm:$0x1] %vm4714_vm1, %v882_v20  ;;  %v1821_v22 = vmin.f32 %v1460_v7, %v4720_v26 }
 0x106   : > { %3899 = vmatmul.msk.f32.gmra.mxu1 %vm379_vm0, %v4305_v30  ;;  %4043 = vmatmul.msk.f32.gmra.mxu0 %vm379_vm0, %v4305_v30 }
 0x107   : > { %3947 = vmatmul.msk.f32.gmra.mxu2 %vm379_vm0, %v4305_v30  ;;  %3995 = vmatmul.msk.f32.gmra.mxu3 %vm379_vm0, %v4305_v30  ;;  %v2182_v56 = vmin.f32 %v1821_v22, %v4693_v53  ;;  %v736_v30 = vmin.f32 %v4488_v12, 1e+30 }
 0x109   : > { %2385 = vmin.xlane.f32.xlu0 %v2182_v56 }
 0x10a   : > { %v4742_v51 = vpop.f32.mrf.mxu2  ;;  %v4744_v20 = vpop.f32.mrf.mxu3 }
 0x10b   : > { %v1461_v7 = vmin.f32 %v1100_v2, %v4742_v51  ;;  %v4747_v62 = vpop.f32.mrf.mxu1  ;;  %v1998_v1 = vpop.f32.mrf.mxu0 }
 0x10c   : > { %v1101_v57 = vmin.f32 %v736_v30, %v4747_v62 }
 0x10d   : > { %v1822_v58 = vmin.f32 %v1461_v7, %v4744_v20 }
 0x10e   : > { %3900 = vmatmul.msk.f32.gmra.mxu1 %vm379_vm0, %v4322_v34  ;;  %4044 = vmatmul.msk.f32.gmra.mxu0 %vm379_vm0, %v4322_v34 }
 0x10f   : > { %3948 = vmatmul.msk.f32.gmra.mxu2 %vm379_vm0, %v4322_v34  ;;  %3996 = vmatmul.msk.f32.gmra.mxu3 %vm379_vm0, %v4322_v34  ;;  %v2183_v22 = vmin.f32 %v1822_v58, %v4725_v10  ;;  %v737_v34 = vmin.f32 %v4507_v25, 1e+30 }
 0x111   : > { %2387 = vmin.xlane.f32.xlu1 %v2183_v22 }
 0x112   : > { %v1276_v56 = vpop.f32.mrf.mxu2  ;;  %v1637_v2 = vpop.f32.mrf.mxu3 }
 0x113   : > { %v1462_v7 = vmin.f32 %v1101_v57, %v1276_v56  ;;  %v4761_v60 = vpop.f32.mrf.mxu1  ;;  %v2001_v5 = vpop.f32.mrf.mxu0 }
 0x114   : > { %v2277_v16 = vmin.f32 %v4673_v63, %v2001_v5  ;;  %v1102_v30 = vmin.f32 %v737_v34, %v4761_v60 }
 0x115   : > { %v1823_v12 = vmin.f32 %v1462_v7, %v1637_v2 }
 0x116   : > { %v2280_v52 = vmin.f32 %v1998_v1, %v2277_v16  ;;  %3901 = vmatmul.msk.f32.gmra.mxu1 %vm379_vm0, %v4339_v38  ;;  %4045 = vmatmul.msk.f32.gmra.mxu0 %vm379_vm0, %v4339_v38 }
 0x117   : > { %3949 = vmatmul.msk.f32.gmra.mxu2 %vm379_vm0, %v4339_v38  ;;  %3997 = vmatmul.msk.f32.gmra.mxu3 %vm379_vm0, %v4339_v38  ;;  %v2184_v58 = vmin.f32 %v1823_v12, %v1998_v1  ;;  %v738_v1 = vmin.f32 %v4526_v44, 1e+30 }
 0x119   : > { %2389 = vmin.xlane.f32.xlu1 %v2184_v58 }
 0x11a   : > { %v1279_v63 = vpop.f32.mrf.mxu2  ;;  %v1640_v16 = vpop.f32.mrf.mxu3 }
 0x11b   : > { %v1463_v22 = vmin.f32 %v1102_v30, %v1279_v63  ;;  %v1555_v57 = vmin.f32 %v4686_v6, %v1279_v63  ;;  %v1916_v7 = vmin.f32 %v4688_v8, %v1640_v16  ;;  %v4776_v21 = vpop.f32.mrf.mxu1  ;;  %v2004_v25 = vpop.f32.mrf.mxu0 }
 0x11c   : > { %v2278_v55 = vmin.f32 %v4693_v53, %v2004_v25  ;;  %v1103_v6 = vmin.f32 %v738_v1, %v4776_v21 }
 0x11d   : > { %v1558_v33 = vmin.f32 %v1276_v56, %v1555_v57  ;;  %v1919_v36 = vmin.f32 %v1637_v2, %v1916_v7  ;;  %v1824_v24 = vmin.f32 %v1463_v22, %v1640_v16 }
 0x11e   : > { %v2281_v38 = vmin.f32 %v2278_v55, %v2280_v52  ;;  %3902 = vmatmul.msk.f32.gmra.mxu1 %vm379_vm0, %v4356_v42  ;;  %4046 = vmatmul.msk.f32.gmra.mxu0 %vm379_vm0, %v4356_v42 }
 0x11f   : > { %3950 = vmatmul.msk.f32.gmra.mxu2 %vm379_vm0, %v4356_v42  ;;  %3998 = vmatmul.msk.f32.gmra.mxu3 %vm379_vm0, %v4356_v42  ;;  %v2185_v8 = vmin.f32 %v1824_v24, %v2001_v5  ;;  %v739_v5 = vmin.f32 %v4545_v61, 1e+30 }
 0x121   : > { %2391 = vmin.xlane.f32.xlu2 %v2185_v8 }
 0x122   : > { %v1282_v53 = vpop.f32.mrf.mxu2  ;;  %v1643_v55 = vpop.f32.mrf.mxu3 }
 0x123   : > { %v1464_v52 = vmin.f32 %v1103_v6, %v1282_v53  ;;  %v1556_v56 = vmin.f32 %v4718_v18, %v1282_v53  ;;  %v1917_v2 = vmin.f32 %v4720_v26, %v1643_v55  ;;  %v4791_v12 = vpop.f32.mrf.mxu1  ;;  %v2007_v44 = vpop.f32.mrf.mxu0 }
 0x124   : > { %v2279_v34 = vmin.f32 %v4725_v10, %v2007_v44 }
 0x125   : > { %v1559_v58 = vmin.f32 %v1556_v56, %v1558_v33  ;;  %v1920_v30 = vmin.f32 %v1917_v2, %v1919_v36  ;;  %v1825_v63 = vmin.f32 %v1464_v52, %v1643_v55  ;;  %v1104_v33 = vmin.f32 %v739_v5, %v4791_v12 }
 0x126   : > { %v4794_v42 = vmin.f32 %v2279_v34, %v2281_v38  ;;  %3903 = vmatmul.msk.f32.gmra.mxu1 %vm379_vm0, %v4373_v46  ;;  %4047 = vmatmul.msk.f32.gmra.mxu0 %vm379_vm0, %v4373_v46 }
 0x127   : > { %3951 = vmatmul.msk.f32.gmra.mxu2 %vm379_vm0, %v4373_v46  ;;  %3999 = vmatmul.msk.f32.gmra.mxu3 %vm379_vm0, %v4373_v46  ;;  %v2186_v24 = vmin.f32 %v1825_v63, %v2004_v25  ;;  %v740_v46 = vmin.f32 %v4566_v29, 1e+30 }
 0x129   : > { %2393 = vmin.xlane.f32.xlu2 %v2186_v24 }
 0x12a   : > { %v1285_v36 = vpop.f32.mrf.mxu2  ;;  %v1646_v18 = vpop.f32.mrf.mxu3 }
 0x12b   : > { %v1465_v26 = vmin.f32 %v1104_v33, %v1285_v36  ;;  %v1557_v10 = vmin.f32 %v4742_v51, %v1285_v36  ;;  %v1918_v16 = vmin.f32 %v4744_v20, %v1646_v18  ;;  %v4808_v22 = vpop.f32.mrf.mxu1  ;;  %v4810_v61 = vpop.f32.mrf.mxu0 }
 0x12c   : > { %v1105_v20 = vmin.f32 %v740_v46, %v4808_v22 }
 0x12d   : > { %v1560_v57 = vmin.f32 %v1557_v10, %v1559_v58  ;;  %v1921_v7 = vmin.f32 %v1918_v16, %v1920_v30  ;;  %v1826_v38 = vmin.f32 %v1465_v26, %v1646_v18 }
 0x12e   : > { %3904 = vmatmul.msk.f32.gmra.mxu1 %vm379_vm0, %v4390_v50  ;;  %4048 = vmatmul.msk.f32.gmra.mxu0 %vm379_vm0, %v4390_v50 }
 0x12f   : > { %3952 = vmatmul.msk.f32.gmra.mxu2 %vm379_vm0, %v4390_v50  ;;  %4000 = vmatmul.msk.f32.gmra.mxu3 %vm379_vm0, %v4390_v50  ;;  %v2187_v51 = vmin.f32 %v1826_v38, %v2007_v44  ;;  %v741_v50 = vmin.f32 %v4589_v9, 1e+30 }
 0x131   : > { %2395 = vmin.xlane.f32.xlu0 %v2187_v51 }
 0x132   : > { %v1288_v25 = vpop.f32.mrf.mxu2  ;;  %v1649_v1 = vpop.f32.mrf.mxu3 }
 0x133   : > { %v1561_v8 = vmin.f32 %v1288_v25, %v1560_v57  ;;  %v1466_v6 = vmin.f32 %v1105_v20, %v1288_v25  ;;  %v1922_v53 = vmin.f32 %v1649_v1, %v1921_v7  ;;  %v4822_v55 = vpop.f32.mrf.mxu1  ;;  %v4824_v52 = vpop.f32.mrf.mxu0 }
 0x134   : > { %v1106_v2 = vmin.f32 %v741_v50, %v4822_v55 }
 0x135   : > { %v1827_v29 = vmin.f32 %v1466_v6, %v1649_v1 }
 0x136   : > { %3905 = vmatmul.msk.f32.gmra.mxu1 %vm379_vm0, %v4206_v3  ;;  %4049 = vmatmul.msk.f32.gmra.mxu0 %vm379_vm0, %v4206_v3 }
 0x137   : > { %3953 = vmatmul.msk.f32.gmra.mxu2 %vm379_vm0, %v4206_v3  ;;  %4001 = vmatmul.msk.f32.gmra.mxu3 %vm379_vm0, %v4206_v3  ;;  %v2188_v56 = vmin.f32 %v1827_v29, %v4810_v61  ;;  %v742_v3 = vmin.f32 %v4611_v17, 1e+30 }
 0x139   : > { %2397 = vmin.xlane.f32.xlu1 %v2188_v56 }
 0x13a   : > { %v1291_v44 = vpop.f32.mrf.mxu2  ;;  %v1652_v34 = vpop.f32.mrf.mxu3 }
 0x13b   : > { %v1562_v58 = vmin.f32 %v1291_v44, %v1561_v8  ;;  %v1467_v30 = vmin.f32 %v1106_v2, %v1291_v44  ;;  %v1923_v63 = vmin.f32 %v1652_v34, %v1922_v53  ;;  %v4837_v5 = vpop.f32.mrf.mxu1  ;;  %v4839_v24 = vpop.f32.mrf.mxu0 }
 0x13c   : > { %v1107_v36 = vmin.f32 %v742_v3, %v4837_v5 }
 0x13d   : > { %v1828_v9 = vmin.f32 %v1467_v30, %v1652_v34 }
 0x13e   : > { %3906 = vmatmul.msk.f32.gmra.mxu1 %vm379_vm0, %v4223_v11  ;;  %4050 = vmatmul.msk.f32.gmra.mxu0 %vm379_vm0, %v4223_v11 }
 0x13f   : > { %3954 = vmatmul.msk.f32.gmra.mxu2 %vm379_vm0, %v4223_v11  ;;  %4002 = vmatmul.msk.f32.gmra.mxu3 %vm379_vm0, %v4223_v11  ;;  %v2189_v33 = vmin.f32 %v1828_v9, %v4824_v52  ;;  %v743_v11 = vmin.f32 %v4631_v41, 1e+30 }
 0x141   : > { %2399 = vmin.xlane.f32.xlu2 %v2189_v33 }
 0x142   : > { %v1294_v18 = vpop.f32.mrf.mxu2  ;;  %v1655_v26 = vpop.f32.mrf.mxu3 }
 0x143   : > { %v1563_v10 = vmin.f32 %v1294_v18, %v1562_v58  ;;  %v1468_v16 = vmin.f32 %v1107_v36, %v1294_v18  ;;  %v1924_v57 = vmin.f32 %v1655_v26, %v1923_v63  ;;  %v4852_v7 = vpop.f32.mrf.mxu1  ;;  %v4854_v38 = vpop.f32.mrf.mxu0 }
 0x144   : > { %v1108_v51 = vmin.f32 %v743_v11, %v4852_v7 }
 0x145   : > { %v1829_v17 = vmin.f32 %v1468_v16, %v1655_v26 }
 0x146   : > { %3907 = vmatmul.msk.f32.gmra.mxu1 %vm379_vm0, %v4240_v15  ;;  %4051 = vmatmul.msk.f32.gmra.mxu0 %vm379_vm0, %v4240_v15 }
 0x147   : > { %3955 = vmatmul.msk.f32.gmra.mxu2 %vm379_vm0, %v4240_v15  ;;  %4003 = vmatmul.msk.f32.gmra.mxu3 %vm379_vm0, %v4240_v15  ;;  %v2190_v46 = vmin.f32 %v1829_v17, %v4839_v24  ;;  %v744_v15 = vmin.f32 %v4651_v37, 1e+30 }
 0x149   : > { %2401 = vmin.xlane.f32.xlu0 %v2190_v46 }
 0x14a   : > { %v1297_v20 = vpop.f32.mrf.mxu2  ;;  %v1658_v25 = vpop.f32.mrf.mxu3 }
 0x14b   : > { %v1564_v1 = vmin.f32 %v1297_v20, %v1563_v10  ;;  %v1469_v8 = vmin.f32 %v1108_v51, %v1297_v20  ;;  %v1925_v6 = vmin.f32 %v1658_v25, %v1924_v57  ;;  %v4867_v53 = vpop.f32.mrf.mxu1  ;;  %v4869_v29 = vpop.f32.mrf.mxu0 }
 0x14c   : > { %v1109_v56 = vmin.f32 %v744_v15, %v4867_v53 }
 0x14d   : > { %v1830_v41 = vmin.f32 %v1469_v8, %v1658_v25 }
 0x14e   : > { %3908 = vmatmul.msk.f32.gmra.mxu1 %vm379_vm0, %v4257_v19  ;;  %4052 = vmatmul.msk.f32.gmra.mxu0 %vm379_vm0, %v4257_v19 }
 0x14f   : > { %3956 = vmatmul.msk.f32.gmra.mxu2 %vm379_vm0, %v4257_v19  ;;  %4004 = vmatmul.msk.f32.gmra.mxu3 %vm379_vm0, %v4257_v19  ;;  %v2191_v50 = vmin.f32 %v1830_v41, %v4854_v38  ;;  %v745_v19 = vmin.f32 %v4434_v54, 1e+30 }
 0x151   : > { %2403 = vmin.xlane.f32.xlu1 %v2191_v50 }
 0x152   : > { %v1300_v2 = vpop.f32.mrf.mxu2  ;;  %v1661_v44 = vpop.f32.mrf.mxu3 }
 0x153   : > { %v1565_v34 = vmin.f32 %v1300_v2, %v1564_v1  ;;  %v1470_v58 = vmin.f32 %v1109_v56, %v1300_v2  ;;  %v1926_v30 = vmin.f32 %v1661_v44, %v1925_v6  ;;  %v4882_v63 = vpop.f32.mrf.mxu1  ;;  %v4884_v9 = vpop.f32.mrf.mxu0 }
 0x154   : > { %v1110_v33 = vmin.f32 %v745_v19, %v4882_v63 }
 0x155   : > { %v1831_v37 = vmin.f32 %v1470_v58, %v1661_v44 }
 0x156   : > { %3909 = vmatmul.msk.f32.gmra.mxu1 %vm379_vm0, %v4274_v23  ;;  %4053 = vmatmul.msk.f32.gmra.mxu0 %vm379_vm0, %v4274_v23 }
 0x157   : > { %3957 = vmatmul.msk.f32.gmra.mxu2 %vm379_vm0, %v4274_v23  ;;  %4005 = vmatmul.msk.f32.gmra.mxu3 %vm379_vm0, %v4274_v23  ;;  %v2192_v3 = vmin.f32 %v1831_v37, %v4869_v29  ;;  %v746_v23 = vmin.f32 %v4452_v59, 1e+30 }
 0x159   : > { %2405 = vmin.xlane.f32.xlu2 %v2192_v3 }
 0x15a   : > { %v1303_v36 = vpop.f32.mrf.mxu2  ;;  %v1664_v18 = vpop.f32.mrf.mxu3 }
 0x15b   : > { %v1566_v26 = vmin.f32 %v1303_v36, %v1565_v34  ;;  %v1471_v10 = vmin.f32 %v1110_v33, %v1303_v36  ;;  %v1927_v16 = vmin.f32 %v1664_v18, %v1926_v30  ;;  %v4897_v57 = vpop.f32.mrf.mxu1  ;;  %v4899_v17 = vpop.f32.mrf.mxu0 }
 0x15c   : > { %v1111_v46 = vmin.f32 %v746_v23, %v4897_v57 }
 0x15d   : > { %v1832_v54 = vmin.f32 %v1471_v10, %v1664_v18 }
 0x15e   : > { %3910 = vmatmul.msk.f32.gmra.mxu1 %vm379_vm0, %v4291_v27  ;;  %4054 = vmatmul.msk.f32.gmra.mxu0 %vm379_vm0, %v4291_v27 }
 0x15f   : > { %3958 = vmatmul.msk.f32.gmra.mxu2 %vm379_vm0, %v4291_v27  ;;  %4006 = vmatmul.msk.f32.gmra.mxu3 %vm379_vm0, %v4291_v27  ;;  %v2193_v11 = vmin.f32 %v1832_v54, %v4884_v9  ;;  %v747_v27 = vmin.f32 %v4471_v4, 1e+30 }
 0x161   : > { %2407 = vmin.xlane.f32.xlu0 %v2193_v11 }
 0x162   : > { %v1306_v51 = vpop.f32.mrf.mxu2  ;;  %v1667_v20 = vpop.f32.mrf.mxu3 }
 0x163   : > { %v1567_v25 = vmin.f32 %v1306_v51, %v1566_v26  ;;  %v1472_v1 = vmin.f32 %v1111_v46, %v1306_v51  ;;  %v1928_v8 = vmin.f32 %v1667_v20, %v1927_v16  ;;  %v4912_v6 = vpop.f32.mrf.mxu1  ;;  %v4914_v41 = vpop.f32.mrf.mxu0 }
 0x164   : > { %v1112_v50 = vmin.f32 %v747_v27, %v4912_v6 }
 0x165   : > { %v1833_v59 = vmin.f32 %v1472_v1, %v1667_v20 }
 0x166   : > { %3911 = vmatmul.msk.f32.gmra.mxu1 %vm379_vm0, %v4308_v31  ;;  %4055 = vmatmul.msk.f32.gmra.mxu0 %vm379_vm0, %v4308_v31 }
 0x167   : > { %3959 = vmatmul.msk.f32.gmra.mxu2 %vm379_vm0, %v4308_v31  ;;  %4007 = vmatmul.msk.f32.gmra.mxu3 %vm379_vm0, %v4308_v31  ;;  %v2194_v15 = vmin.f32 %v1833_v59, %v4899_v17  ;;  %v748_v31 = vmin.f32 %v4490_v13, 1e+30 }
 0x169   : > { %2409 = vmin.xlane.f32.xlu1 %v2194_v15 }
 0x16a   : > { %v1309_v56 = vpop.f32.mrf.mxu2  ;;  %v1670_v2 = vpop.f32.mrf.mxu3 }
 0x16b   : > { %v1568_v44 = vmin.f32 %v1309_v56, %v1567_v25  ;;  %v1473_v34 = vmin.f32 %v1112_v50, %v1309_v56  ;;  %v1929_v58 = vmin.f32 %v1670_v2, %v1928_v8  ;;  %v4927_v30 = vpop.f32.mrf.mxu1  ;;  %v4929_v37 = vpop.f32.mrf.mxu0 }
 0x16c   : > { %v1113_v3 = vmin.f32 %v748_v31, %v4927_v30 }
 0x16d   : > { %v1834_v4 = vmin.f32 %v1473_v34, %v1670_v2 }
 0x16e   : > { %3912 = vmatmul.msk.f32.gmra.mxu1 %vm379_vm0, %v4325_v35  ;;  %4056 = vmatmul.msk.f32.gmra.mxu0 %vm379_vm0, %v4325_v35 }
 0x16f   : > { %3960 = vmatmul.msk.f32.gmra.mxu2 %vm379_vm0, %v4325_v35  ;;  %4008 = vmatmul.msk.f32.gmra.mxu3 %vm379_vm0, %v4325_v35  ;;  %v2195_v19 = vmin.f32 %v1834_v4, %v4914_v41  ;;  %v749_v35 = vmin.f32 %v4509_v28, 1e+30 }
 0x171   : > { %2411 = vmin.xlane.f32.xlu2 %v2195_v19  ;;  %v2283_v19 = vmin.f32 %v4810_v61, %v4794_v42 }
 0x172   : > { %v1312_v33 = vpop.f32.mrf.mxu2  ;;  %v1673_v36 = vpop.f32.mrf.mxu3 }
 0x173   : > { %v1569_v18 = vmin.f32 %v1312_v33, %v1568_v44  ;;  %v1474_v26 = vmin.f32 %v1113_v3, %v1312_v33  ;;  %v1930_v10 = vmin.f32 %v1673_v36, %v1929_v58  ;;  %v4942_v16 = vpop.f32.mrf.mxu1  ;;  %v4944_v54 = vpop.f32.mrf.mxu0  ;;  %v750_v3 = vmin.f32 %v4528_v48, 1e+30 }
 0x174   : > { %v2384_v13 = vpop.xlane.xlu0 %2383  ;;  %v1114_v1 = vmin.f32 %v749_v35, %v4942_v16  ;;  %v2284_v33 = vmin.f32 %v4824_v52, %v2283_v19  ;;  %v4148_v48 = vmov 0  }
 0x175   : > { %v2479_v23 = vmax.f32 %v2384_v13, 0.0  ;;  %v1835_v11 = vmin.f32 %v1474_v26, %v1673_v36  ;;  %4107 = vset.pattern.permute.xlu0 %v4148_v48  ;;  %4108 = vset.pattern.permute.xlu1 %v4148_v48 }
 0x176   : > { %3913 = vmatmul.msk.f32.gmra.mxu1 %vm379_vm0, %v4342_v39  ;;  %4057 = vmatmul.msk.f32.gmra.mxu0 %vm379_vm0, %v4342_v39 }
 0x177   : > { %v2575_v46 = vperm.slane %v2479_v23, 0  ;;  %v2576_v51 = vperm.slane %v2479_v23, 1  ;;  %v2577_v20 = vperm.slane %v2479_v23, 2  ;;  %3961 = vmatmul.msk.f32.gmra.mxu2 %vm379_vm0, %v4342_v39  ;;  %4009 = vmatmul.msk.f32.gmra.mxu3 %vm379_vm0, %v4342_v39  ;;  %v2578_v25 = vperm.slane %v2479_v23, 3 }
 0x178   : > { %v2579_v8 = vperm.slane %v2479_v23, 4  ;;  %v2196_v59 = vmin.f32 %v1835_v11, %v4929_v37  ;;  %v2580_v27 = vperm.slane %v2479_v23, 5  ;;  %v2581_v50 = vperm.slane %v2479_v23, 6  ;;  %4109 = vset.pattern.permute.xlu2 %v4148_v48 }
 0x179   : > { %2959 = vst [vmem:[#allocation1] ss:$9 sm:$0xff] %v2575_v46  ;;  %v2582_v34 = vperm.slane %v2479_v23, 7 }
 0x17a   : > { %2961 = vst [vmem:[#allocation1 + $0x1] ss:$9 sm:$0xff] %v2576_v51  ;;  %v1315_v15 = vpop.f32.mrf.mxu2  ;;  %v1676_v28 = vpop.f32.mrf.mxu3  ;;  %2413 = vmin.xlane.f32.xlu0 %v2196_v59  ;;  %v4110_v59 = vld [vmem:[%s4194_s20 + $0x110] sm:$0xff] }
 0x17b   : > { %2963 = vst [vmem:[#allocation1 + $0x2] ss:$9 sm:$0xff] %v2577_v20  ;;  %v4957_v56 = vmin.f32 %v1315_v15, %v1569_v18  ;;  %v1475_v2 = vmin.f32 %v1114_v1, %v1315_v15  ;;  %v4959_v44 = vmin.f32 %v1676_v28, %v1930_v10  ;;  %v4961_v39 = vpop.f32.mrf.mxu0  ;;  %v4963_v58 = vpop.f32.mrf.mxu1  ;;  %v2285_v18 = vmin.f32 %v4839_v24, %v2284_v33 }
 0x17c   : > { %2965 = vst [vmem:[#allocation1 + $0x3] ss:$9 sm:$0xff] %v2578_v25  ;;  %v2386_v4 = vpop.xlane.xlu0 %2385  ;;  %v1115_v61 = vmin.f32 %v750_v3, %v4963_v58 }
 0x17d   : > { %2967 = vst [vmem:[#allocation1 + $0x4] ss:$9 sm:$0xff] %v2579_v8  ;;  %v1836_v31 = vmin.f32 %v1475_v2, %v1676_v28  ;;  %v2480_v42 = vmax.f32 %v2386_v4, 0.0  ;;  %v2286_v35 = vmin.f32 %v4854_v38, %v2285_v18  ;;  %v1195_v38 = vmin.f32 %v4691_v45, %v4776_v21 }
 0x17e   : > { %2969 = vst [vmem:[#allocation1 + $0x5] ss:$9 sm:$0xff] %v2580_v27  ;;  %3914 = vmatmul.msk.f32.gmra.mxu1 %vm379_vm0, %v4359_v43  ;;  %4058 = vmatmul.msk.f32.gmra.mxu0 %vm379_vm0, %v4359_v43 }
 0x17f   : > { %2971 = vst [vmem:[#allocation1 + $0x6] ss:$9 sm:$0xff] %v2581_v50  ;;  %3962 = vmatmul.msk.f32.gmra.mxu2 %vm379_vm0, %v4359_v43  ;;  %4010 = vmatmul.msk.f32.gmra.mxu3 %vm379_vm0, %v4359_v43  ;;  %v2197_v36 = vmin.f32 %v1836_v31, %v4944_v54  ;;  %v2583_v11 = vperm.slane %v2480_v42, 0  ;;  %v2584_v46 = vperm.slane %v2480_v42, 1  ;;  %v2585_v51 = vperm.slane %v2480_v42, 2  ;;  %v4111_v31 = vld [vmem:[%s4194_s20 + $0x118] sm:$0xff] }
 0x180   : > { %2973 = vst [vmem:[#allocation1 + $0x7] ss:$9 sm:$0xff] %v2582_v34  ;;  %v2287_v25 = vmin.f32 %v4869_v29, %v2286_v35  ;;  %v2586_v8 = vperm.slane %v2480_v42, 3  ;;  %v2587_v27 = vperm.slane %v2480_v42, 4  ;;  %v2588_v28 = vperm.slane %v2480_v42, 5 }
 0x181   : > { %2415 = vmin.xlane.f32.xlu1 %v2197_v36  ;;  %v1194_v29 = vmin.f32 %v4671_v49, %v4761_v60  ;;  %v1196_v50 = vmin.f32 %v4723_v14, %v4791_v12  ;;  %v2590_v45 = vperm.slane %v2480_v42, 7  ;;  %v1197_v14 = vmin.f32 %v4747_v62, %v4808_v22 }
 0x182   : > { %v1318_v26 = vpop.f32.mrf.mxu2  ;;  %v1679_v10 = vpop.f32.mrf.mxu3  ;;  %v2288_v15 = vmin.f32 %v4884_v9, %v2287_v25 }
 0x183   : > { %v1571_v13 = vmin.f32 %v1318_v26, %v4957_v56  ;;  %v1476_v43 = vmin.f32 %v1115_v61, %v1318_v26  ;;  %v1932_v52 = vmin.f32 %v1679_v10, %v4959_v44  ;;  %v4982_v23 = vpop.f32.mrf.mxu0  ;;  %v4985_v20 = vpop.f32.mrf.mxu1  ;;  %v2589_v56 = vperm.slane %v2480_v42, 6 }
 0x184   : > { %v2289_v21 = vmin.f32 %v4899_v17, %v2288_v15  ;;  %v1198_v49 = vmin.f32 %v1194_v29, %v1195_v38  ;;  %v2388_v12 = vpop.xlane.xlu1 %2387 }
 0x185   : > { %v1837_v24 = vmin.f32 %v1476_v43, %v1679_v10  ;;  %v2481_v3 = vmax.f32 %v2388_v12, 0.0 }
 0x186   : > { %3915 = vmatmul.msk.f32.gmra.mxu1 %vm379_vm0, %v4376_v47  ;;  %4059 = vmatmul.msk.f32.gmra.mxu0 %vm379_vm0, %v4376_v47  ;;  %v2290_v34 = vmin.f32 %v4914_v41, %v2289_v21  ;;  %v1199_v17 = vmin.f32 %v1196_v50, %v1198_v49 }
 0x187   : > { %v2974_v1 = vld [vmem:[#allocation1] sm:$0xff]  ;;  %3963 = vmatmul.msk.f32.gmra.mxu2 %vm379_vm0, %v4110_v59  ;;  %4011 = vmatmul.msk.f32.gmra.mxu3 %vm379_vm0, %v4110_v59  ;;  %v2198_v47 = vmin.f32 %v1837_v24, %v4961_v39  ;;  %v2591_v36 = vperm.slane %v2481_v3, 0  ;;  %v2592_v10 = vperm.slane %v2481_v3, 1  ;;  %v2594_v43 = vperm.slane %v2481_v3, 3 }
 0x188   : > { %2975 = vst [vmem:[#allocation1] ss:$9 sm:$0xff] %v2583_v11  ;;  %v2291_v19 = vmin.f32 %v4929_v37, %v2290_v34  ;;  %v1200_v62 = vmin.f32 %v1197_v14, %v1199_v17  ;;  %v2595_v11 = vperm.slane %v2481_v3, 4  ;;  %v4114_v34 = vld [vmem:[%s4194_s20 + $0x130] sm:$0xff] }
 0x189   : > { %2976 = vst [vmem:[#allocation1 + $0x1] ss:$9 sm:$0xff] %v2584_v46  ;;  %2417 = vmin.xlane.f32.xlu2 %v2198_v47 }
 0x18a   : > { %2977 = vst [vmem:[#allocation1 + $0x2] ss:$9 sm:$0xff] %v2585_v51  ;;  %v5003_v2 = vpop.f32.mrf.mxu2  ;;  %v5005_v44 = vpop.f32.mrf.mxu3  ;;  %v2292_v41 = vmin.f32 %v4944_v54, %v2291_v19  ;;  %v1201_v33 = vmin.f32 %v4822_v55, %v1200_v62  ;;  %v2597_v51 = vperm.slane %v2481_v3, 6 }
 0x18b   : > { %2978 = vst [vmem:[#allocation1 + $0x3] ss:$9 sm:$0xff] %v2586_v8  ;;  %v5009_v9 = vmin.f32 %v5003_v2, %v1571_v13  ;;  %v5012_v60 = vmin.f32 %v5005_v44, %v1932_v52  ;;  %v5017_v4 = vpop.f32.mrf.mxu0  ;;  %v5024_v22 = vpop.f32.mrf.mxu1  ;;  %v2593_v13 = vperm.slane %v2481_v3, 2  ;;  %v4112_v52 = vld [vmem:[%s4194_s20 + $0x120] sm:$0xff] }
 0x18c   : > { %2979 = vst [vmem:[#allocation1 + $0x4] ss:$9 sm:$0xff] %v2587_v27  ;;  %v2293_v37 = vmin.f32 %v4961_v39, %v2292_v41  ;;  %v1202_v48 = vmin.f32 %v4837_v5, %v1201_v33  ;;  %v2596_v5 = vperm.slane %v2481_v3, 5  ;;  %v2390_v59 = vpop.xlane.xlu1 %2389 }
 0x18d   : > { %2980 = vst [vmem:[#allocation1 + $0x5] ss:$9 sm:$0xff] %v2588_v28  ;;  %v2482_v15 = vmax.f32 %v2390_v59, 0.0  ;;  %v752_v59 = vmin.f32 %v4568_v32, 1e+30 }
 0x18e   : > { %2981 = vst [vmem:[#allocation1 + $0x6] ss:$9 sm:$0xff] %v2589_v56  ;;  %3916 = vmatmul.msk.f32.gmra.mxu1 %vm379_vm0, %v4111_v31  ;;  %4060 = vmatmul.msk.f32.gmra.mxu0 %vm379_vm0, %v4111_v31  ;;  %v2294_v54 = vmin.f32 %v4982_v23, %v2293_v37  ;;  %v1203_v39 = vmin.f32 %v4852_v7, %v1202_v48  ;;  %v2598_v7 = vperm.slane %v2481_v3, 7  ;;  %v751_v3 = vmin.f32 %v4547_v0, 1e+30 }
 0x18f   : > { %2982 = vst [vmem:[#allocation1 + $0x7] ss:$9 sm:$0xff] %v2590_v45  ;;  %3399 = vperm.xlu0 %4107, %v2974_v1   ;;  %3964 = vmatmul.msk.f32.gmra.mxu2 %vm379_vm0, %v4111_v31  ;;  %v2599_v50 = vperm.slane %v2482_v15, 0  ;;  %v2600_v21 = vperm.slane %v2482_v15, 1  ;;  %v2601_v45 = vperm.slane %v2482_v15, 2  ;;  %v2602_v14 = vperm.slane %v2482_v15, 3 }
 0x190   : > { %4012 = vmatmul.msk.f32.gmra.mxu3 %vm379_vm0, %v4111_v31  ;;  %v2295_v35 = vmin.f32 %v5017_v4, %v2294_v54  ;;  %v1204_v24 = vmin.f32 %v4867_v53, %v1203_v39  ;;  %v2603_v12 = vperm.slane %v2482_v15, 4  ;;  %v2604_v17 = vperm.slane %v2482_v15, 5 }
 0x191   : > { %v2606_v19 = vperm.slane %v2482_v15, 7  ;;  %v1116_v33 = vmin.f32 %v751_v3, %v4985_v20 }
 0x192   : > { %v5029_v42 = vpop.f32.mrf.mxu2  ;;  %v5031_v61 = vpop.f32.mrf.mxu3  ;;  %v1205_v8 = vmin.f32 %v4882_v63, %v1204_v24  ;;  %v4113_v63 = vld [vmem:[%s4194_s20 + $0x128] sm:$0xff]  ;;  %v4116_v24 = vld [vmem:[%s4194_s20 + $0x140] sm:$0xff] }
 0x193   : > { %v1573_v18 = vmin.f32 %v5029_v42, %v5009_v9  ;;  %v1934_v26 = vmin.f32 %v5031_v61, %v5012_v60  ;;  %v5045_v46 = vpop.f32.mrf.mxu0  ;;  %v5053_v1 = vpop.f32.mrf.mxu1 }
 0x194   : > { %v5051_v25 = vmin.f32 %v5045_v46, %v2295_v35  ;;  %v1206_v38 = vmin.f32 %v4897_v57, %v1205_v8  ;;  %v2392_v62 = vpop.xlane.xlu2 %2391 }
 0x196   : > { %v2983_v55 = vld [vmem:[#allocation1] sm:$0xff]  ;;  %3917 = vmatmul.msk.f32.gmra.mxu1 %vm379_vm0, %v4112_v52  ;;  %4061 = vmatmul.msk.f32.gmra.mxu0 %vm379_vm0, %v4112_v52  ;;  %v1207_v57 = vmin.f32 %v4912_v6, %v1206_v38 }
 0x197   : > { %2984 = vst [vmem:[#allocation1] ss:$9 sm:$0xff] %v2591_v36  ;;  %3965 = vmatmul.msk.f32.gmra.mxu2 %vm379_vm0, %v4112_v52 }
 0x198   : > { %2985 = vst [vmem:[#allocation1 + $0x1] ss:$9 sm:$0xff] %v2592_v10  ;;  %4013 = vmatmul.msk.f32.gmra.mxu3 %vm379_vm0, %v4112_v52  ;;  %v1208_v29 = vmin.f32 %v4927_v30, %v1207_v57 }
 0x199   : > { %2986 = vst [vmem:[#allocation1 + $0x2] ss:$9 sm:$0xff] %v2593_v13  ;;  %v4115_v13 = vld [vmem:[%s4194_s20 + $0x138] sm:$0xff] }
 0x19a   : > { %2987 = vst [vmem:[#allocation1 + $0x3] ss:$9 sm:$0xff] %v2594_v43  ;;  %3402 = vperm.xlu1 %4108, %v2983_v55   ;;  %v5057_v53 = vpop.f32.mrf.mxu2  ;;  %v5059_v27 = vpop.f32.mrf.mxu3  ;;  %v1209_v56 = vmin.f32 %v4942_v16, %v1208_v29 }
 0x19b   : > { %2988 = vst [vmem:[#allocation1 + $0x4] ss:$9 sm:$0xff] %v2595_v11  ;;  %v5062_v28 = vmin.f32 %v5057_v53, %v1573_v18  ;;  %v5065_v47 = vmin.f32 %v5059_v27, %v1934_v26  ;;  %v5075_v9 = vpop.f32.mrf.mxu1  ;;  %v5078_v6 = vpop.f32.mrf.mxu0  ;;  %v2483_v18 = vmax.f32 %v2392_v62, 0.0 }
 0x19c   : > { %2989 = vst [vmem:[#allocation1 + $0x5] ss:$9 sm:$0xff] %v2596_v5  ;;  %v1210_v60 = vmin.f32 %v4963_v58, %v1209_v56  ;;  %v2297_v16 = vmin.f32 %v5078_v6, %v5051_v25  ;;  %v2605_v58 = vperm.slane %v2482_v15, 6  ;;  %v1117_v15 = vmin.f32 %v752_v59, %v5024_v22 }
 0x19d   : > { %2990 = vst [vmem:[#allocation1 + $0x6] ss:$9 sm:$0xff] %v2597_v51  ;;  %v2607_v55 = vperm.slane %v2483_v18, 0  ;;  %v2608_v43 = vperm.slane %v2483_v18, 1  ;;  %v2609_v52 = vperm.slane %v2483_v18, 2  ;;  %v2610_v35 = vperm.slane %v2483_v18, 3 }
 0x19e   : > { %2991 = vst [vmem:[#allocation1 + $0x7] ss:$9 sm:$0xff] %v2598_v7  ;;  %3918 = vmatmul.msk.f32.gmra.mxu1 %vm379_vm0, %v4113_v63  ;;  %4062 = vmatmul.msk.f32.gmra.mxu0 %vm379_vm0, %v4113_v63  ;;  %v1211_v30 = vmin.f32 %v4985_v20, %v1210_v60  ;;  %v1477_v20 = vmin.f32 %v1116_v33, %v5003_v2  ;;  %v2611_v5 = vperm.slane %v2483_v18, 4  ;;  %v2612_v2 = vperm.slane %v2483_v18, 5 }
 0x19f   : > { %3966 = vmatmul.msk.f32.gmra.mxu2 %vm379_vm0, %v4113_v63  ;;  %v2613_v51 = vperm.slane %v2483_v18, 6  ;;  %v2614_v8 = vperm.slane %v2483_v18, 7  ;;  %v1478_v57 = vmin.f32 %v1117_v15, %v5029_v42  ;;  %v754_v42 = vmin.f32 %v4613_v40, 1e+30  ;;  %v4119_v18 = vld [vmem:[%s4194_s20 + $0x158] sm:$0xff] }
 0x1a0   : > { %4014 = vmatmul.msk.f32.gmra.mxu3 %vm379_vm0, %v4113_v63  ;;  %v1212_v31 = vmin.f32 %v5024_v22, %v1211_v30  ;;  %v1838_v39 = vmin.f32 %v1477_v20, %v5005_v44  ;;  %v2394_v44 = vpop.xlane.xlu2 %2393 }
 0x1a2   : > { %v1213_v41 = vmin.f32 %v5053_v1, %v1212_v31  ;;  %v5092_v37 = vpop.f32.mrf.mxu2  ;;  %v5094_v36 = vpop.f32.mrf.mxu3  ;;  %v2199_v7 = vmin.f32 %v1838_v39, %v4982_v23 }
 0x1a3   : > { %v1575_v10 = vmin.f32 %v5092_v37, %v5062_v28  ;;  %v1936_v0 = vmin.f32 %v5094_v36, %v5065_v47  ;;  %v5101_v48 = vpop.f32.mrf.mxu1  ;;  %v2484_v28 = vmax.f32 %v2394_v44, 0.0 }
 0x1a4   : > { %v1214_v26 = vmin.f32 %v5075_v9, %v1213_v41 }
 0x1a5   : > { %v2992_v49 = vld [vmem:[#allocation1] sm:$0xff]  ;;  %v2615_v32 = vperm.slane %v2484_v28, 0  ;;  %v2616_v22 = vperm.slane %v2484_v28, 1  ;;  %v2617_v56 = vperm.slane %v2484_v28, 2  ;;  %v2618_v60 = vperm.slane %v2484_v28, 3 }
 0x1a6   : > { %2993 = vst [vmem:[#allocation1] ss:$9 sm:$0xff] %v2599_v50  ;;  %3405 = vperm.xlu2 %4109, %v2992_v49   ;;  %3919 = vmatmul.msk.f32.gmra.mxu1 %vm379_vm0, %v4114_v34  ;;  %v1215_v54 = vmin.f32 %v5101_v48, %v1214_v26  ;;  %v4117_v50 = vld [vmem:[%s4194_s20 + $0x148] sm:$0xff]  ;;  %v2619_v49 = vperm.slane %v2484_v28, 4  ;;  %v2622_v40 = vperm.slane %v2484_v28, 7 }
 0x1a7   : > { %2994 = vst [vmem:[#allocation1 + $0x1] ss:$9 sm:$0xff] %v2600_v21  ;;  %3967 = vmatmul.msk.f32.gmra.mxu2 %vm379_vm0, %v4114_v34  ;;  %4063 = vmatmul.msk.f32.gmra.mxu0 %vm379_vm0, %v4114_v34  ;;  %v1839_v21 = vmin.f32 %v1478_v57, %v5031_v61 }
 0x1a8   : > { %2995 = vst [vmem:[#allocation1 + $0x2] ss:$9 sm:$0xff] %v2601_v45  ;;  %4015 = vmatmul.msk.f32.gmra.mxu3 %vm379_vm0, %v4114_v34  ;;  %v2620_v34 = vperm.slane %v2484_v28, 5 }
 0x1a9   : > { %2996 = vst [vmem:[#allocation1 + $0x3] ss:$9 sm:$0xff] %v2602_v14  ;;  %v2200_v14 = vmin.f32 %v1839_v21, %v5017_v4  ;;  %v2396_v4 = vpop.xlane.xlu0 %2395 }
 0x1aa   : > { %2997 = vst [vmem:[#allocation1 + $0x4] ss:$9 sm:$0xff] %v2603_v12  ;;  %v5118_v38 = vpop.f32.mrf.mxu2  ;;  %v1119_v12 = vmin.f32 %v754_v42, %v5075_v9  ;;  %v5141_v30 = vpop.f32.mrf.mxu3 }
 0x1ab   : > { %2998 = vst [vmem:[#allocation1 + $0x5] ss:$9 sm:$0xff] %v2604_v17  ;;  %v5122_v23 = vmin.f32 %v5118_v38, %v1575_v10  ;;  %v5124_v63 = vpop.f32.mrf.mxu1  ;;  %v2621_v17 = vperm.slane %v2484_v28, 6  ;;  %v5149_v9 = vpop.f32.mrf.mxu0 }
 0x1ac   : > { %2999 = vst [vmem:[#allocation1 + $0x6] ss:$9 sm:$0xff] %v2605_v58  ;;  %v5128_v29 = vmin.f32 %v5124_v63, %v1215_v54  ;;  %v4118_v58 = vld [vmem:[%s4194_s20 + $0x150] sm:$0xff]  ;;  %v1480_v61 = vmin.f32 %v1119_v12, %v5092_v37 }
 0x1ad   : > { %3000 = vst [vmem:[#allocation1 + $0x7] ss:$9 sm:$0xff] %v2606_v19  ;;  %v2485_v19 = vmax.f32 %v2396_v4, 0.0  ;;  %v2298_v4 = vmin.f32 %v5149_v9, %v2297_v16 }
 0x1ae   : > { %3920 = vmatmul.msk.f32.gmra.mxu1 %vm379_vm0, %v4115_v13  ;;  %v1841_v62 = vmin.f32 %v1480_v61, %v5094_v36 }
 0x1af   : > { %3968 = vmatmul.msk.f32.gmra.mxu2 %vm379_vm0, %v4115_v13  ;;  %4064 = vmatmul.msk.f32.gmra.mxu0 %vm379_vm0, %v4115_v13  ;;  %v2623_v26 = vperm.slane %v2485_v19, 0  ;;  %v2624_v54 = vperm.slane %v2485_v19, 1  ;;  %v2626_v39 = vperm.slane %v2485_v19, 3 }
 0x1b0   : > { %4016 = vmatmul.msk.f32.gmra.mxu3 %vm379_vm0, %v4115_v13  ;;  %v2202_v37 = vmin.f32 %v1841_v62, %v5078_v6  ;;  %v6061_v13 = vld [vmem:[#allocation19_spill] sm:$0xff] }
 0x1b1   : > { %v753_v20 = vmin.f32 %v6061_v13, 1e+30 }
 0x1b2   : > { %v5151_v31 = vpop.f32.mrf.mxu2  ;;  %v5163_v10 = vpop.f32.mrf.mxu3 }
 0x1b3   : > { %v1577_v3 = vmin.f32 %v5151_v31, %v5122_v23  ;;  %v5156_v41 = vpop.f32.mrf.mxu1 }
 0x1b4   : > { %v3001_v11 = vld [vmem:[#allocation1] sm:$0xff]  ;;  %v1217_v33 = vmin.f32 %v5156_v41, %v5128_v29 }
 0x1b5   : > { %3002 = vst [vmem:[#allocation1] ss:$9 sm:$0xff] %v2607_v55  ;;  %3408 = vperm.xlu2 %4109, %v3001_v11   ;;  %v2625_v55 = vperm.slane %v2485_v19, 2  ;;  %v2627_v11 = vperm.slane %v2485_v19, 4 }
 0x1b6   : > { %3003 = vst [vmem:[#allocation1 + $0x1] ss:$9 sm:$0xff] %v2608_v43  ;;  %3921 = vmatmul.msk.f32.gmra.mxu1 %vm379_vm0, %v4116_v24  ;;  %v1118_v43 = vmin.f32 %v753_v20, %v5053_v1  ;;  %v1937_v1 = vmin.f32 %v5141_v30, %v1936_v0 }
 0x1b7   : > { %3004 = vst [vmem:[#allocation1 + $0x2] ss:$9 sm:$0xff] %v2609_v52  ;;  %3969 = vmatmul.msk.f32.gmra.mxu2 %vm379_vm0, %v4116_v24  ;;  %4065 = vmatmul.msk.f32.gmra.mxu0 %vm379_vm0, %v4116_v24 }
 0x1b8   : > { %3005 = vst [vmem:[#allocation1 + $0x3] ss:$9 sm:$0xff] %v2610_v35  ;;  %4017 = vmatmul.msk.f32.gmra.mxu3 %vm379_vm0, %v4116_v24  ;;  %v5172_v35 = vpop.f32.mrf.mxu0  ;;  %v2629_v24 = vperm.slane %v2485_v19, 6 }
 0x1b9   : > { %3006 = vst [vmem:[#allocation1 + $0x4] ss:$9 sm:$0xff] %v2611_v5  ;;  %2419 = vmin.xlane.f32.xlu0 %v2199_v7  ;;  %v1479_v5 = vmin.f32 %v1118_v43, %v5057_v53  ;;  %v4120_v7 = vld [vmem:[%s4194_s20 + $0x160] sm:$0xff]  ;;  %v1938_v53 = vmin.f32 %v5163_v10, %v1937_v1  ;;  %v2299_v62 = vmin.f32 %v5172_v35, %v2298_v4 }
 0x1ba   : > { %3007 = vst [vmem:[#allocation1 + $0x5] ss:$9 sm:$0xff] %v2612_v2  ;;  %v2628_v2 = vperm.slane %v2485_v19, 5  ;;  %v5186_v47 = vpop.f32.mrf.mxu2  ;;  %v5188_v36 = vpop.f32.mrf.mxu3 }
 0x1bb   : > { %3008 = vst [vmem:[#allocation1 + $0x6] ss:$9 sm:$0xff] %v2613_v51  ;;  %v2630_v51 = vperm.slane %v2485_v19, 7  ;;  %v1840_v44 = vmin.f32 %v1479_v5, %v5059_v27  ;;  %v5191_v59 = vmin.f32 %v5186_v47, %v1577_v3  ;;  %v5194_v15 = vmin.f32 %v5188_v36, %v1938_v53  ;;  %v5196_v28 = vpop.f32.mrf.mxu1 }
 0x1bc   : > { %3009 = vst [vmem:[#allocation1 + $0x7] ss:$9 sm:$0xff] %v2614_v8  ;;  %v2398_v8 = vpop.xlane.xlu1 %2397  ;;  %v5199_v27 = vmin.f32 %v5196_v28, %v1217_v33  ;;  %v2402_v5 = vpop.xlane.xlu0 %2401 }
 0x1bd   : > { %v2486_v0 = vmax.f32 %v2398_v8, 0.0  ;;  %v2201_v23 = vmin.f32 %v1840_v44, %v5045_v46 }
 0x1be   : > { %3922 = vmatmul.msk.f32.gmra.mxu1 %vm379_vm0, %v4117_v50 }
 0x1bf   : > { %3970 = vmatmul.msk.f32.gmra.mxu2 %vm379_vm0, %v4117_v50  ;;  %4066 = vmatmul.msk.f32.gmra.mxu0 %vm379_vm0, %v4117_v50  ;;  %v2631_v29 = vperm.slane %v2486_v0, 0  ;;  %v2634_v46 = vperm.slane %v2486_v0, 3  ;;  %v2635_v21 = vperm.slane %v2486_v0, 4  ;;  %v2636_v42 = vperm.slane %v2486_v0, 5 }
 0x1c0   : > { %4018 = vmatmul.msk.f32.gmra.mxu3 %vm379_vm0, %v4117_v50  ;;  %v5202_v57 = vpop.f32.mrf.mxu0  ;;  %v4121_v50 = vld [vmem:[%s4194_s20 + $0x168] sm:$0xff] }
 0x1c1   : > { %2425 = vmin.xlane.f32.xlu0 %v2202_v37 }
 0x1c3   : > { %v5137_v45 = vld [vmem:[#allocation1] sm:$0xff]  ;;  %v5231_v19 = vpop.f32.mrf.mxu1 }
 0x1c4   : > { %3011 = vst [vmem:[#allocation1] ss:$9 sm:$0xff] %v2615_v32  ;;  %2421 = vmin.xlane.f32.xlu1 %v2200_v14  ;;  %v2632_v32 = vperm.slane %v2486_v0, 1  ;;  %v4122_v14 = vld [vmem:[%s4194_s20 + $0x170] sm:$0xff]  ;;  %v1219_v3 = vmin.f32 %v5231_v19, %v5199_v27 }
 0x1c5   : > { %3012 = vst [vmem:[#allocation1 + $0x1] ss:$9 sm:$0xff] %v2616_v22  ;;  %v2633_v22 = vperm.slane %v2486_v0, 2 }
 0x1c6   : > { %3013 = vst [vmem:[#allocation1 + $0x2] ss:$9 sm:$0xff] %v2617_v56  ;;  %3923 = vmatmul.msk.f32.gmra.mxu1 %vm379_vm0, %v4118_v58 }
 0x1c7   : > { %3014 = vst [vmem:[#allocation1 + $0x3] ss:$9 sm:$0xff] %v2618_v60  ;;  %3971 = vmatmul.msk.f32.gmra.mxu2 %vm379_vm0, %v4118_v58  ;;  %4067 = vmatmul.msk.f32.gmra.mxu0 %vm379_vm0, %v4118_v58  ;;  %v2637_v60 = vperm.slane %v2486_v0, 6 }
 0x1c8   : > { %3015 = vst [vmem:[#allocation1 + $0x4] ss:$9 sm:$0xff] %v2619_v49  ;;  %4019 = vmatmul.msk.f32.gmra.mxu3 %vm379_vm0, %v4118_v58  ;;  %v2638_v49 = vperm.slane %v2486_v0, 7  ;;  %v5214_v12 = vpop.f32.mrf.mxu0 }
 0x1c9   : > { %3016 = vst [vmem:[#allocation1 + $0x5] ss:$9 sm:$0xff] %v2620_v34  ;;  %v5217_v34 = vpop.f32.mrf.mxu2 }
 0x1ca   : > { %3017 = vst [vmem:[#allocation1 + $0x6] ss:$9 sm:$0xff] %v2621_v17  ;;  %v5219_v17 = vpop.f32.mrf.mxu3 }
 0x1cb   : > { %3018 = vst [vmem:[#allocation1 + $0x7] ss:$9 sm:$0xff] %v2622_v40  ;;  %v1579_v40 = vmin.f32 %v5217_v34, %v5191_v59  ;;  %v1940_v61 = vmin.f32 %v5219_v17, %v5194_v15  ;;  %v5259_v8 = vpop.f32.mrf.mxu1 }
 0x1cc   : > { %v5264_v44 = vmin.f32 %v5259_v8, %v1219_v3 }
 0x1ce   : > { %3924 = vmatmul.msk.f32.gmra.mxu1 %vm379_vm0, %v4119_v18 }
 0x1cf   : > { %3972 = vmatmul.msk.f32.gmra.mxu2 %vm379_vm0, %v4119_v18  ;;  %4068 = vmatmul.msk.f32.gmra.mxu0 %vm379_vm0, %v4119_v18 }
 0x1d0   : > { %4020 = vmatmul.msk.f32.gmra.mxu3 %vm379_vm0, %v4119_v18  ;;  %v2300_v18 = vmin.f32 %v5202_v57, %v2299_v62 }
 0x1d2   : > { %v5170_v52 = vld [vmem:[#allocation1] sm:$0xff]  ;;  %v2301_v16 = vmin.f32 %v5214_v12, %v2300_v18 }
 0x1d3   : > { %3020 = vst [vmem:[#allocation1] ss:$9 sm:$0xff] %v2623_v26  ;;  %v4123_v26 = vld [vmem:[%s4194_s20 + $0x178] sm:$0xff]  ;;  %v990_v3 = vpop.f32.mrf.mxu1 }
 0x1d4   : > { %3021 = vst [vmem:[#allocation1 + $0x1] ss:$9 sm:$0xff] %v2624_v54  ;;  %v5243_v54 = vpop.f32.mrf.mxu0 }
 0x1d5   : > { %3022 = vst [vmem:[#allocation1 + $0x2] ss:$9 sm:$0xff] %v2625_v55  ;;  %v5246_v43 = vmin.f32 %v5243_v54, %v2301_v16 }
 0x1d6   : > { %3023 = vst [vmem:[#allocation1 + $0x3] ss:$9 sm:$0xff] %v2626_v39  ;;  %3925 = vmatmul.msk.f32.gmra.mxu1 %vm379_vm0, %v4120_v7 }
 0x1d7   : > { %3024 = vst [vmem:[#allocation1 + $0x4] ss:$9 sm:$0xff] %v2627_v11  ;;  %3973 = vmatmul.msk.f32.gmra.mxu2 %vm379_vm0, %v4120_v7  ;;  %4069 = vmatmul.msk.f32.gmra.mxu0 %vm379_vm0, %v4120_v7 }
 0x1d8   : > { %3025 = vst [vmem:[#allocation1 + $0x5] ss:$9 sm:$0xff] %v2628_v2  ;;  %4021 = vmatmul.msk.f32.gmra.mxu3 %vm379_vm0, %v4120_v7  ;;  %v5249_v2 = vpop.f32.mrf.mxu2 }
 0x1d9   : > { %3026 = vst [vmem:[#allocation1 + $0x6] ss:$9 sm:$0xff] %v2629_v24  ;;  %v5251_v24 = vpop.f32.mrf.mxu3  ;;  %v5254_v1 = vmin.f32 %v5249_v2, %v1579_v40 }
 0x1da   : > { %3027 = vst [vmem:[#allocation1 + $0x7] ss:$9 sm:$0xff] %v2630_v51  ;;  %v2488_v51 = vmax.f32 %v2402_v5, 0.0  ;;  %v5257_v7 = vmin.f32 %v5251_v24, %v1940_v61  ;;  %v6065_v5 = vld [vmem:[#allocation27_spill] sm:$0xff] }
 0x1dc   : > { %v5261_v53 = vpop.f32.mrf.mxu0  ;;  %v2647_v0 = vperm.slane %v2488_v51, 0  ;;  %v2648_v59 = vperm.slane %v2488_v51, 1  ;;  %v2649_v15 = vperm.slane %v2488_v51, 2 }
 0x1dd   : > { %3411 = vperm.xlu1 %4108, %v5137_v45   ;;  %v2400_v45 = vpop.xlane.xlu2 %2399 }
 0x1de   : > { %2423 = vmin.xlane.f32.xlu2 %v2201_v23  ;;  %3926 = vmatmul.msk.f32.gmra.mxu1 %vm379_vm0, %v4121_v50  ;;  %v2487_v58 = vmax.f32 %v2400_v45, 0.0  ;;  %v2650_v23 = vperm.slane %v2488_v51, 3 }
 0x1df   : > { %3974 = vmatmul.msk.f32.gmra.mxu2 %vm379_vm0, %v4121_v50  ;;  %4070 = vmatmul.msk.f32.gmra.mxu0 %vm379_vm0, %v4121_v50 }
 0x1e0   : > { %4022 = vmatmul.msk.f32.gmra.mxu3 %vm379_vm0, %v4121_v50  ;;  %v2639_v33 = vperm.slane %v2487_v58, 0  ;;  %v2640_v37 = vperm.slane %v2487_v58, 1  ;;  %v2641_v13 = vperm.slane %v2487_v58, 2  ;;  %v2642_v6 = vperm.slane %v2487_v58, 3  ;;  %v5272_v45 = vpop.f32.mrf.mxu2 }
 0x1e1   : > { %v5210_v56 = vld [vmem:[#allocation1] sm:$0xff]  ;;  %v2643_v20 = vperm.slane %v2487_v58, 4  ;;  %v2644_v55 = vperm.slane %v2487_v58, 5  ;;  %v2645_v39 = vperm.slane %v2487_v58, 6  ;;  %v2646_v11 = vperm.slane %v2487_v58, 7 }
 0x1e2   : > { %3029 = vst [vmem:[#allocation1] ss:$9 sm:$0xff] %v2631_v29  ;;  %v2651_v29 = vperm.slane %v2488_v51, 4  ;;  %v2652_v50 = vperm.slane %v2488_v51, 5  ;;  %v1581_v61 = vmin.f32 %v5272_v45, %v5254_v1 }
 0x1e3   : > { %3030 = vst [vmem:[#allocation1 + $0x1] ss:$9 sm:$0xff] %v2632_v32  ;;  %v2653_v32 = vperm.slane %v2488_v51, 6 }
 0x1e4   : > { %3031 = vst [vmem:[#allocation1 + $0x2] ss:$9 sm:$0xff] %v2633_v22  ;;  %v2654_v22 = vperm.slane %v2488_v51, 7  ;;  %v756_v51 = vmin.f32 %v6065_v5, 1e+30 }
 0x1e5   : > { %3032 = vst [vmem:[#allocation1 + $0x3] ss:$9 sm:$0xff] %v2634_v46  ;;  %v2404_v46 = vpop.xlane.xlu1 %2403 }
 0x1e6   : > { %3033 = vst [vmem:[#allocation1 + $0x4] ss:$9 sm:$0xff] %v2635_v21  ;;  %3927 = vmatmul.msk.f32.gmra.mxu1 %vm379_vm0, %v4122_v14  ;;  %v6062_v21 = vld [vmem:[#allocation24_spill] sm:$0xff]  ;;  %v2489_v40 = vmax.f32 %v2404_v46, 0.0 }
 0x1e7   : > { %3034 = vst [vmem:[#allocation1 + $0x5] ss:$9 sm:$0xff] %v2636_v42  ;;  %3975 = vmatmul.msk.f32.gmra.mxu2 %vm379_vm0, %v4122_v14  ;;  %4071 = vmatmul.msk.f32.gmra.mxu0 %vm379_vm0, %v4122_v14  ;;  %v755_v42 = vmin.f32 %v6062_v21, 1e+30 }
 0x1e8   : > { %3035 = vst [vmem:[#allocation1 + $0x6] ss:$9 sm:$0xff] %v2637_v60  ;;  %4023 = vmatmul.msk.f32.gmra.mxu3 %vm379_vm0, %v4122_v14  ;;  %v6063_v60 = vld [vmem:[#allocation11_spill] sm:$0xff]  ;;  %v5274_v14 = vpop.f32.mrf.mxu3  ;;  %v2655_v18 = vperm.slane %v2489_v40, 0  ;;  %v2659_v16 = vperm.slane %v2489_v40, 4  ;;  %v2661_v1 = vperm.slane %v2489_v40, 6 }
 0x1e9   : > { %3036 = vst [vmem:[#allocation1 + $0x7] ss:$9 sm:$0xff] %v2638_v49  ;;  %v761_v49 = vmin.f32 %v6063_v60, 1e+30  ;;  %v1120_v58 = vmin.f32 %v755_v42, %v5101_v48  ;;  %v1942_v4 = vmin.f32 %v5274_v14, %v5257_v7  ;;  %v1121_v7 = vmin.f32 %v756_v51, %v5124_v63 }
 0x1eb   : > { %v1481_v62 = vmin.f32 %v1120_v58, %v5118_v38  ;;  %v2660_v38 = vperm.slane %v2489_v40, 5 }
 0x1ee   : > { %3928 = vmatmul.msk.f32.gmra.mxu1 %vm379_vm0, %v4123_v26 }
 0x1ef   : > { %3976 = vmatmul.msk.f32.gmra.mxu2 %vm379_vm0, %v4123_v26  ;;  %4072 = vmatmul.msk.f32.gmra.mxu0 %vm379_vm0, %v4123_v26 }
 0x1f0   : > { %v3037_v25 = vld [vmem:[#allocation1] sm:$0xff]  ;;  %4024 = vmatmul.msk.f32.gmra.mxu3 %vm379_vm0, %v4123_v26  ;;  %v2656_v26 = vperm.slane %v2489_v40, 1  ;;  %vm3603_vm0 = vcmask 1048512  }
 0x1f1   : > { %3038 = vst [vmem:[#allocation1] ss:$9 sm:$0xff] %v2639_v33  ;;  %3420 = vperm.xlu0 %4107, %v3037_v25   ;;  %v1221_v33 = vmin.f32 %v990_v3, %v5264_v44  ;;  %v1842_v25 = vmin.f32 %v1481_v62, %v5141_v30  ;;  %v2662_v30 = vperm.slane %v2489_v40, 7 }
 0x1f2   : > { %3039 = vst [vmem:[#allocation1 + $0x1] ss:$9 sm:$0xff] %v2640_v37  ;;  %v1126_v37 = vmin.f32 %v761_v49, %v990_v3 }
 0x1f3   : > { %3040 = vst [vmem:[#allocation1 + $0x2] ss:$9 sm:$0xff] %v2641_v13  ;;  %v2657_v13 = vperm.slane %v2489_v40, 2 }
 0x1f4   : > { %3041 = vst [vmem:[#allocation1 + $0x3] ss:$9 sm:$0xff] %v2642_v6  ;;  %v2658_v6 = vperm.slane %v2489_v40, 3 }
 0x1f5   : > { %3042 = vst [vmem:[#allocation1 + $0x4] ss:$9 sm:$0xff] %v2643_v20  ;;  %v5286_v20 = vpop.f32.mrf.mxu0 }
 0x1f6   : > { %3043 = vst [vmem:[#allocation1 + $0x5] ss:$9 sm:$0xff] %v2644_v55  ;;  %3414 = vperm.xlu2 %4109, %v5170_v52   ;;  %v2303_v52 = vmin.f32 %v5261_v53, %v5246_v43  ;;  %v2203_v55 = vmin.f32 %v1842_v25, %v5149_v9  ;;  %v6064_v43 = vld [vmem:[#allocation3_spill] sm:$0xff]  ;;  %v2406_v9 = vpop.xlane.xlu2 %2405 }
 0x1f7   : > { %3044 = vst [vmem:[#allocation1 + $0x6] ss:$9 sm:$0xff] %v2645_v39  ;;  %v757_v39 = vmin.f32 %v6064_v43, 1e+30 }
 0x1f8   : > { %3045 = vst [vmem:[#allocation1 + $0x7] ss:$9 sm:$0xff] %v2646_v11  ;;  %v5291_v11 = vmin.f32 %v5286_v20, %v2303_v52 }
 0x1f9   : > { %v1122_v44 = vmin.f32 %v757_v39, %v5156_v41  ;;  %v993_v41 = vpop.f32.mrf.mxu1 }
 0x1fa   : > { %v5305_v21 = vmin.f32 %v993_v41, %v1221_v33 }
 0x1fb   : > { %v1483_v52 = vmin.f32 %v1122_v44, %v5186_v47 }
 0x1ff   : > { %v5268_v27 = vld [vmem:[#allocation1] sm:$0xff] }
 0x200   : > { %3047 = vst [vmem:[#allocation1] ss:$9 sm:$0xff] %v2647_v0  ;;  %v6066_v0 = vld [vmem:[#allocation13_spill] sm:$0xff] }
 0x201   : > { %3048 = vst [vmem:[#allocation1 + $0x1] ss:$9 sm:$0xff] %v2648_v59  ;;  %v762_v59 = vmin.f32 %v6066_v0, 1e+30  ;;  %v996_v39 = vpop.f32.mrf.mxu1 }
 0x202   : > { %3049 = vst [vmem:[#allocation1 + $0x2] ss:$9 sm:$0xff] %v2649_v15  ;;  %v1482_v15 = vmin.f32 %v1121_v7, %v5151_v31  ;;  %v1844_v31 = vmin.f32 %v1483_v52, %v5188_v36  ;;  %v1223_v5 = vmin.f32 %v996_v39, %v5305_v21 }
 0x203   : > { %3050 = vst [vmem:[#allocation1 + $0x3] ss:$9 sm:$0xff] %v2650_v23  ;;  %v1351_v23 = vpop.f32.mrf.mxu2  ;;  %v1127_v42 = vmin.f32 %v762_v59, %v993_v41 }
 0x204   : > { %3051 = vst [vmem:[#allocation1 + $0x4] ss:$9 sm:$0xff] %v2651_v29  ;;  %v1712_v29 = vpop.f32.mrf.mxu3  ;;  %v1843_v47 = vmin.f32 %v1482_v15, %v5163_v10 }
 0x205   : > { %3052 = vst [vmem:[#allocation1 + $0x5] ss:$9 sm:$0xff] %v2652_v50  ;;  %v2490_v50 = vmax.f32 %v2406_v9, 0.0  ;;  %v5301_v63 = vmin.f32 %v1712_v29, %v1942_v4 }
 0x206   : > { %3053 = vst [vmem:[#allocation1 + $0x6] ss:$9 sm:$0xff] %v2653_v32  ;;  %v5299_v32 = vmin.f32 %v1351_v23, %v1581_v61  ;;  %v2205_v61 = vmin.f32 %v1844_v31, %v5202_v57  ;;  %v2204_v4 = vmin.f32 %v1843_v47, %v5172_v35  ;;  %v6067_v57 = vld [vmem:[#allocation15_spill] sm:$0xff] }
 0x207   : > { %3054 = vst [vmem:[#allocation1 + $0x7] ss:$9 sm:$0xff] %v2654_v22  ;;  %2427 = vmin.xlane.f32.xlu1 %v2203_v55  ;;  %v1487_v22 = vmin.f32 %v1126_v37, %v1351_v23  ;;  %v2663_v60 = vperm.slane %v2490_v50, 0  ;;  %v2664_v49 = vperm.slane %v2490_v50, 1  ;;  %v2665_v58 = vperm.slane %v2490_v50, 2  ;;  %v5311_v37 = vpop.f32.mrf.mxu0 }
 0x208   : > { %v2666_v3 = vperm.slane %v2490_v50, 3  ;;  %v2667_v62 = vperm.slane %v2490_v50, 4  ;;  %v2668_v33 = vperm.slane %v2490_v50, 5  ;;  %v2305_v36 = vmin.f32 %v5311_v37, %v5291_v11 }
 0x209   : > { %v5303_v46 = vmin.f32 %v1487_v22, %v1712_v29  ;;  %v2669_v10 = vperm.slane %v2490_v50, 6  ;;  %v763_v35 = vmin.f32 %v6067_v57, 1e+30  ;;  %v2410_v29 = vpop.xlane.xlu1 %2409  ;;  %v999_v31 = vpop.f32.mrf.mxu1 }
 0x20a   : > { %v2412_v57 = vpop.xlane.xlu2 %2411 }
 0x20b   : > { %v1128_v51 = vmin.f32 %v763_v35, %v996_v39  ;;  %v6069_v35 = vld [vmem:[#allocation20_spill] sm:$0xff] }
 0x20c   : > { %v1715_v25 = vpop.f32.mrf.mxu3 }
 0x20d   : > { %v1944_v43 = vmin.f32 %v1715_v25, %v5301_v63  ;;  %v2492_v63 = vmax.f32 %v2410_v29, 0.0 }
 0x20e   : > { %v5284_v48 = vld [vmem:[#allocation1] sm:$0xff] }
 0x20f   : > { %3056 = vst [vmem:[#allocation1] ss:$9 sm:$0xff] %v2655_v18  ;;  %v2670_v18 = vperm.slane %v2490_v50, 7  ;;  %v6068_v50 = vld [vmem:[#allocation17_spill] sm:$0xff] }
 0x210   : > { %3057 = vst [vmem:[#allocation1 + $0x1] ss:$9 sm:$0xff] %v2656_v26  ;;  %v2408_v26 = vpop.xlane.xlu0 %2407 }
 0x211   : > { %3058 = vst [vmem:[#allocation1 + $0x2] ss:$9 sm:$0xff] %v2657_v13  ;;  %v1354_v13 = vpop.f32.mrf.mxu2 }
 0x212   : > { %3059 = vst [vmem:[#allocation1 + $0x3] ss:$9 sm:$0xff] %v2658_v6  ;;  %v2491_v6 = vmax.f32 %v2408_v26, 0.0  ;;  %v1488_v55 = vmin.f32 %v1127_v42, %v1354_v13  ;;  %v2685_v26 = vperm.slane %v2492_v63, 6 }
 0x213   : > { %3060 = vst [vmem:[#allocation1 + $0x4] ss:$9 sm:$0xff] %v2659_v16  ;;  %v1583_v16 = vmin.f32 %v1354_v13, %v5299_v32  ;;  %v764_v32 = vmin.f32 %v6068_v50, 1e+30  ;;  %v765_v13 = vmin.f32 %v6069_v35, 1e+30 }
 0x214   : > { %3061 = vst [vmem:[#allocation1 + $0x5] ss:$9 sm:$0xff] %v2660_v38  ;;  %v5318_v38 = vpop.f32.mrf.mxu0  ;;  %v5320_v11 = vmin.f32 %v1488_v55, %v1715_v25  ;;  %v2672_v7 = vperm.slane %v2491_v6, 1  ;;  %v2673_v44 = vperm.slane %v2491_v6, 2  ;;  %v2674_v0 = vperm.slane %v2491_v6, 3 }
 0x215   : > { %3062 = vst [vmem:[#allocation1 + $0x6] ss:$9 sm:$0xff] %v2661_v1  ;;  %v5324_v1 = vmin.f32 %v5318_v38, %v2305_v36  ;;  %v2675_v59 = vperm.slane %v2491_v6, 4  ;;  %v2676_v15 = vperm.slane %v2491_v6, 5  ;;  %v2677_v52 = vperm.slane %v2491_v6, 6 }
 0x216   : > { %3063 = vst [vmem:[#allocation1 + $0x7] ss:$9 sm:$0xff] %v2662_v30  ;;  %v2671_v30 = vperm.slane %v2491_v6, 0  ;;  %v2678_v23 = vperm.slane %v2491_v6, 7  ;;  %v2684_v36 = vperm.slane %v2492_v63, 5 }
 0x219   : > { %v1357_v22 = vpop.f32.mrf.mxu2 }
 0x21a   : > { %v5330_v41 = vmin.f32 %v1357_v22, %v1583_v16  ;;  %v1489_v21 = vmin.f32 %v1128_v51, %v1357_v22  ;;  %v2493_v16 = vmax.f32 %v2412_v57, 0.0  ;;  %v6070_v51 = vld [vmem:[#allocation5_spill] sm:$0xff] }
 0x21b   : > { %2431 = vmin.xlane.f32.xlu0 %v2205_v61  ;;  %v2681_v61 = vperm.slane %v2492_v63, 2 }
 0x21c   : > { %v2689_v29 = vperm.slane %v2493_v16, 2  ;;  %v2691_v22 = vperm.slane %v2493_v16, 4 }
 0x21d   : > { %v3064_v40 = vld [vmem:[#allocation1] sm:$0xff] }
 0x21e   : > { %3065 = vst [vmem:[#allocation1] ss:$9 sm:$0xff] %v2663_v60  ;;  %v5336_v60 = vmin.f32 %v999_v31, %v1223_v5  ;;  %v1002_v5 = vpop.f32.mrf.mxu1 }
 0x21f   : > { %3066 = vst [vmem:[#allocation1 + $0x1] ss:$9 sm:$0xff] %v2664_v49  ;;  %2429 = vmin.xlane.f32.xlu2 %v2204_v4  ;;  %v1129_v49 = vmin.f32 %v764_v32, %v999_v31  ;;  %v2690_v32 = vperm.slane %v2493_v16, 3  ;;  %v6071_v31 = vld [vmem:[#allocation9_spill] sm:$0xff] }
 0x220   : > { %3067 = vst [vmem:[#allocation1 + $0x2] ss:$9 sm:$0xff] %v2665_v58  ;;  %3417 = vperm.xlu1 %4108, %v5210_v56   ;;  %v1718_v56 = vpop.f32.mrf.mxu3  ;;  %v2679_v58 = vperm.slane %v2492_v63, 0 }
 0x221   : > { %3068 = vst [vmem:[#allocation1 + $0x3] ss:$9 sm:$0xff] %v2666_v3  ;;  %v5332_v42 = vmin.f32 %v1718_v56, %v1944_v43  ;;  %v5334_v47 = vmin.f32 %v1489_v21, %v1718_v56  ;;  %v2680_v3 = vperm.slane %v2492_v63, 1  ;;  %v1360_v25 = vpop.f32.mrf.mxu2 }
 0x222   : > { %3069 = vst [vmem:[#allocation1 + $0x4] ss:$9 sm:$0xff] %v2667_v62  ;;  %v2683_v62 = vperm.slane %v2492_v63, 4  ;;  %v1585_v55 = vmin.f32 %v1360_v25, %v5330_v41  ;;  %v1490_v43 = vmin.f32 %v1129_v49, %v1360_v25  ;;  %v2414_v49 = vpop.xlane.xlu0 %2413 }
 0x223   : > { %3070 = vst [vmem:[#allocation1 + $0x5] ss:$9 sm:$0xff] %v2668_v33  ;;  %v5341_v33 = vpop.f32.mrf.mxu0 }
 0x224   : > { %3071 = vst [vmem:[#allocation1 + $0x6] ss:$9 sm:$0xff] %v2669_v10  ;;  %v2307_v10 = vmin.f32 %v5341_v33, %v5324_v1  ;;  %v758_v1 = vmin.f32 %v6070_v51, 1e+30 }
 0x225   : > { %3072 = vst [vmem:[#allocation1 + $0x7] ss:$9 sm:$0xff] %v2670_v18  ;;  %v2209_v18 = vmin.f32 %v5303_v46, %v5286_v20 }
 0x228   : > { %v1721_v6 = vpop.f32.mrf.mxu3 }
 0x229   : > { %v1946_v39 = vmin.f32 %v1721_v6, %v5332_v42  ;;  %v2694_v42 = vperm.slane %v2493_v16, 7 }
 0x22b   : > { %v5360_v56 = vpop.f32.mrf.mxu0 }
 0x22c   : > { %v5327_v9 = vld [vmem:[#allocation1] sm:$0xff]  ;;  %v5363_v41 = vmin.f32 %v5360_v56, %v2307_v10 }
 0x22d   : > { %3074 = vst [vmem:[#allocation1] ss:$9 sm:$0xff] %v2671_v30  ;;  %v5351_v30 = vmin.f32 %v1490_v43, %v1721_v6  ;;  %v1005_v6 = vpop.f32.mrf.mxu1 }
 0x22e   : > { %3075 = vst [vmem:[#allocation1 + $0x1] ss:$9 sm:$0xff] %v2672_v7  ;;  %v1225_v7 = vmin.f32 %v1002_v5, %v5336_v60  ;;  %v760_v60 = vmin.f32 %v6071_v31, 1e+30 }
 0x22f   : > { %3076 = vst [vmem:[#allocation1 + $0x2] ss:$9 sm:$0xff] %v2673_v44  ;;  %3429 = vperm.xlu0 %4107, %v3064_v40   ;;  %v2682_v40 = vperm.slane %v2492_v63, 3  ;;  %v1130_v44 = vmin.f32 %v765_v13, %v1002_v5 }
 0x230   : > { %3077 = vst [vmem:[#allocation1 + $0x3] ss:$9 sm:$0xff] %v2674_v0  ;;  %v5383_v43 = vmin.f32 %v1005_v6, %v1225_v7  ;;  %v5393_v7 = vpop.xlane.xlu2 %2417 }
 0x231   : > { %3078 = vst [vmem:[#allocation1 + $0x4] ss:$9 sm:$0xff] %v2675_v59  ;;  %v1123_v59 = vmin.f32 %v758_v1, %v5196_v28  ;;  %v2693_v28 = vperm.slane %v2493_v16, 6 }
 0x232   : > { %3079 = vst [vmem:[#allocation1 + $0x5] ss:$9 sm:$0xff] %v2676_v15  ;;  %v2687_v15 = vperm.slane %v2493_v16, 0 }
 0x233   : > { %3080 = vst [vmem:[#allocation1 + $0x6] ss:$9 sm:$0xff] %v2677_v52  ;;  %v2688_v52 = vperm.slane %v2493_v16, 1 }
 0x234   : > { %3081 = vst [vmem:[#allocation1 + $0x7] ss:$9 sm:$0xff] %v2678_v23  ;;  %v1484_v23 = vmin.f32 %v1123_v59, %v5217_v34 }
 0x236   : > { %v1845_v21 = vmin.f32 %v1484_v23, %v5219_v17  ;;  %v1363_v17 = vpop.f32.mrf.mxu2 }
 0x237   : > { %3423 = vperm.xlu2 %4109, %v5268_v27   ;;  %v2686_v27 = vperm.slane %v2492_v63, 7  ;;  %v2692_v63 = vperm.slane %v2493_v16, 5  ;;  %v1491_v57 = vmin.f32 %v1130_v44, %v1363_v17  ;;  %v5379_v16 = vpop.f32.mrf.mxu0 }
 0x238   : > { %v2206_v10 = vmin.f32 %v1845_v21, %v5214_v12  ;;  %v2309_v12 = vmin.f32 %v5379_v16, %v5363_v41 }
 0x23b   : > { %v5339_v4 = vld [vmem:[#allocation1] sm:$0xff] }
 0x23c   : > { %3083 = vst [vmem:[#allocation1] ss:$9 sm:$0xff] %v2679_v58  ;;  %v6072_v58 = vld [vmem:[#allocation7_spill] sm:$0xff] }
 0x23d   : > { %3084 = vst [vmem:[#allocation1 + $0x1] ss:$9 sm:$0xff] %v2680_v3  ;;  %v759_v3 = vmin.f32 %v6072_v58, 1e+30 }
 0x23e   : > { %3085 = vst [vmem:[#allocation1 + $0x2] ss:$9 sm:$0xff] %v2681_v61  ;;  %v6073_v61 = vld [vmem:[#allocation22_spill] sm:$0xff]  ;;  %v1366_v21 = vpop.f32.mrf.mxu2 }
 0x23f   : > { %3086 = vst [vmem:[#allocation1 + $0x3] ss:$9 sm:$0xff] %v2682_v40  ;;  %v766_v40 = vmin.f32 %v6073_v61, 1e+30  ;;  %v1124_v13 = vmin.f32 %v759_v3, %v5231_v19  ;;  %v5403_v58 = vpop.f32.mrf.mxu0 }
 0x240   : > { %3087 = vst [vmem:[#allocation1 + $0x4] ss:$9 sm:$0xff] %v2683_v62  ;;  %v1125_v62 = vmin.f32 %v760_v60, %v5259_v8 }
 0x241   : > { %3088 = vst [vmem:[#allocation1 + $0x5] ss:$9 sm:$0xff] %v2684_v36  ;;  %v1724_v36 = vpop.f32.mrf.mxu3  ;;  %v1131_v5 = vmin.f32 %v766_v40, %v1005_v6  ;;  %v5409_v40 = vmin.f32 %v5403_v58, %v2309_v12 }
 0x242   : > { %3089 = vst [vmem:[#allocation1 + $0x6] ss:$9 sm:$0xff] %v2685_v26  ;;  %v2494_v26 = vmax.f32 %v2414_v49, 0.0  ;;  %v5375_v35 = vmin.f32 %v1724_v36, %v1946_v39  ;;  %v1486_v25 = vmin.f32 %v1125_v62, %v5272_v45  ;;  %v5381_v8 = vmin.f32 %v1491_v57, %v1724_v36  ;;  %v1008_v49 = vpop.f32.mrf.mxu1  ;;  %v3406_v62 = vpop.permute.xlu2 %3405  ;;  %v6077_v57 = vld [vmem:[#allocation28_spill] sm:$0xff] }
 0x243   : > { %3090 = vst [vmem:[#allocation1 + $0x7] ss:$9 sm:$0xff] %v2686_v27  ;;  %v5373_v27 = vmin.f32 %v1363_v17, %v1585_v55  ;;  %v1485_v39 = vmin.f32 %v1124_v13, %v5249_v2  ;;  %v1492_v31 = vmin.f32 %v1131_v5, %v1366_v21  ;;  %v6076_v17 = vlaneseq }
 0x244   : > { %v2695_v19 = vperm.slane %v2494_v26, 0  ;;  %v1847_v45 = vmin.f32 %v1486_v25, %v5274_v14  ;;  %v2696_v51 = vperm.slane %v2494_v26, 1  ;;  %v2697_v1 = vperm.slane %v2494_v26, 2  ;;  %6075 = vst [vmem:[#allocation19_spill] sm:$0xff] %v5403_v58 }
 0x245   : > { %v2698_v59 = vperm.slane %v2494_v26, 3  ;;  %v2700_v23 = vperm.slane %v2494_v26, 5  ;;  %v2702_v2 = vperm.slane %v2494_v26, 7  ;;  %v5412_v36 = vand.u32 127, %v6076_v17 }
 0x247   : > { %v5418_v25 = vadd.s32 4294967280, %v5412_v36  ;;  %v5421_v6 = vadd.s32 4294967288, %v5412_v36 }
 0x249   : > { %6078 = vst [vmem:[#allocation24_spill] sm:$0xff] %v5418_v25 }
 0x24a   : > { %v5358_v50 = vld [vmem:[#allocation1] sm:$0xff]  ;;  %2433 = vmin.xlane.f32.xlu1 %v2206_v10  ;;  %6079 = vst [vmem:[#allocation11_spill] sm:$0xff] %v5421_v6 }
 0x24b   : > { %3092 = vst [vmem:[#allocation1] ss:$9 sm:$0xff] %v2687_v15  ;;  %v1846_v15 = vmin.f32 %v1485_v39, %v5251_v24  ;;  %v6074_v24 = vld [vmem:[#allocation25_spill] sm:$0xff] }
 0x24c   : > { %3093 = vst [vmem:[#allocation1 + $0x1] ss:$9 sm:$0xff] %v2688_v52  ;;  %v2699_v52 = vperm.slane %v2494_v26, 4  ;;  %v767_v41 = vmin.f32 %v6074_v24, 1e+30 }
 0x24d   : > { %3094 = vst [vmem:[#allocation1 + $0x2] ss:$9 sm:$0xff] %v2689_v29  ;;  %v2208_v29 = vmin.f32 %v1847_v45, %v5261_v53 }
 0x24e   : > { %3095 = vst [vmem:[#allocation1 + $0x3] ss:$9 sm:$0xff] %v2690_v32  ;;  %v2701_v32 = vperm.slane %v2494_v26, 6  ;;  %v1132_v61 = vmin.f32 %v767_v41, %v1008_v49  ;;  %v3400_v26 = vpop.permute.xlu0 %3399  ;;  %v5432_v41 = vpop.f32.mrf.mxu0 }
 0x24f   : > { %3096 = vst [vmem:[#allocation1 + $0x4] ss:$9 sm:$0xff] %v2691_v22  ;;  %v2416_v22 = vpop.xlane.xlu1 %2415 }
 0x250   : > { %3097 = vst [vmem:[#allocation1 + $0x5] ss:$9 sm:$0xff] %v2692_v63  ;;  %v2207_v63 = vmin.f32 %v1846_v15, %v5243_v54  ;;  %v2495_v53 = vmax.f32 %v2416_v22, 0.0  ;;  %v1227_v54 = vmin.f32 %v1008_v49, %v5383_v43  ;;  %v3550_v22 = vperm.slane %v3406_v62, %v5418_v25 }
 0x251   : > { %3098 = vst [vmem:[#allocation1 + $0x6] ss:$9 sm:$0xff] %v2693_v28  ;;  %v1727_v28 = vpop.f32.mrf.mxu3 }
 0x252   : > { %3099 = vst [vmem:[#allocation1 + $0x7] ss:$9 sm:$0xff] %v2694_v42  ;;  %v1587_v42 = vmin.f32 %v1366_v21, %v5373_v27  ;;  %v1948_v60 = vmin.f32 %v1727_v28, %v5375_v35  ;;  %v5405_v3 = vmin.f32 %v1492_v31, %v1727_v28  ;;  %v2703_v10 = vperm.slane %v2495_v53, 0 }
 0x253   : > { %v768_v35 = vmin.f32 %v6077_v57, 1e+30  ;;  %v2704_v13 = vperm.slane %v2495_v53, 1  ;;  %v2705_v5 = vperm.slane %v2495_v53, 2  ;;  %v2706_v12 = vperm.slane %v2495_v53, 3  ;;  %6081 = vst [vmem:[#allocation27_spill] sm:$0xff] %v5432_v41 }
 0x254   : > { %v2707_v39 = vperm.slane %v2495_v53, 4  ;;  %v2708_v45 = vperm.slane %v2495_v53, 5  ;;  %v2710_v49 = vperm.slane %v2495_v53, 7  ;;  %v6083_v57 = vld [vmem:[#allocation4_spill] sm:$0xff] }
 0x257   : > { %v3403_v43 = vpop.permute.xlu1 %3402 }
 0x258   : > { %v3546_v15 = vperm.slane %v3403_v43, %v5421_v6 }
 0x259   : > { %v5391_v44 = vld [vmem:[#allocation1] sm:$0xff]  ;;  %2437 = vmin.xlane.f32.xlu0 %v2208_v29 }
 0x25a   : > { %3101 = vst [vmem:[#allocation1] ss:$9 sm:$0xff] %v2695_v19 }
 0x25b   : > { %3102 = vst [vmem:[#allocation1 + $0x1] ss:$9 sm:$0xff] %v2696_v51  ;;  %v3544_v51 = vperm.slane %v3400_v26, %v5412_v36 }
 0x25c   : > { %3103 = vst [vmem:[#allocation1 + $0x2] ss:$9 sm:$0xff] %v2697_v1  ;;  %v1369_v1 = vpop.f32.mrf.mxu2 }
 0x25d   : > { %3104 = vst [vmem:[#allocation1 + $0x3] ss:$9 sm:$0xff] %v2698_v59  ;;  %v1730_v59 = vpop.f32.mrf.mxu3  ;;  %v1493_v29 = vmin.f32 %v1132_v61, %v1369_v1  ;;  %v3548_v24 = vsel %vm3547_vm2, %v3546_v15, %v3544_v51 }
 0x25e   : > { %3105 = vst [vmem:[#allocation1 + $0x4] ss:$9 sm:$0xff] %v2699_v52  ;;  %v5428_v52 = vadd.s32 4294967272, %v5412_v36  ;;  %v3552_v61 = vsel %vm3551_vm3, %v3550_v22, %v3548_v24 }
 0x25f   : > { %3106 = vst [vmem:[#allocation1 + $0x5] ss:$9 sm:$0xff] %v2700_v23  ;;  %v1588_v23 = vmin.f32 %v1369_v1, %v1587_v42  ;;  %v5434_v21 = vmin.f32 %v1493_v29, %v1730_v59  ;;  %v2311_v42 = vmin.f32 %v5432_v41, %v5409_v40  ;;  %v2496_v40 = vmax.f32 %v5393_v7, 0.0  ;;  %v2422_v27 = vpop.xlane.xlu1 %2421 }
 0x260   : > { %3107 = vst [vmem:[#allocation1 + $0x6] ss:$9 sm:$0xff] %v2701_v32  ;;  %2435 = vmin.xlane.f32.xlu2 %v2207_v63  ;;  %v1949_v32 = vmin.f32 %v1730_v59, %v1948_v60  ;;  %v1011_v63 = vpop.f32.mrf.mxu1  ;;  %v3409_v60 = vpop.permute.xlu2 %3408 }
 0x261   : > { %3108 = vst [vmem:[#allocation1 + $0x7] ss:$9 sm:$0xff] %v2702_v2  ;;  %v2709_v2 = vperm.slane %v2495_v53, 6  ;;  %v5436_v28 = vmin.f32 %v1011_v63, %v1227_v54  ;;  %v1133_v31 = vmin.f32 %v768_v35, %v1011_v63  ;;  %v3554_v62 = vperm.slane %v3409_v60, %v5428_v52 }
 0x262   : > { %6080 = vst [vmem:[#allocation3_spill] sm:$0xff] %v5428_v52  ;;  %v769_v35 = vmin.f32 %v6083_v57, 1e+30  ;;  %v2711_v1 = vperm.slane %v2496_v40, 0  ;;  %v2712_v59 = vperm.slane %v2496_v40, 1  ;;  %v2714_v29 = vperm.slane %v2496_v40, 3 }
 0x263   : > { %6082 = vst [vmem:[#allocation13_spill] sm:$0xff] %v5434_v21  ;;  %3426 = vperm.xlu1 %4108, %v5284_v48   ;;  %v5446_v54 = vsel %vm3555_vm4, %v3554_v62, %v3552_v61  ;;  %v2715_v22 = vperm.slane %v2496_v40, 4  ;;  %v2717_v61 = vperm.slane %v2496_v40, 6  ;;  %v6094_v52 = vld [vmem:[#allocation14_spill] sm:$0xff] }
 0x264   : > { %v1372_v53 = vpop.f32.mrf.mxu2  ;;  %v774_v25 = vmin.f32 %v6094_v52, 1e+30 }
 0x265   : > { %v1733_v26 = vpop.f32.mrf.mxu3  ;;  %v1494_v43 = vmin.f32 %v1133_v31, %v1372_v53  ;;  %v2716_v31 = vperm.slane %v2496_v40, 5 }
 0x268   : > { %v5423_v19 = vld [vmem:[#allocation1] sm:$0xff]  ;;  %v5451_v48 = vpop.f32.mrf.mxu1  ;;  %v2424_v6 = vpop.xlane.xlu2 %2423 }
 0x269   : > { %3110 = vst [vmem:[#allocation1] ss:$9 sm:$0xff] %v2703_v10  ;;  %v1134_v7 = vmin.f32 %v769_v35, %v5451_v48 }
 0x26a   : > { %3111 = vst [vmem:[#allocation1 + $0x1] ss:$9 sm:$0xff] %v2704_v13  ;;  %v1589_v13 = vmin.f32 %v1372_v53, %v1588_v23 }
 0x26b   : > { %3112 = vst [vmem:[#allocation1 + $0x2] ss:$9 sm:$0xff] %v2705_v5  ;;  %v1950_v5 = vmin.f32 %v1733_v26, %v1949_v32  ;;  %v6086_v32 = vld [vmem:[#allocation6_spill] sm:$0xff] }
 0x26c   : > { %3113 = vst [vmem:[#allocation1 + $0x3] ss:$9 sm:$0xff] %v2706_v12  ;;  %v5453_v12 = vpop.f32.mrf.mxu0  ;;  %v1375_v63 = vpop.f32.mrf.mxu2 }
 0x26d   : > { %3114 = vst [vmem:[#allocation1 + $0x4] ss:$9 sm:$0xff] %v2707_v39  ;;  %3438 = vperm.xlu0 %4107, %v5358_v50   ;;  %v5455_v39 = vmin.f32 %v1494_v43, %v1733_v26  ;;  %v5461_v51 = vmin.f32 %v5453_v12, %v2311_v42  ;;  %v2713_v50 = vperm.slane %v2496_v40, 2  ;;  %v1736_v24 = vpop.f32.mrf.mxu3  ;;  %v5469_v42 = vmin.f32 %v1375_v63, %v1589_v13 }
 0x26e   : > { %3115 = vst [vmem:[#allocation1 + $0x5] ss:$9 sm:$0xff] %v2708_v45  ;;  %v1495_v60 = vmin.f32 %v1134_v7, %v1375_v63  ;;  %v2718_v26 = vperm.slane %v2496_v40, 7 }
 0x26f   : > { %3116 = vst [vmem:[#allocation1 + $0x6] ss:$9 sm:$0xff] %v2709_v2  ;;  %v770_v2 = vmin.f32 %v6086_v32, 1e+30 }
 0x270   : > { %3117 = vst [vmem:[#allocation1 + $0x7] ss:$9 sm:$0xff] %v2710_v49  ;;  %v5471_v49 = vmin.f32 %v1736_v24, %v1950_v5  ;;  %v5473_v62 = vpop.f32.mrf.mxu1  ;;  %v5477_v57 = vmin.f32 %v1495_v60, %v1736_v24 }
 0x271   : > { %6084 = vst [vmem:[#allocation15_spill] sm:$0xff] %v5453_v12  ;;  %v1135_v35 = vmin.f32 %v770_v2, %v5473_v62 }
 0x272   : > { %6085 = vst [vmem:[#allocation17_spill] sm:$0xff] %v5455_v39  ;;  %v6101_v39 = vld [vmem:[#allocation18_spill] sm:$0xff] }
 0x274   : > { %v5475_v53 = vpop.f32.mrf.mxu0  ;;  %v5482_v5 = vpop.f32.mrf.mxu2 }
 0x275   : > { %v5484_v7 = vpop.f32.mrf.mxu3 }
 0x277   : > { %v5465_v23 = vld [vmem:[#allocation1] sm:$0xff] }
 0x278   : > { %3119 = vst [vmem:[#allocation1] ss:$9 sm:$0xff] %v2711_v1  ;;  %3432 = vperm.xlu2 %4109, %v5327_v9   ;;  %v2420_v9 = vpop.xlane.xlu0 %2419  ;;  %v6087_v1 = vld [vmem:[#allocation8_spill] sm:$0xff] }
 0x279   : > { %3120 = vst [vmem:[#allocation1 + $0x1] ss:$9 sm:$0xff] %v2712_v59  ;;  %v2497_v43 = vmax.f32 %v2420_v9, 0.0  ;;  %v771_v40 = vmin.f32 %v6087_v1, 1e+30  ;;  %v1496_v59 = vmin.f32 %v1135_v35, %v5482_v5 }
 0x27a   : > { %3121 = vst [vmem:[#allocation1 + $0x2] ss:$9 sm:$0xff] %v2713_v50  ;;  %v5488_v50 = vpop.f32.mrf.mxu1 }
 0x27b   : > { %3122 = vst [vmem:[#allocation1 + $0x3] ss:$9 sm:$0xff] %v2714_v29  ;;  %v5493_v32 = vmin.f32 %v1496_v59, %v5484_v7  ;;  %v1136_v2 = vmin.f32 %v771_v40, %v5488_v50  ;;  %v2720_v63 = vperm.slane %v2497_v43, 1  ;;  %v2721_v24 = vperm.slane %v2497_v43, 2  ;;  %v6089_v59 = vld [vmem:[#allocation10_spill] sm:$0xff] }
 0x27c   : > { %3123 = vst [vmem:[#allocation1 + $0x4] ss:$9 sm:$0xff] %v2715_v22  ;;  %v5490_v29 = vpop.f32.mrf.mxu0  ;;  %v2719_v22 = vperm.slane %v2497_v43, 0  ;;  %v5500_v35 = vpop.f32.mrf.mxu2  ;;  %v2724_v1 = vperm.slane %v2497_v43, 5  ;;  %v772_v15 = vmin.f32 %v6089_v59, 1e+30 }
 0x27d   : > { %3124 = vst [vmem:[#allocation1 + $0x5] ss:$9 sm:$0xff] %v2716_v31  ;;  %v5502_v9 = vpop.f32.mrf.mxu3  ;;  %v1497_v40 = vmin.f32 %v1136_v2, %v5500_v35  ;;  %v2725_v10 = vperm.slane %v2497_v43, 6  ;;  %v2726_v13 = vperm.slane %v2497_v43, 7 }
 0x27e   : > { %3125 = vst [vmem:[#allocation1 + $0x6] ss:$9 sm:$0xff] %v2717_v61  ;;  %v2722_v61 = vperm.slane %v2497_v43, 3 }
 0x27f   : > { %3126 = vst [vmem:[#allocation1 + $0x7] ss:$9 sm:$0xff] %v2718_v26  ;;  %v2723_v26 = vperm.slane %v2497_v43, 4 }
 0x280   : > { %6088 = vst [vmem:[#allocation20_spill] sm:$0xff] %v5493_v32 }
 0x282   : > { %v5506_v31 = vpop.f32.mrf.mxu1 }
 0x283   : > { %v1137_v55 = vmin.f32 %v772_v15, %v5506_v31 }
 0x284   : > { %v5508_v14 = vpop.f32.mrf.mxu0  ;;  %v5516_v43 = vpop.f32.mrf.mxu2 }
 0x286   : > { %v5498_v60 = vld [vmem:[#allocation1] sm:$0xff] }
 0x287   : > { %3128 = vst [vmem:[#allocation1] ss:$9 sm:$0xff] %v2719_v22  ;;  %v5511_v22 = vmin.f32 %v1497_v40, %v5502_v9  ;;  %v1498_v40 = vmin.f32 %v1137_v55, %v5516_v43 }
 0x288   : > { %3129 = vst [vmem:[#allocation1 + $0x1] ss:$9 sm:$0xff] %v2720_v63  ;;  %v2498_v63 = vmax.f32 %v2422_v27, 0.0 }
 0x289   : > { %3130 = vst [vmem:[#allocation1 + $0x2] ss:$9 sm:$0xff] %v2721_v24  ;;  %v5518_v24 = vpop.f32.mrf.mxu3 }
 0x28a   : > { %3131 = vst [vmem:[#allocation1 + $0x3] ss:$9 sm:$0xff] %v2722_v61  ;;  %v6091_v61 = vld [vmem:[#allocation12_spill] sm:$0xff]  ;;  %v5522_v45 = vpop.f32.mrf.mxu1  ;;  %v2727_v15 = vperm.slane %v2498_v63, 0  ;;  %v2729_v27 = vperm.slane %v2498_v63, 2  ;;  %v2730_v0 = vperm.slane %v2498_v63, 3 }
 0x28b   : > { %6090 = vst [vmem:[#allocation5_spill] sm:$0xff] %v5511_v22  ;;  %v773_v59 = vmin.f32 %v6091_v61, 1e+30  ;;  %v2731_v34 = vperm.slane %v2498_v63, 4  ;;  %v2732_v55 = vperm.slane %v2498_v63, 5  ;;  %v2734_v22 = vperm.slane %v2498_v63, 7 }
 0x28c   : > { %3132 = vst [vmem:[#allocation1 + $0x4] ss:$9 sm:$0xff] %v2723_v26  ;;  %v5524_v26 = vpop.f32.mrf.mxu0  ;;  %v5537_v17 = vpop.f32.mrf.mxu2 }
 0x28d   : > { %3133 = vst [vmem:[#allocation1 + $0x5] ss:$9 sm:$0xff] %v2724_v1  ;;  %v1138_v1 = vmin.f32 %v773_v59, %v5522_v45  ;;  %2439 = vmin.xlane.f32.xlu1 %v2209_v18  ;;  %v6096_v18 = vmin.f32 %v5334_v47, %v5318_v38 }
 0x28e   : > { %3134 = vst [vmem:[#allocation1 + $0x6] ss:$9 sm:$0xff] %v2725_v10  ;;  %v5527_v10 = vmin.f32 %v1498_v40, %v5518_v24  ;;  %v2733_v40 = vperm.slane %v2498_v63, 6 }
 0x28f   : > { %3135 = vst [vmem:[#allocation1 + $0x7] ss:$9 sm:$0xff] %v2726_v13  ;;  %v2728_v13 = vperm.slane %v2498_v63, 1  ;;  %v1499_v61 = vmin.f32 %v1138_v1, %v5537_v17  ;;  %v6097_v1 = vld [vmem:[#allocation16_spill] sm:$0xff] }
 0x290   : > { %6092 = vst [vmem:[#allocation9_spill] sm:$0xff] %v5527_v10 }
 0x291   : > { %v5539_v59 = vpop.f32.mrf.mxu3 }
 0x292   : > { %v5548_v20 = vmin.f32 %v1499_v61, %v5539_v59 }
 0x294   : > { %6095 = vst [vmem:[#allocation22_spill] sm:$0xff] %v5548_v20  ;;  %v5556_v52 = vpop.f32.mrf.mxu2 }
 0x296   : > { %v5530_v2 = vld [vmem:[#allocation1] sm:$0xff] }
 0x297   : > { %6093 = vst [vmem:[#allocation7_spill] sm:$0xff] %v5530_v2  ;;  %2443 = vmin.xlane.f32.xlu0 %v6096_v18 }
 0x298   : > { %3137 = vst [vmem:[#allocation1] ss:$9 sm:$0xff] %v2727_v15  ;;  %v5543_v15 = vpop.f32.mrf.mxu1 }
 0x299   : > { %3138 = vst [vmem:[#allocation1 + $0x1] ss:$9 sm:$0xff] %v2728_v13  ;;  %v5545_v13 = vpop.f32.mrf.mxu0  ;;  %v1139_v46 = vmin.f32 %v774_v25, %v5543_v15  ;;  %v5558_v63 = vpop.f32.mrf.mxu3  ;;  %v6098_v25 = vmin.f32 %v5320_v11, %v5311_v37 }
 0x29a   : > { %3139 = vst [vmem:[#allocation1 + $0x2] ss:$9 sm:$0xff] %v2729_v27  ;;  %v775_v27 = vmin.f32 %v6097_v1, 1e+30 }
 0x29b   : > { %3140 = vst [vmem:[#allocation1 + $0x3] ss:$9 sm:$0xff] %v2730_v0  ;;  %v2499_v0 = vmax.f32 %v2424_v6, 0.0  ;;  %v1500_v61 = vmin.f32 %v1139_v46, %v5556_v52  ;;  %v3412_v46 = vpop.permute.xlu1 %3411 }
 0x29c   : > { %3141 = vst [vmem:[#allocation1 + $0x4] ss:$9 sm:$0xff] %v2731_v34  ;;  %v5583_v2 = vpop.f32.mrf.mxu2 }
 0x29d   : > { %3142 = vst [vmem:[#allocation1 + $0x5] ss:$9 sm:$0xff] %v2732_v55  ;;  %v2735_v55 = vperm.slane %v2499_v0, 0  ;;  %v2736_v6 = vperm.slane %v2499_v0, 1  ;;  %v2737_v1 = vperm.slane %v2499_v0, 2  ;;  %v2738_v37 = vperm.slane %v2499_v0, 3 }
 0x29e   : > { %3143 = vst [vmem:[#allocation1 + $0x6] ss:$9 sm:$0xff] %v2733_v40  ;;  %v5573_v40 = vmin.f32 %v1500_v61, %v5558_v63  ;;  %v2740_v32 = vperm.slane %v2499_v0, 5  ;;  %v2741_v10 = vperm.slane %v2499_v0, 6 }
 0x29f   : > { %3144 = vst [vmem:[#allocation1 + $0x7] ss:$9 sm:$0xff] %v2734_v22  ;;  %v5570_v22 = vadd.s32 4294967264, %v5412_v36 }
 0x2a0   : > { %v5565_v38 = vpop.f32.mrf.mxu1  ;;  %6100 = vst [vmem:[#allocation28_spill] sm:$0xff] %v5573_v40 }
 0x2a1   : > { %2441 = vmin.xlane.f32.xlu2 %v6098_v25  ;;  %v5567_v47 = vpop.f32.mrf.mxu0  ;;  %6099 = vst [vmem:[#allocation25_spill] sm:$0xff] %v5570_v22  ;;  %v1140_v18 = vmin.f32 %v775_v27, %v5565_v38  ;;  %v3558_v11 = vperm.slane %v3412_v46, %v5570_v22  ;;  %v2739_v25 = vperm.slane %v2499_v0, 4  ;;  %v2742_v27 = vperm.slane %v2499_v0, 7  ;;  %v5585_v41 = vpop.f32.mrf.mxu3 }
 0x2a2   : > { %v776_v46 = vmin.f32 %v6101_v39, 1e+30  ;;  %v2426_v22 = vpop.xlane.xlu0 %2425  ;;  %v3415_v39 = vpop.permute.xlu2 %3414 }
 0x2a3   : > { %v3560_v61 = vsel %vm3559_vm5, %v3558_v11, %v5446_v54 }
 0x2a4   : > { %v5603_v11 = vpop.f32.mrf.mxu2 }
 0x2a6   : > { %v5576_v34 = vld [vmem:[#allocation1] sm:$0xff]  ;;  %3435 = vperm.xlu1 %4108, %v5339_v4  }
 0x2a7   : > { %3146 = vst [vmem:[#allocation1] ss:$9 sm:$0xff] %v2735_v55  ;;  %v1501_v55 = vmin.f32 %v1140_v18, %v5583_v2 }
 0x2a8   : > { %3147 = vst [vmem:[#allocation1 + $0x1] ss:$9 sm:$0xff] %v2736_v6  ;;  %v5589_v20 = vpop.f32.mrf.mxu1 }
 0x2a9   : > { %3148 = vst [vmem:[#allocation1 + $0x2] ss:$9 sm:$0xff] %v2737_v1  ;;  %v5591_v6 = vpop.f32.mrf.mxu0  ;;  %v5594_v54 = vmin.f32 %v1501_v55, %v5585_v41  ;;  %v1141_v0 = vmin.f32 %v776_v46, %v5589_v20  ;;  %v5598_v1 = vadd.s32 4294967256, %v5412_v36 }
 0x2aa   : > { %3149 = vst [vmem:[#allocation1 + $0x3] ss:$9 sm:$0xff] %v2738_v37 }
 0x2ab   : > { %3150 = vst [vmem:[#allocation1 + $0x4] ss:$9 sm:$0xff] %v2739_v25  ;;  %v3562_v37 = vperm.slane %v3415_v39, %v5598_v1  ;;  %v5605_v25 = vpop.f32.mrf.mxu3  ;;  %3447 = vperm.xlu0 %4107, %v5465_v23  }
 0x2ac   : > { %3151 = vst [vmem:[#allocation1 + $0x5] ss:$9 sm:$0xff] %v2740_v32  ;;  %v2500_v32 = vmax.f32 %v2426_v22, 0.0 }
 0x2ad   : > { %3152 = vst [vmem:[#allocation1 + $0x6] ss:$9 sm:$0xff] %v2741_v10  ;;  %v6104_v10 = vld [vmem:[#allocation21_spill] sm:$0xff]  ;;  %v5612_v55 = vsel %vm3563_vm6, %v3562_v37, %v3560_v61  ;;  %v6106_v37 = vmin.f32 %v5451_v48, %v5436_v28 }
 0x2ae   : > { %6102 = vst [vmem:[#allocation4_spill] sm:$0xff] %v5594_v54  ;;  %v777_v46 = vmin.f32 %v6104_v10, 1e+30  ;;  %v2743_v18 = vperm.slane %v2500_v32, 0  ;;  %v2745_v54 = vperm.slane %v2500_v32, 2  ;;  %v2746_v10 = vperm.slane %v2500_v32, 3 }
 0x2af   : > { %6103 = vst [vmem:[#allocation6_spill] sm:$0xff] %v5598_v1  ;;  %v2744_v1 = vperm.slane %v2500_v32, 1  ;;  %v1230_v58 = vmin.f32 %v5473_v62, %v6106_v37  ;;  %v2750_v28 = vperm.slane %v2500_v32, 7 }
 0x2b0   : > { %3153 = vst [vmem:[#allocation1 + $0x7] ss:$9 sm:$0xff] %v2742_v27  ;;  %v1502_v27 = vmin.f32 %v1141_v0, %v5603_v11  ;;  %v5614_v22 = vpop.f32.mrf.mxu1  ;;  %v2747_v0 = vperm.slane %v2500_v32, 4 }
 0x2b1   : > { %v5616_v39 = vpop.f32.mrf.mxu0  ;;  %v1142_v4 = vmin.f32 %v777_v46, %v5614_v22  ;;  %v6107_v46 = vld [vmem:[#allocation23_spill] sm:$0xff] }
 0x2b2   : > { %v5621_v23 = vmin.f32 %v1502_v27, %v5605_v25  ;;  %v2313_v27 = vmin.f32 %v5475_v53, %v5461_v51  ;;  %v778_v21 = vmin.f32 %v6107_v46, 1e+30 }
 0x2b3   : > { %v5635_v12 = vpop.f32.mrf.mxu3 }
 0x2b4   : > { %v2314_v61 = vmin.f32 %v5490_v29, %v2313_v27 }
 0x2b7   : > { %v5618_v40 = vld [vmem:[#allocation1] sm:$0xff] }
 0x2b8   : > { %6105 = vst [vmem:[#allocation8_spill] sm:$0xff] %v5618_v40  ;;  %v2748_v40 = vperm.slane %v2500_v32, 5  ;;  %v1041_v51 = vpop.f32.mrf.mxu1 }
 0x2b9   : > { %3155 = vst [vmem:[#allocation1] ss:$9 sm:$0xff] %v2743_v18  ;;  %v2749_v18 = vperm.slane %v2500_v32, 6  ;;  %3441 = vperm.xlu2 %4109, %v5391_v44   ;;  %v5641_v62 = vpop.f32.mrf.mxu0 }
 0x2ba   : > { %3156 = vst [vmem:[#allocation1 + $0x1] ss:$9 sm:$0xff] %v2744_v1  ;;  %v5633_v1 = vpop.f32.mrf.mxu2 }
 0x2bb   : > { %3157 = vst [vmem:[#allocation1 + $0x2] ss:$9 sm:$0xff] %v2745_v54  ;;  %v1231_v54 = vmin.f32 %v5488_v50, %v1230_v58  ;;  %v1503_v48 = vmin.f32 %v1142_v4, %v5633_v1  ;;  %v1143_v58 = vmin.f32 %v778_v21, %v1041_v51  ;;  %v1591_v50 = vmin.f32 %v5482_v5, %v5469_v42 }
 0x2bc   : > { %3158 = vst [vmem:[#allocation1 + $0x3] ss:$9 sm:$0xff] %v2746_v10 }
 0x2bd   : > { %3159 = vst [vmem:[#allocation1 + $0x4] ss:$9 sm:$0xff] %v2747_v0  ;;  %v1232_v10 = vmin.f32 %v5506_v31, %v1231_v54  ;;  %v2315_v0 = vmin.f32 %v5508_v14, %v2314_v61  ;;  %v5646_v37 = vmin.f32 %v1503_v48, %v5635_v12  ;;  %v1592_v4 = vmin.f32 %v5500_v35, %v1591_v50 }
 0x2be   : > { %3160 = vst [vmem:[#allocation1 + $0x5] ss:$9 sm:$0xff] %v2748_v40  ;;  %v1952_v40 = vmin.f32 %v5484_v7, %v5471_v49  ;;  %v6108_v7 = vld [vmem:[#allocation26_spill] sm:$0xff] }
 0x2bf   : > { %3161 = vst [vmem:[#allocation1 + $0x6] ss:$9 sm:$0xff] %v2749_v18  ;;  %v1233_v44 = vmin.f32 %v5522_v45, %v1232_v10  ;;  %v2316_v32 = vmin.f32 %v5524_v26, %v2315_v0  ;;  %v2225_v31 = vmin.f32 %v5646_v37, %v5616_v39  ;;  %v1593_v42 = vmin.f32 %v5516_v43, %v1592_v4  ;;  %v5664_v45 = vpop.f32.mrf.mxu3 }
 0x2c0   : > { %3162 = vst [vmem:[#allocation1 + $0x7] ss:$9 sm:$0xff] %v2750_v28  ;;  %v1953_v61 = vmin.f32 %v5502_v9, %v1952_v40  ;;  %v779_v46 = vmin.f32 %v6108_v7, 1e+30  ;;  %v1044_v28 = vpop.f32.mrf.mxu1 }
 0x2c1   : > { %v1234_v27 = vmin.f32 %v5543_v15, %v1233_v44  ;;  %v2317_v21 = vmin.f32 %v5545_v13, %v2316_v32  ;;  %v1594_v15 = vmin.f32 %v5537_v17, %v1593_v42  ;;  %v5672_v43 = vpop.f32.mrf.mxu0 }
 0x2c2   : > { %v1954_v5 = vmin.f32 %v5518_v24, %v1953_v61  ;;  %v5662_v49 = vpop.f32.mrf.mxu2  ;;  %v1144_v0 = vmin.f32 %v779_v46, %v1044_v28 }
 0x2c3   : > { %v1235_v18 = vmin.f32 %v5565_v38, %v1234_v27  ;;  %v2318_v35 = vmin.f32 %v5567_v47, %v2317_v21  ;;  %v1504_v9 = vmin.f32 %v1143_v58, %v5662_v49  ;;  %v2428_v38 = vpop.xlane.xlu1 %2427  ;;  %v1595_v50 = vmin.f32 %v5556_v52, %v1594_v15 }
 0x2c4   : > { %v1955_v54 = vmin.f32 %v5539_v59, %v1954_v5  ;;  %v2501_v40 = vmax.f32 %v2428_v38, 0.0 }
 0x2c5   : > { %v1238_v24 = vmin.f32 %v5589_v20, %v1235_v18  ;;  %v2321_v48 = vmin.f32 %v5591_v6, %v2318_v35  ;;  %v5677_v10 = vmin.f32 %v1504_v9, %v5664_v45  ;;  %v1596_v20 = vmin.f32 %v5583_v2, %v1595_v50  ;;  %v2430_v50 = vpop.xlane.xlu2 %2429 }
 0x2c6   : > { %v1956_v58 = vmin.f32 %v5558_v63, %v1955_v54  ;;  %v2751_v32 = vperm.slane %v2501_v40, 0  ;;  %v2752_v4 = vperm.slane %v2501_v40, 1  ;;  %v2753_v61 = vperm.slane %v2501_v40, 2 }
 0x2c7   : > { %v1236_v17 = vmin.f32 %v5614_v22, %v1238_v24  ;;  %v2319_v59 = vmin.f32 %v5616_v39, %v2321_v48  ;;  %v2226_v44 = vmin.f32 %v5677_v10, %v5641_v62  ;;  %v5686_v27 = vld [vmem:[#allocation1] sm:$0xff]  ;;  %v2754_v42 = vperm.slane %v2501_v40, 3  ;;  %v1766_v7 = vpop.f32.mrf.mxu3 }
 0x2c8   : > { %v1957_v63 = vmin.f32 %v5585_v41, %v1956_v58  ;;  %v1599_v22 = vmin.f32 %v5603_v11, %v1596_v20  ;;  %v2755_v46 = vperm.slane %v2501_v40, 4  ;;  %3164 = vst [vmem:[#allocation1] ss:$9 sm:$0xff] %v2751_v32  ;;  %v2756_v9 = vperm.slane %v2501_v40, 5  ;;  %v1047_v54 = vpop.f32.mrf.mxu1  ;;  %v6109_v58 = vld [vmem:[#allocation29_spill] sm:$0xff] }
 0x2c9   : > { %v1237_v21 = vmin.f32 %v1041_v51, %v1236_v17  ;;  %v2320_v52 = vmin.f32 %v5641_v62, %v2319_v59  ;;  %3165 = vst [vmem:[#allocation1 + $0x1] ss:$9 sm:$0xff] %v2752_v4  ;;  %v5694_v24 = vpop.f32.mrf.mxu0  ;;  %v2757_v41 = vperm.slane %v2501_v40, 6  ;;  %v780_v17 = vmin.f32 %v6109_v58, 1e+30 }
 0x2ca   : > { %v1405_v5 = vpop.f32.mrf.mxu2  ;;  %v1960_v15 = vmin.f32 %v5605_v25, %v1957_v63  ;;  %v1597_v51 = vmin.f32 %v5633_v1, %v1599_v22  ;;  %3166 = vst [vmem:[#allocation1 + $0x2] ss:$9 sm:$0xff] %v2753_v61  ;;  %v5705_v4 = vmax.f32 %v2430_v50, 0.0 }
 0x2cb   : > { %v1239_v18 = vmin.f32 %v1044_v28, %v1237_v21  ;;  %v2322_v2 = vmin.f32 %v5672_v43, %v2320_v52  ;;  %v1505_v35 = vmin.f32 %v1144_v0, %v1405_v5  ;;  %v2758_v28 = vperm.slane %v2501_v40, 7  ;;  %3167 = vst [vmem:[#allocation1 + $0x3] ss:$9 sm:$0xff] %v2754_v42 }
 0x2cc   : > { %v1958_v0 = vmin.f32 %v5635_v12, %v1960_v15  ;;  %3168 = vst [vmem:[#allocation1 + $0x4] ss:$9 sm:$0xff] %v2755_v46  ;;  %v1598_v25 = vmin.f32 %v5662_v49, %v1597_v51  ;;  %v1145_v61 = vmin.f32 %v780_v17, %v1047_v54 }
 0x2cd   : > { %v5696_v11 = vmin.f32 %v1505_v35, %v1766_v7  ;;  %v1240_v48 = vmin.f32 %v1047_v54, %v1239_v18  ;;  %v2323_v38 = vmin.f32 %v5694_v24, %v2322_v2  ;;  %3169 = vst [vmem:[#allocation1 + $0x5] ss:$9 sm:$0xff] %v2756_v9  ;;  %v2759_v35 = vperm.slane %v5705_v4, 0 }
 0x2ce   : > { %v1959_v32 = vmin.f32 %v5664_v45, %v1958_v0  ;;  %3170 = vst [vmem:[#allocation1 + $0x6] ss:$9 sm:$0xff] %v2757_v41  ;;  %v1600_v40 = vmin.f32 %v1405_v5, %v1598_v25  ;;  %v5711_v5 = vadd.s32 4294967240, %v5412_v36  ;;  %v2761_v41 = vperm.slane %v5705_v4, 2 }
 0x2cf   : > { %v1241_v1 = vrot.slane %v1240_v48, 4  ;;  %v2324_v59 = vrot.slane %v2323_v38, 4  ;;  %v2227_v20 = vmin.f32 %v5696_v11, %v5672_v43  ;;  %3171 = vst [vmem:[#allocation1 + $0x7] ss:$9 sm:$0xff] %v2758_v28  ;;  %v1769_v63 = vpop.f32.mrf.mxu3  ;;  %v2762_v25 = vperm.slane %v5705_v4, 3 }
 0x2d0   : > { %v1961_v52 = vmin.f32 %v1766_v7, %v1959_v32  ;;  %v2760_v7 = vperm.slane %v5705_v4, 1 }
 0x2d1   : > { %v1242_v21 = vmin.f32 %v1240_v48, %v1241_v1  ;;  %v2325_v12 = vmin.f32 %v2323_v38, %v2324_v59  ;;  %v3421_v48 = vpop.permute.xlu0 %3420  ;;  %v5721_v1 = vadd.s32 4294967248, %v5412_v36  ;;  %v3418_v59 = vpop.permute.xlu1 %3417 }
 0x2d2   : > { %v1408_v42 = vpop.f32.mrf.mxu2  ;;  %v1962_v2 = vmin.f32 %v1769_v63, %v1961_v52 }
 0x2d3   : > { %v1243_v49 = vrot.slane %v1242_v21, 2  ;;  %v2326_v22 = vrot.slane %v2325_v12, 2  ;;  %v1601_v46 = vmin.f32 %v1408_v42, %v1600_v40  ;;  %v1506_v18 = vmin.f32 %v1145_v61, %v1408_v42 }
 0x2d4   : > { %v1963_v54 = vrot.slane %v1962_v2, 4  ;;  %v3566_v52 = vperm.slane %v3418_v59, %v5721_v1 }
 0x2d5   : > { %v1244_v9 = vmin.f32 %v1242_v21, %v1243_v49  ;;  %v2327_v45 = vmin.f32 %v2325_v12, %v2326_v22  ;;  %v1602_v15 = vrot.slane %v1601_v46, 4  ;;  %v5708_v51 = vmin.f32 %v1506_v18, %v1769_v63 }
 0x2d6   : > { %v1964_v58 = vmin.f32 %v1962_v2, %v1963_v54  ;;  %v5717_v17 = vld [vmem:[#allocation1] sm:$0xff]  ;;  %v3570_v21 = vperm.slane %v3421_v48, %v5711_v5  ;;  %v2763_v22 = vperm.slane %v5705_v4, 4  ;;  %v2764_v18 = vperm.slane %v5705_v4, 5 }
 0x2d7   : > { %v1245_v38 = vrot.slane %v1244_v9, 1  ;;  %v2328_v28 = vrot.slane %v2327_v45, 1  ;;  %v1603_v50 = vmin.f32 %v1601_v46, %v1602_v15  ;;  %v2228_v0 = vmin.f32 %v5708_v51, %v5694_v24  ;;  %3173 = vst [vmem:[#allocation1] ss:$9 sm:$0xff] %v2759_v35 }
 0x2d8   : > { %v1965_v12 = vrot.slane %v1964_v58, 2  ;;  %3174 = vst [vmem:[#allocation1 + $0x1] ss:$9 sm:$0xff] %v2760_v7  ;;  %v3568_v2 = vsel %vm3567_vm7, %v3566_v52, %v5612_v55  ;;  %v6110_v35 = vmin.f32 %v5405_v3, %v5379_v16  ;;  %v2765_v54 = vperm.slane %v5705_v4, 6  ;;  %v3424_v52 = vpop.permute.xlu2 %3423 }
 0x2d9   : > { %v1246_v32 = vmin.f32 %v1244_v9, %v1245_v38  ;;  %v2329_v40 = vmin.f32 %v2327_v45, %v2328_v28  ;;  %v1604_v61 = vrot.slane %v1603_v50, 2  ;;  %3175 = vst [vmem:[#allocation1 + $0x2] ss:$9 sm:$0xff] %v2761_v41  ;;  %v6111_v9 = vmin.f32 %v5351_v30, %v5341_v33  ;;  %v2432_v30 = vpop.xlane.xlu0 %2431 }
 0x2da   : > { %v1966_v46 = vmin.f32 %v1964_v58, %v1965_v12  ;;  %3176 = vst [vmem:[#allocation1 + $0x3] ss:$9 sm:$0xff] %v2762_v25  ;;  %2449 = vmin.xlane.f32.xlu0 %v6110_v35  ;;  %v3572_v7 = vsel %vm3571_vm8, %v3570_v21, %v3568_v2  ;;  %v2766_v16 = vperm.slane %v5705_v4, 7  ;;  %v2503_v38 = vmax.f32 %v2432_v30, 0.0  ;;  %v2434_v21 = vpop.xlane.xlu1 %2433 }
 0x2db   : > { %v1247_v42 = vmax.f32 %v1246_v32, 0.0  ;;  %v2330_v63 = vmax.f32 %v2329_v40, 0.0  ;;  %v1605_v49 = vmin.f32 %v1603_v50, %v1604_v61  ;;  %2445 = vmin.xlane.f32.xlu1 %v6111_v9  ;;  %3177 = vst [vmem:[#allocation1 + $0x4] ss:$9 sm:$0xff] %v2763_v22  ;;  %v6113_v28 = vmin.f32 %v5381_v8, %v5360_v56 }
 0x2dc   : > { %v1967_v55 = vrot.slane %v1966_v46, 1  ;;  %3178 = vst [vmem:[#allocation1 + $0x5] ss:$9 sm:$0xff] %v2764_v18  ;;  %v2767_v4 = vperm.slane %v2503_v38, 0  ;;  %v2768_v50 = vperm.slane %v2503_v38, 1  ;;  %v2769_v25 = vperm.slane %v2503_v38, 2 }
 0x2dd   : > { %1248 = vst.msk [vmem:[%s4711_s27 + $0x1] sm:$0x1] %vm4714_vm1, %v1247_v42  ;;  %v1606_v15 = vrot.slane %v1605_v49, 1  ;;  %v2770_v59 = vperm.slane %v2503_v38, 3  ;;  %v2771_v32 = vperm.slane %v2503_v38, 4  ;;  %v2772_v40 = vperm.slane %v2503_v38, 5 }
 0x2de   : > { %2331 = vst.msk [vmem:[%s4711_s27 + $0x4] sm:$0x1] %vm4714_vm1, %v2330_v63  ;;  %v1968_v33 = vmin.f32 %v1966_v46, %v1967_v55  ;;  %v2773_v61 = vperm.slane %v2503_v38, 6  ;;  %v2774_v12 = vperm.slane %v2503_v38, 7  ;;  %v5757_v56 = vadd.s32 4294967232, %v5412_v36 }
 0x2df   : > { %v1607_v3 = vmin.f32 %v1605_v49, %v1606_v15  ;;  %3179 = vst [vmem:[#allocation1 + $0x6] ss:$9 sm:$0xff] %v2765_v54  ;;  %v2504_v8 = vmax.f32 %v2434_v21, 0.0  ;;  %v5766_v54 = vadd.s32 4294967216, %v5412_v36 }
 0x2e0   : > { %v1969_v48 = vmax.f32 %v1968_v33, 0.0  ;;  %3180 = vst [vmem:[#allocation1 + $0x7] ss:$9 sm:$0xff] %v2766_v16  ;;  %v3574_v42 = vperm.slane %v3424_v52, %v5757_v56 }
 0x2e1   : > { %v1608_v41 = vmax.f32 %v1607_v3, 0.0  ;;  %v2775_v63 = vperm.slane %v2504_v8, 0  ;;  %v2776_v49 = vperm.slane %v2504_v8, 1  ;;  %v2777_v22 = vperm.slane %v2504_v8, 2  ;;  %v3430_v55 = vpop.permute.xlu0 %3429 }
 0x2e2   : > { %1970 = vst.msk [vmem:[%s4711_s27 + $0x3] sm:$0x1] %vm4714_vm1, %v1969_v48  ;;  %2447 = vmin.xlane.f32.xlu2 %v6113_v28  ;;  %v3576_v46 = vsel %vm3575_vm9, %v3574_v42, %v3572_v7  ;;  %v2778_v2 = vperm.slane %v2504_v8, 3  ;;  %v2780_v35 = vperm.slane %v2504_v8, 5  ;;  %v2781_v9 = vperm.slane %v2504_v8, 6  ;;  %v3427_v33 = vpop.permute.xlu1 %3426 }
 0x2e3   : > { %1609 = vst.msk [vmem:[%s4711_s27 + $0x2] sm:$0x1] %vm4714_vm1, %v1608_v41  ;;  %v2782_v45 = vperm.slane %v2504_v8, 7  ;;  %v5769_v3 = vadd.s32 4294967224, %v5412_v36  ;;  %v3582_v38 = vperm.slane %v3430_v55, %v5766_v54  ;;  %vm3669_vm1 = vcmask 1040384  }
 0x2e5   : > { %v3578_v48 = vperm.slane %v3427_v33, %v5769_v3 }
 0x2e7   : > { %v5753_v58 = vld [vmem:[#allocation1] sm:$0xff] }
 0x2e8   : > { %3182 = vst [vmem:[#allocation1] ss:$9 sm:$0xff] %v2767_v4 }
 0x2e9   : > { %3183 = vst [vmem:[#allocation1 + $0x1] ss:$9 sm:$0xff] %v2768_v50  ;;  %v3580_v50 = vsel %vm3579_vm10, %v3578_v48, %v3576_v46  ;;  %v6120_v48 = vld [vmem:[#allocation27_spill] sm:$0xff] }
 0x2ea   : > { %3184 = vst [vmem:[#allocation1 + $0x2] ss:$9 sm:$0xff] %v2769_v25 }
 0x2eb   : > { %3185 = vst [vmem:[#allocation1 + $0x3] ss:$9 sm:$0xff] %v2770_v59  ;;  %v5777_v59 = vsel %vm3583_vm11, %v3582_v38, %v3580_v50 }
 0x2ec   : > { %3186 = vst [vmem:[#allocation1 + $0x4] ss:$9 sm:$0xff] %v2771_v32 }
 0x2ed   : > { %3187 = vst [vmem:[#allocation1 + $0x5] ss:$9 sm:$0xff] %v2772_v40  ;;  %v2438_v40 = vpop.xlane.xlu0 %2437 }
 0x2ee   : > { %3188 = vst [vmem:[#allocation1 + $0x6] ss:$9 sm:$0xff] %v2773_v61  ;;  %3456 = vperm.xlu0 %4107, %v5576_v34   ;;  %v2779_v34 = vperm.slane %v2504_v8, 4  ;;  %v2506_v61 = vmax.f32 %v2438_v40, 0.0  ;;  %v5793_v40 = vadd.s32 4294967208, %v5412_v36 }
 0x2ef   : > { %3189 = vst [vmem:[#allocation1 + $0x7] ss:$9 sm:$0xff] %v2774_v12 }
 0x2f0   : > { %v2791_v21 = vperm.slane %v2506_v61, 0  ;;  %v2792_v12 = vperm.slane %v2506_v61, 1  ;;  %v2793_v52 = vperm.slane %v2506_v61, 2  ;;  %v2794_v42 = vperm.slane %v2506_v61, 3 }
 0x2f4   : > { %3444 = vperm.xlu1 %4108, %v5423_v19   ;;  %v2436_v19 = vpop.xlane.xlu2 %2435 }
 0x2f5   : > { %v2505_v15 = vmax.f32 %v2436_v19, 0.0  ;;  %v6117_v19 = vld [vmem:[#allocation19_spill] sm:$0xff] }
 0x2f6   : > { %v5762_v18 = vld [vmem:[#allocation1] sm:$0xff] }
 0x2f7   : > { %3191 = vst [vmem:[#allocation1] ss:$9 sm:$0xff] %v2775_v63  ;;  %v2783_v7 = vperm.slane %v2505_v15, 0  ;;  %v2784_v16 = vperm.slane %v2505_v15, 1  ;;  %v2785_v30 = vperm.slane %v2505_v15, 2  ;;  %v2787_v28 = vperm.slane %v2505_v15, 4 }
 0x2f8   : > { %3192 = vst [vmem:[#allocation1 + $0x1] ss:$9 sm:$0xff] %v2776_v49  ;;  %v2788_v4 = vperm.slane %v2505_v15, 5  ;;  %v2789_v25 = vperm.slane %v2505_v15, 6  ;;  %v2790_v32 = vperm.slane %v2505_v15, 7  ;;  %v2795_v63 = vperm.slane %v2506_v61, 4 }
 0x2f9   : > { %3193 = vst [vmem:[#allocation1 + $0x2] ss:$9 sm:$0xff] %v2777_v22  ;;  %v2796_v49 = vperm.slane %v2506_v61, 5  ;;  %v6114_v22 = vld [vmem:[#allocation15_spill] sm:$0xff] }
 0x2fa   : > { %3194 = vst [vmem:[#allocation1 + $0x3] ss:$9 sm:$0xff] %v2778_v2  ;;  %3450 = vperm.xlu2 %4109, %v5498_v60   ;;  %v2786_v60 = vperm.slane %v2505_v15, 3  ;;  %v6115_v46 = vmin.f32 %v5477_v57, %v6114_v22  ;;  %v2797_v2 = vperm.slane %v2506_v61, 6 }
 0x2fb   : > { %3195 = vst [vmem:[#allocation1 + $0x4] ss:$9 sm:$0xff] %v2779_v34 }
 0x2fc   : > { %3196 = vst [vmem:[#allocation1 + $0x5] ss:$9 sm:$0xff] %v2780_v35  ;;  %v2798_v35 = vperm.slane %v2506_v61, 7 }
 0x2fd   : > { %3197 = vst [vmem:[#allocation1 + $0x6] ss:$9 sm:$0xff] %v2781_v9 }
 0x2fe   : > { %3198 = vst [vmem:[#allocation1 + $0x7] ss:$9 sm:$0xff] %v2782_v45  ;;  %v6116_v45 = vld [vmem:[#allocation13_spill] sm:$0xff] }
 0x2ff   : > { %v6118_v15 = vmin.f32 %v6116_v45, %v6117_v19 }
 0x300   : > { %v2440_v34 = vpop.xlane.xlu1 %2439 }
 0x301   : > { %v2507_v9 = vmax.f32 %v2440_v34, 0.0 }
 0x303   : > { %v2799_v55 = vperm.slane %v2507_v9, 0  ;;  %v2801_v33 = vperm.slane %v2507_v9, 2  ;;  %v2802_v57 = vperm.slane %v2507_v9, 3  ;;  %v2805_v50 = vperm.slane %v2507_v9, 6 }
 0x305   : > { %v5771_v41 = vld [vmem:[#allocation1] sm:$0xff] }
 0x306   : > { %3200 = vst [vmem:[#allocation1] ss:$9 sm:$0xff] %v2783_v7  ;;  %v3433_v7 = vpop.permute.xlu2 %3432 }
 0x307   : > { %3201 = vst [vmem:[#allocation1 + $0x1] ss:$9 sm:$0xff] %v2784_v16  ;;  %v2800_v16 = vperm.slane %v2507_v9, 1 }
 0x308   : > { %3202 = vst [vmem:[#allocation1 + $0x2] ss:$9 sm:$0xff] %v2785_v30 }
 0x309   : > { %3203 = vst [vmem:[#allocation1 + $0x3] ss:$9 sm:$0xff] %v2786_v60  ;;  %v6119_v60 = vld [vmem:[#allocation17_spill] sm:$0xff] }
 0x30a   : > { %3204 = vst [vmem:[#allocation1 + $0x4] ss:$9 sm:$0xff] %v2787_v28  ;;  %v6121_v38 = vmin.f32 %v6119_v60, %v6120_v48  ;;  %v2803_v28 = vperm.slane %v2507_v9, 4 }
 0x30b   : > { %3205 = vst [vmem:[#allocation1 + $0x5] ss:$9 sm:$0xff] %v2788_v4  ;;  %v2804_v4 = vperm.slane %v2507_v9, 5 }
 0x30c   : > { %3206 = vst [vmem:[#allocation1 + $0x6] ss:$9 sm:$0xff] %v2789_v25  ;;  %v2806_v25 = vperm.slane %v2507_v9, 7 }
 0x30d   : > { %3207 = vst [vmem:[#allocation1 + $0x7] ss:$9 sm:$0xff] %v2790_v32 }
 0x314   : > { %v5779_v8 = vld [vmem:[#allocation1] sm:$0xff]  ;;  %v2442_v32 = vpop.xlane.xlu2 %2441 }
 0x315   : > { %3209 = vst [vmem:[#allocation1] ss:$9 sm:$0xff] %v2791_v21  ;;  %v2508_v61 = vmax.f32 %v2442_v32, 0.0  ;;  %v5797_v21 = vadd.s32 4294967192, %v5412_v36 }
 0x316   : > { %3210 = vst [vmem:[#allocation1 + $0x1] ss:$9 sm:$0xff] %v2792_v12  ;;  %v3586_v12 = vperm.slane %v3433_v7, %v5793_v40 }
 0x317   : > { %3211 = vst [vmem:[#allocation1 + $0x2] ss:$9 sm:$0xff] %v2793_v52  ;;  %v2807_v52 = vperm.slane %v2508_v61, 0  ;;  %v2811_v45 = vperm.slane %v2508_v61, 4  ;;  %v2812_v19 = vperm.slane %v2508_v61, 5  ;;  %v2813_v7 = vperm.slane %v2508_v61, 6 }
 0x318   : > { %3212 = vst [vmem:[#allocation1 + $0x3] ss:$9 sm:$0xff] %v2794_v42  ;;  %2455 = vmin.xlane.f32.xlu0 %v6115_v46  ;;  %v3439_v42 = vpop.permute.xlu0 %3438  ;;  %v3436_v22 = vpop.permute.xlu1 %3435  ;;  %v2809_v46 = vperm.slane %v2508_v61, 2 }
 0x319   : > { %3213 = vst [vmem:[#allocation1 + $0x4] ss:$9 sm:$0xff] %v2795_v63  ;;  %v2808_v63 = vperm.slane %v2508_v61, 1  ;;  %v3594_v9 = vperm.slane %v3439_v42, %v5797_v21 }
 0x31a   : > { %3214 = vst [vmem:[#allocation1 + $0x5] ss:$9 sm:$0xff] %v2796_v49  ;;  %v5801_v49 = vadd.s32 4294967200, %v5412_v36 }
 0x31b   : > { %3215 = vst [vmem:[#allocation1 + $0x6] ss:$9 sm:$0xff] %v2797_v2  ;;  %v3588_v2 = vsel %vm3587_vm12, %v3586_v12, %v5777_v59  ;;  %v6122_v59 = vld [vmem:[#allocation7_spill] sm:$0xff] }
 0x31c   : > { %3216 = vst [vmem:[#allocation1 + $0x7] ss:$9 sm:$0xff] %v2798_v35  ;;  %v3590_v35 = vperm.slane %v3436_v22, %v5801_v49  ;;  %v3442_v42 = vpop.permute.xlu2 %3441 }
 0x31e   : > { %2451 = vmin.xlane.f32.xlu1 %v6118_v15  ;;  %v3592_v15 = vsel %vm3591_vm13, %v3590_v35, %v3588_v2 }
 0x323   : > { %v5787_v30 = vld [vmem:[#allocation1] sm:$0xff]  ;;  %2453 = vmin.xlane.f32.xlu2 %v6121_v38 }
 0x324   : > { %3218 = vst [vmem:[#allocation1] ss:$9 sm:$0xff] %v2799_v55  ;;  %v3596_v55 = vsel %vm3595_vm14, %v3594_v9, %v3592_v15 }
 0x325   : > { %3219 = vst [vmem:[#allocation1 + $0x1] ss:$9 sm:$0xff] %v2800_v16  ;;  %v2814_v16 = vperm.slane %v2508_v61, 7 }
 0x326   : > { %3220 = vst [vmem:[#allocation1 + $0x2] ss:$9 sm:$0xff] %v2801_v33  ;;  %v2444_v33 = vpop.xlane.xlu0 %2443 }
 0x327   : > { %3221 = vst [vmem:[#allocation1 + $0x3] ss:$9 sm:$0xff] %v2802_v57  ;;  %v6123_v57 = vld [vmem:[#allocation8_spill] sm:$0xff]  ;;  %v2509_v60 = vmax.f32 %v2444_v33, 0.0  ;;  %v5821_v33 = vadd.s32 4294967184, %v5412_v36 }
 0x328   : > { %3222 = vst [vmem:[#allocation1 + $0x4] ss:$9 sm:$0xff] %v2803_v28 }
 0x329   : > { %3223 = vst [vmem:[#allocation1 + $0x5] ss:$9 sm:$0xff] %v2804_v4  ;;  %v2815_v48 = vperm.slane %v2509_v60, 0  ;;  %v2816_v38 = vperm.slane %v2509_v60, 1  ;;  %v2817_v4 = vperm.slane %v2509_v60, 2  ;;  %v2820_v32 = vperm.slane %v2509_v60, 5 }
 0x32a   : > { %3224 = vst [vmem:[#allocation1 + $0x6] ss:$9 sm:$0xff] %v2805_v50  ;;  %v2818_v50 = vperm.slane %v2509_v60, 3  ;;  %v2822_v12 = vperm.slane %v2509_v60, 7 }
 0x32b   : > { %3225 = vst [vmem:[#allocation1 + $0x7] ss:$9 sm:$0xff] %v2806_v25  ;;  %v2819_v25 = vperm.slane %v2509_v60, 4 }
 0x32c   : > { %3465 = vperm.xlu0 %4107, %v5717_v17   ;;  %v2810_v17 = vperm.slane %v2508_v61, 3  ;;  %v2821_v61 = vperm.slane %v2509_v60, 6 }
 0x32e   : > { %v3448_v60 = vpop.permute.xlu0 %3447 }
 0x332   : > { %v5805_v34 = vld [vmem:[#allocation1] sm:$0xff] }
 0x333   : > { %3227 = vst [vmem:[#allocation1] ss:$9 sm:$0xff] %v2807_v52 }
 0x334   : > { %3228 = vst [vmem:[#allocation1 + $0x1] ss:$9 sm:$0xff] %v2808_v63 }
 0x335   : > { %3229 = vst [vmem:[#allocation1 + $0x2] ss:$9 sm:$0xff] %v2809_v46 }
 0x336   : > { %3230 = vst [vmem:[#allocation1 + $0x3] ss:$9 sm:$0xff] %v2810_v17 }
 0x337   : > { %3453 = vperm.xlu1 %4108, %v6122_v59   ;;  %3231 = vst [vmem:[#allocation1 + $0x4] ss:$9 sm:$0xff] %v2811_v45 }
 0x338   : > { %3232 = vst [vmem:[#allocation1 + $0x5] ss:$9 sm:$0xff] %v2812_v19  ;;  %v6124_v19 = vld [vmem:[#allocation9_spill] sm:$0xff] }
 0x339   : > { %3233 = vst [vmem:[#allocation1 + $0x6] ss:$9 sm:$0xff] %v2813_v7  ;;  %v6125_v15 = vmin.f32 %v6124_v19, %v5508_v14 }
 0x33a   : > { %3234 = vst [vmem:[#allocation1 + $0x7] ss:$9 sm:$0xff] %v2814_v16 }
 0x33b   : > { %3459 = vperm.xlu2 %4109, %v6123_v57  }
 0x341   : > { %v5813_v28 = vld [vmem:[#allocation1] sm:$0xff] }
 0x342   : > { %3236 = vst [vmem:[#allocation1] ss:$9 sm:$0xff] %v2815_v48  ;;  %v3598_v48 = vperm.slane %v3442_v42, %v5821_v33 }
 0x343   : > { %3237 = vst [vmem:[#allocation1 + $0x1] ss:$9 sm:$0xff] %v2816_v38 }
 0x344   : > { %3238 = vst [vmem:[#allocation1 + $0x2] ss:$9 sm:$0xff] %v2817_v4  ;;  %v6126_v4 = vld [vmem:[#allocation20_spill] sm:$0xff] }
 0x345   : > { %3239 = vst [vmem:[#allocation1 + $0x3] ss:$9 sm:$0xff] %v2818_v50  ;;  %v6127_v14 = vmin.f32 %v6126_v4, %v5475_v53  ;;  %v3605_v50 = vperm.slane %v3448_v60, %v5412_v36 }
 0x346   : > { %3240 = vst [vmem:[#allocation1 + $0x4] ss:$9 sm:$0xff] %v2819_v25 }
 0x347   : > { %3241 = vst [vmem:[#allocation1 + $0x5] ss:$9 sm:$0xff] %v2820_v32  ;;  %v6128_v32 = vld [vmem:[#allocation11_spill] sm:$0xff] }
 0x348   : > { %3242 = vst [vmem:[#allocation1 + $0x6] ss:$9 sm:$0xff] %v2821_v61 }
 0x349   : > { %3243 = vst [vmem:[#allocation1 + $0x7] ss:$9 sm:$0xff] %v2822_v12  ;;  %v3600_v12 = vsel %vm3599_vm15, %v3598_v48, %v3596_v55 }
 0x34e   : > { %v2446_v52 = vpop.xlane.xlu1 %2445 }
 0x34f   : > { %v2510_v63 = vmax.f32 %v2446_v52, 0.0 }
 0x350   : > { %v5815_v17 = vld [vmem:[#allocation1] sm:$0xff] }
 0x351   : > { %v2823_v22 = vperm.slane %v2510_v63, 0  ;;  %v2824_v46 = vperm.slane %v2510_v63, 1  ;;  %v2825_v2 = vperm.slane %v2510_v63, 2  ;;  %v2826_v35 = vperm.slane %v2510_v63, 3 }
 0x352   : > { %v2827_v9 = vperm.slane %v2510_v63, 4  ;;  %v2828_v45 = vperm.slane %v2510_v63, 5  ;;  %v2829_v7 = vperm.slane %v2510_v63, 6  ;;  %v2830_v59 = vperm.slane %v2510_v63, 7 }
 0x353   : > { %3245 = vst [vmem:[#allocation1] ss:$9 sm:$0xff] %v2823_v22  ;;  %v5833_v22 = vadd.s32 4294967176, %v5412_v36 }
 0x354   : > { %3246 = vst [vmem:[#allocation1 + $0x1] ss:$9 sm:$0xff] %v2824_v46 }
 0x355   : > { %3247 = vst [vmem:[#allocation1 + $0x2] ss:$9 sm:$0xff] %v2825_v2  ;;  %v2448_v16 = vpop.xlane.xlu2 %2447  ;;  %v6129_v2 = vld [vmem:[#allocation5_spill] sm:$0xff] }
 0x356   : > { %2461 = vmin.xlane.f32.xlu0 %v6125_v15  ;;  %3248 = vst [vmem:[#allocation1 + $0x3] ss:$9 sm:$0xff] %v2826_v35  ;;  %v2511_v57 = vmax.f32 %v2448_v16, 0.0  ;;  %v6130_v35 = vmin.f32 %v6129_v2, %v5490_v29 }
 0x357   : > { %3249 = vst [vmem:[#allocation1 + $0x4] ss:$9 sm:$0xff] %v2827_v9 }
 0x358   : > { %3250 = vst [vmem:[#allocation1 + $0x5] ss:$9 sm:$0xff] %v2828_v45  ;;  %v2831_v25 = vperm.slane %v2511_v57, 0  ;;  %v2832_v63 = vperm.slane %v2511_v57, 1  ;;  %v2833_v42 = vperm.slane %v2511_v57, 2  ;;  %v2834_v53 = vperm.slane %v2511_v57, 3 }
 0x359   : > { %3251 = vst [vmem:[#allocation1 + $0x6] ss:$9 sm:$0xff] %v2829_v7  ;;  %v2835_v9 = vperm.slane %v2511_v57, 4  ;;  %v2836_v45 = vperm.slane %v2511_v57, 5  ;;  %v2837_v15 = vperm.slane %v2511_v57, 6  ;;  %v2838_v7 = vperm.slane %v2511_v57, 7 }
 0x35a   : > { %3252 = vst [vmem:[#allocation1 + $0x7] ss:$9 sm:$0xff] %v2830_v59  ;;  %v2450_v59 = vpop.xlane.xlu0 %2449 }
 0x35b   : > { %v2512_v29 = vmax.f32 %v2450_v59, 0.0 }
 0x35d   : > { %v3451_v38 = vpop.permute.xlu2 %3450  ;;  %v2839_v60 = vperm.slane %v2512_v29, 0  ;;  %v2840_v48 = vperm.slane %v2512_v29, 1  ;;  %v2841_v4 = vperm.slane %v2512_v29, 2  ;;  %v2844_v57 = vperm.slane %v2512_v29, 5 }
 0x35e   : > { %v3606_v61 = vperm.slane %v3451_v38, %v6128_v32 }
 0x360   : > { %v5836_v46 = vsel %vm3547_vm2, %v3606_v61, %v3605_v50  ;;  %v2843_v50 = vperm.slane %v2512_v29, 4  ;;  %v2846_v61 = vperm.slane %v2512_v29, 7 }
 0x361   : > { %2457 = vmin.xlane.f32.xlu1 %v6127_v14  ;;  %v5830_v52 = vld [vmem:[#allocation1] sm:$0xff]  ;;  %v2842_v14 = vperm.slane %v2512_v29, 3 }
 0x362   : > { %3254 = vst [vmem:[#allocation1] ss:$9 sm:$0xff] %v2831_v25  ;;  %v2845_v25 = vperm.slane %v2512_v29, 6  ;;  %v3457_v59 = vpop.permute.xlu0 %3456 }
 0x363   : > { %3255 = vst [vmem:[#allocation1 + $0x1] ss:$9 sm:$0xff] %v2832_v63 }
 0x364   : > { %2459 = vmin.xlane.f32.xlu2 %v6130_v35  ;;  %3256 = vst [vmem:[#allocation1 + $0x2] ss:$9 sm:$0xff] %v2833_v42  ;;  %v6131_v35 = vld [vmem:[#allocation4_spill] sm:$0xff] }
 0x365   : > { %3257 = vst [vmem:[#allocation1 + $0x3] ss:$9 sm:$0xff] %v2834_v53 }
 0x366   : > { %v3445_v55 = vpop.permute.xlu1 %3444  ;;  %3258 = vst [vmem:[#allocation1 + $0x4] ss:$9 sm:$0xff] %v2835_v9  ;;  %v6132_v9 = vmin.f32 %v6131_v35, %v5567_v47  ;;  %v6138_v35 = vld [vmem:[#allocation3_spill] sm:$0xff] }
 0x367   : > { %v3602_v19 = vperm.slane %v3445_v55, %v5833_v22  ;;  %3259 = vst [vmem:[#allocation1 + $0x5] ss:$9 sm:$0xff] %v2836_v45 }
 0x368   : > { %3260 = vst [vmem:[#allocation1 + $0x6] ss:$9 sm:$0xff] %v2837_v15 }
 0x369   : > { %v5843_v16 = vsel %vm3603_vm0, %v3602_v19, %v3600_v12  ;;  %3261 = vst [vmem:[#allocation1 + $0x7] ss:$9 sm:$0xff] %v2838_v7 }
 0x36a   : > { %3474 = vperm.xlu0 %4107, %v5771_v41  }
 0x370   : > { %v5846_v38 = vld [vmem:[#allocation1] sm:$0xff] }
 0x371   : > { %3263 = vst [vmem:[#allocation1] ss:$9 sm:$0xff] %v2839_v60 }
 0x372   : > { %3264 = vst [vmem:[#allocation1 + $0x1] ss:$9 sm:$0xff] %v2840_v48  ;;  %v6133_v48 = vld [vmem:[#allocation22_spill] sm:$0xff] }
 0x373   : > { %3265 = vst [vmem:[#allocation1 + $0x2] ss:$9 sm:$0xff] %v2841_v4  ;;  %v6134_v4 = vmin.f32 %v6133_v48, %v5524_v26  ;;  %v6137_v26 = vld [vmem:[#allocation24_spill] sm:$0xff] }
 0x374   : > { %3266 = vst [vmem:[#allocation1 + $0x3] ss:$9 sm:$0xff] %v2842_v14 }
 0x375   : > { %3267 = vst [vmem:[#allocation1 + $0x4] ss:$9 sm:$0xff] %v2843_v50 }
 0x376   : > { %3268 = vst [vmem:[#allocation1 + $0x5] ss:$9 sm:$0xff] %v2844_v57  ;;  %v6135_v57 = vld [vmem:[#allocation28_spill] sm:$0xff] }
 0x377   : > { %3269 = vst [vmem:[#allocation1 + $0x6] ss:$9 sm:$0xff] %v2845_v25  ;;  %v6136_v25 = vmin.f32 %v6135_v57, %v5545_v13 }
 0x378   : > { %3270 = vst [vmem:[#allocation1 + $0x7] ss:$9 sm:$0xff] %v2846_v61 }
 0x37a   : > { %3462 = vperm.xlu1 %4108, %v5686_v27  }
 0x37c   : > { %3468 = vperm.xlu2 %4109, %v5753_v58  }
 0x37f   : > { %v5850_v2 = vld [vmem:[#allocation1] sm:$0xff] }
 0x391   : > { %v2452_v41 = vpop.xlane.xlu1 %2451 }
 0x392   : > { %v2513_v12 = vmax.f32 %v2452_v41, 0.0 }
 0x394   : > { %v2847_v63 = vperm.slane %v2513_v12, 0  ;;  %v2848_v42 = vperm.slane %v2513_v12, 1  ;;  %v2849_v53 = vperm.slane %v2513_v12, 2  ;;  %2467 = vmin.xlane.f32.xlu0 %v6132_v9  ;;  %v2850_v55 = vperm.slane %v2513_v12, 3 }
 0x395   : > { %v2851_v45 = vperm.slane %v2513_v12, 4  ;;  %v2852_v19 = vperm.slane %v2513_v12, 5  ;;  %v2853_v15 = vperm.slane %v2513_v12, 6  ;;  %v2854_v27 = vperm.slane %v2513_v12, 7 }
 0x396   : > { %3272 = vst [vmem:[#allocation1] ss:$9 sm:$0xff] %v2847_v63  ;;  %v2454_v58 = vpop.xlane.xlu2 %2453  ;;  %v3610_v9 = vperm.slane %v3457_v59, %v6138_v35 }
 0x397   : > { %3273 = vst [vmem:[#allocation1 + $0x1] ss:$9 sm:$0xff] %v2848_v42  ;;  %v2514_v7 = vmax.f32 %v2454_v58, 0.0 }
 0x398   : > { %3274 = vst [vmem:[#allocation1 + $0x2] ss:$9 sm:$0xff] %v2849_v53 }
 0x399   : > { %3275 = vst [vmem:[#allocation1 + $0x3] ss:$9 sm:$0xff] %v2850_v55  ;;  %v2855_v29 = vperm.slane %v2514_v7, 0  ;;  %v2856_v47 = vperm.slane %v2514_v7, 1  ;;  %v2857_v14 = vperm.slane %v2514_v7, 2  ;;  %v2858_v50 = vperm.slane %v2514_v7, 3  ;;  %v2456_v55 = vpop.xlane.xlu0 %2455 }
 0x39a   : > { %3276 = vst [vmem:[#allocation1 + $0x4] ss:$9 sm:$0xff] %v2851_v45  ;;  %v2859_v61 = vperm.slane %v2514_v7, 4  ;;  %v2860_v41 = vperm.slane %v2514_v7, 5  ;;  %v2861_v12 = vperm.slane %v2514_v7, 6  ;;  %v2862_v42 = vperm.slane %v2514_v7, 7 }
 0x39b   : > { %3277 = vst [vmem:[#allocation1 + $0x5] ss:$9 sm:$0xff] %v2852_v19  ;;  %v2515_v19 = vmax.f32 %v2456_v55, 0.0 }
 0x39c   : > { %3278 = vst [vmem:[#allocation1 + $0x6] ss:$9 sm:$0xff] %v2853_v15 }
 0x39d   : > { %3279 = vst [vmem:[#allocation1 + $0x7] ss:$9 sm:$0xff] %v2854_v27  ;;  %v2863_v15 = vperm.slane %v2515_v19, 0  ;;  %v2865_v58 = vperm.slane %v2515_v19, 2  ;;  %v2866_v7 = vperm.slane %v2515_v19, 3  ;;  %v2868_v59 = vperm.slane %v2515_v19, 5 }
 0x39e   : > { %v2870_v48 = vperm.slane %v2515_v19, 7 }
 0x3a4   : > { %v5855_v60 = vld [vmem:[#allocation1] sm:$0xff]  ;;  %2463 = vmin.xlane.f32.xlu1 %v6134_v4 }
 0x3a5   : > { %3281 = vst [vmem:[#allocation1] ss:$9 sm:$0xff] %v2855_v29  ;;  %2465 = vmin.xlane.f32.xlu2 %v6136_v25  ;;  %v2867_v29 = vperm.slane %v2515_v19, 4 }
 0x3a6   : > { %3282 = vst [vmem:[#allocation1 + $0x1] ss:$9 sm:$0xff] %v2856_v47  ;;  %v2869_v47 = vperm.slane %v2515_v19, 6 }
 0x3a7   : > { %3283 = vst [vmem:[#allocation1 + $0x2] ss:$9 sm:$0xff] %v2857_v14  ;;  %v3460_v14 = vpop.permute.xlu2 %3459 }
 0x3a8   : > { %3284 = vst [vmem:[#allocation1 + $0x3] ss:$9 sm:$0xff] %v2858_v50  ;;  %3483 = vperm.xlu0 %4107, %v5805_v34   ;;  %v2864_v34 = vperm.slane %v2515_v19, 1 }
 0x3a9   : > { %3285 = vst [vmem:[#allocation1 + $0x4] ss:$9 sm:$0xff] %v2859_v61  ;;  %v3454_v63 = vpop.permute.xlu1 %3453 }
 0x3aa   : > { %3286 = vst [vmem:[#allocation1 + $0x5] ss:$9 sm:$0xff] %v2860_v41  ;;  %v3608_v53 = vperm.slane %v3454_v63, %v6137_v26 }
 0x3ab   : > { %3287 = vst [vmem:[#allocation1 + $0x6] ss:$9 sm:$0xff] %v2861_v12 }
 0x3ac   : > { %3288 = vst [vmem:[#allocation1 + $0x7] ss:$9 sm:$0xff] %v2862_v42  ;;  %v3609_v13 = vsel %vm3551_vm3, %v3608_v53, %v5836_v46 }
 0x3ad   : > { %v3611_v45 = vsel %vm3555_vm4, %v3610_v9, %v3609_v13  ;;  %v3466_v9 = vpop.permute.xlu0 %3465 }
 0x3ae   : > { %v3616_v37 = vperm.slane %v3466_v9, %v5721_v1 }
 0x3b3   : > { %v5869_v27 = vld [vmem:[#allocation1] sm:$0xff] }
 0x3b4   : > { %3290 = vst [vmem:[#allocation1] ss:$9 sm:$0xff] %v2863_v15 }
 0x3b5   : > { %3291 = vst [vmem:[#allocation1 + $0x1] ss:$9 sm:$0xff] %v2864_v34  ;;  %v6140_v34 = vmin.f32 %v5621_v23, %v5591_v6 }
 0x3b6   : > { %3292 = vst [vmem:[#allocation1 + $0x2] ss:$9 sm:$0xff] %v2865_v58 }
 0x3b7   : > { %3293 = vst [vmem:[#allocation1 + $0x3] ss:$9 sm:$0xff] %v2866_v7 }
 0x3b8   : > { %3294 = vst [vmem:[#allocation1 + $0x4] ss:$9 sm:$0xff] %v2867_v29 }
 0x3b9   : > { %3295 = vst [vmem:[#allocation1 + $0x5] ss:$9 sm:$0xff] %v2868_v59 }
 0x3ba   : > { %3296 = vst [vmem:[#allocation1 + $0x6] ss:$9 sm:$0xff] %v2869_v47  ;;  %v6141_v47 = vld [vmem:[#allocation6_spill] sm:$0xff] }
 0x3bb   : > { %3297 = vst [vmem:[#allocation1 + $0x7] ss:$9 sm:$0xff] %v2870_v48 }
 0x3bd   : > { %3471 = vperm.xlu1 %4108, %v5762_v18   ;;  %3477 = vperm.xlu2 %4109, %v5779_v8  }
 0x3c2   : > { %v5876_v61 = vld [vmem:[#allocation1] sm:$0xff] }
 0x3d2   : > { %2473 = vmin.xlane.f32.xlu0 %v2226_v44  ;;  %v6139_v44 = vld [vmem:[#allocation25_spill] sm:$0xff] }
 0x3d3   : > { %v3612_v42 = vperm.slane %v3460_v14, %v6139_v44 }
 0x3d4   : > { %v2458_v46 = vpop.xlane.xlu1 %2457 }
 0x3d5   : > { %v2516_v4 = vmax.f32 %v2458_v46, 0.0  ;;  %v3613_v53 = vsel %vm3559_vm5, %v3612_v42, %v3611_v45 }
 0x3d7   : > { %v2871_v50 = vperm.slane %v2516_v4, 0  ;;  %v2872_v57 = vperm.slane %v2516_v4, 1  ;;  %v2873_v25 = vperm.slane %v2516_v4, 2  ;;  %v2874_v41 = vperm.slane %v2516_v4, 3  ;;  %v2460_v62 = vpop.xlane.xlu2 %2459 }
 0x3d8   : > { %v2875_v12 = vperm.slane %v2516_v4, 4  ;;  %v2876_v63 = vperm.slane %v2516_v4, 5  ;;  %v2877_v18 = vperm.slane %v2516_v4, 6  ;;  %v2878_v8 = vperm.slane %v2516_v4, 7 }
 0x3d9   : > { %3299 = vst [vmem:[#allocation1] ss:$9 sm:$0xff] %v2871_v50  ;;  %v2517_v10 = vmax.f32 %v2460_v62, 0.0 }
 0x3da   : > { %3300 = vst [vmem:[#allocation1 + $0x1] ss:$9 sm:$0xff] %v2872_v57 }
 0x3db   : > { %3301 = vst [vmem:[#allocation1 + $0x2] ss:$9 sm:$0xff] %v2873_v25  ;;  %v2879_v55 = vperm.slane %v2517_v10, 0  ;;  %v2880_v19 = vperm.slane %v2517_v10, 1  ;;  %v2881_v15 = vperm.slane %v2517_v10, 2  ;;  %v2882_v58 = vperm.slane %v2517_v10, 3 }
 0x3dc   : > { %3302 = vst [vmem:[#allocation1 + $0x3] ss:$9 sm:$0xff] %v2874_v41  ;;  %v2883_v7 = vperm.slane %v2517_v10, 4  ;;  %v2884_v45 = vperm.slane %v2517_v10, 5  ;;  %v2885_v29 = vperm.slane %v2517_v10, 6  ;;  %v2886_v59 = vperm.slane %v2517_v10, 7 }
 0x3dd   : > { %3303 = vst [vmem:[#allocation1 + $0x4] ss:$9 sm:$0xff] %v2875_v12 }
 0x3de   : > { %3304 = vst [vmem:[#allocation1 + $0x5] ss:$9 sm:$0xff] %v2876_v63 }
 0x3df   : > { %3305 = vst [vmem:[#allocation1 + $0x6] ss:$9 sm:$0xff] %v2877_v18 }
 0x3e0   : > { %3306 = vst [vmem:[#allocation1 + $0x7] ss:$9 sm:$0xff] %v2878_v8  ;;  %v3469_v8 = vpop.permute.xlu2 %3468 }
 0x3e6   : > { %3492 = vperm.xlu0 %4107, %v5830_v52   ;;  %2471 = vmin.xlane.f32.xlu2 %v2225_v31  ;;  %v2462_v31 = vpop.xlane.xlu0 %2461 }
 0x3e7   : > { %v3307_v13 = vld [vmem:[#allocation1] sm:$0xff]  ;;  %2469 = vmin.xlane.f32.xlu1 %v6140_v34  ;;  %v2518_v48 = vmax.f32 %v2462_v31, 0.0  ;;  %v3618_v34 = vperm.slane %v3469_v8, %v5711_v5 }
 0x3e8   : > { %3308 = vst [vmem:[#allocation1] ss:$9 sm:$0xff] %v2879_v55 }
 0x3e9   : > { %3309 = vst [vmem:[#allocation1 + $0x1] ss:$9 sm:$0xff] %v2880_v19  ;;  %v2887_v46 = vperm.slane %v2518_v48, 0  ;;  %v2888_v4 = vperm.slane %v2518_v48, 1  ;;  %v2889_v50 = vperm.slane %v2518_v48, 2  ;;  %v2890_v57 = vperm.slane %v2518_v48, 3 }
 0x3ea   : > { %3310 = vst [vmem:[#allocation1 + $0x2] ss:$9 sm:$0xff] %v2881_v15  ;;  %v2891_v25 = vperm.slane %v2518_v48, 4  ;;  %v2892_v41 = vperm.slane %v2518_v48, 5  ;;  %v2894_v12 = vperm.slane %v2518_v48, 7 }
 0x3eb   : > { %3311 = vst [vmem:[#allocation1 + $0x3] ss:$9 sm:$0xff] %v2882_v58 }
 0x3ec   : > { %3312 = vst [vmem:[#allocation1 + $0x4] ss:$9 sm:$0xff] %v2883_v7  ;;  %v3463_v52 = vpop.permute.xlu1 %3462 }
 0x3ed   : > { %3313 = vst [vmem:[#allocation1 + $0x5] ss:$9 sm:$0xff] %v2884_v45  ;;  %v3614_v39 = vperm.slane %v3463_v52, %v6141_v47 }
 0x3ee   : > { %3314 = vst [vmem:[#allocation1 + $0x6] ss:$9 sm:$0xff] %v2885_v29  ;;  %3501 = vperm.xlu0 %4107, %v5855_v60   ;;  %v2893_v60 = vperm.slane %v2518_v48, 6 }
 0x3ef   : > { %3315 = vst [vmem:[#allocation1 + $0x7] ss:$9 sm:$0xff] %v2886_v59  ;;  %v3615_v6 = vsel %vm3563_vm6, %v3614_v39, %v3613_v53 }
 0x3f0   : > { %v3617_v23 = vsel %vm3567_vm7, %v3616_v37, %v3615_v6  ;;  %v3475_v37 = vpop.permute.xlu0 %3474 }
 0x3f1   : > { %v3619_v29 = vsel %vm3571_vm8, %v3618_v34, %v3617_v23  ;;  %v3622_v23 = vperm.slane %v3475_v37, %v5769_v3 }
 0x3f6   : > { %v5892_v14 = vld [vmem:[#allocation1] sm:$0xff]  ;;  %3510 = vperm.xlu0 %4107, %v3307_v13  }
 0x3f7   : > { %3317 = vst [vmem:[#allocation1] ss:$9 sm:$0xff] %v2887_v46 }
 0x3f8   : > { %3318 = vst [vmem:[#allocation1 + $0x1] ss:$9 sm:$0xff] %v2888_v4 }
 0x3f9   : > { %3319 = vst [vmem:[#allocation1 + $0x2] ss:$9 sm:$0xff] %v2889_v50 }
 0x3fa   : > { %3320 = vst [vmem:[#allocation1 + $0x3] ss:$9 sm:$0xff] %v2890_v57 }
 0x3fb   : > { %3321 = vst [vmem:[#allocation1 + $0x4] ss:$9 sm:$0xff] %v2891_v25 }
 0x3fc   : > { %3322 = vst [vmem:[#allocation1 + $0x5] ss:$9 sm:$0xff] %v2892_v41 }
 0x3fd   : > { %3323 = vst [vmem:[#allocation1 + $0x6] ss:$9 sm:$0xff] %v2893_v60 }
 0x3fe   : > { %3324 = vst [vmem:[#allocation1 + $0x7] ss:$9 sm:$0xff] %v2894_v12  ;;  %3486 = vperm.xlu2 %4109, %v5813_v28  }
 0x400   : > { %3480 = vperm.xlu1 %4108, %v5787_v30  }
 0x405   : > { %v5896_v53 = vld [vmem:[#allocation1] sm:$0xff] }
 0x417   : > { %v2464_v63 = vpop.xlane.xlu1 %2463 }
 0x418   : > { %v2519_v18 = vmax.f32 %v2464_v63, 0.0  ;;  %v2466_v30 = vpop.xlane.xlu2 %2465 }
 0x419   : > { %v2520_v28 = vmax.f32 %v2466_v30, 0.0 }
 0x41a   : > { %v2895_v62 = vperm.slane %v2519_v18, 0  ;;  %v2896_v10 = vperm.slane %v2519_v18, 1  ;;  %v2897_v42 = vperm.slane %v2519_v18, 2  ;;  %v2898_v9 = vperm.slane %v2519_v18, 3 }
 0x41b   : > { %v2899_v55 = vperm.slane %v2519_v18, 4  ;;  %v2900_v13 = vperm.slane %v2519_v18, 5  ;;  %v2901_v19 = vperm.slane %v2519_v18, 6  ;;  %v2902_v15 = vperm.slane %v2519_v18, 7 }
 0x41c   : > { %3326 = vst [vmem:[#allocation1] ss:$9 sm:$0xff] %v2895_v62  ;;  %v2903_v58 = vperm.slane %v2520_v28, 0  ;;  %v2904_v7 = vperm.slane %v2520_v28, 1  ;;  %v2905_v52 = vperm.slane %v2520_v28, 2  ;;  %v2906_v59 = vperm.slane %v2520_v28, 3 }
 0x41d   : > { %3327 = vst [vmem:[#allocation1 + $0x1] ss:$9 sm:$0xff] %v2896_v10  ;;  %v2907_v39 = vperm.slane %v2520_v28, 4  ;;  %v2908_v31 = vperm.slane %v2520_v28, 5  ;;  %v2909_v24 = vperm.slane %v2520_v28, 6 }
 0x41e   : > { %3328 = vst [vmem:[#allocation1 + $0x2] ss:$9 sm:$0xff] %v2897_v42 }
 0x41f   : > { %3329 = vst [vmem:[#allocation1 + $0x3] ss:$9 sm:$0xff] %v2898_v9 }
 0x420   : > { %3330 = vst [vmem:[#allocation1 + $0x4] ss:$9 sm:$0xff] %v2899_v55 }
 0x421   : > { %3331 = vst [vmem:[#allocation1 + $0x5] ss:$9 sm:$0xff] %v2900_v13 }
 0x422   : > { %3332 = vst [vmem:[#allocation1 + $0x6] ss:$9 sm:$0xff] %v2901_v19 }
 0x423   : > { %3333 = vst [vmem:[#allocation1 + $0x7] ss:$9 sm:$0xff] %v2902_v15 }
 0x427   : > { %2477 = vmin.xlane.f32.xlu2 %v2228_v0  ;;  %v2910_v0 = vperm.slane %v2520_v28, 7 }
 0x42a   : > { %v3334_v45 = vld [vmem:[#allocation1] sm:$0xff]  ;;  %2475 = vmin.xlane.f32.xlu1 %v2227_v20  ;;  %v2468_v20 = vpop.xlane.xlu0 %2467 }
 0x42b   : > { %3519 = vperm.xlu0 %4107, %v3334_v45   ;;  %3335 = vst [vmem:[#allocation1] ss:$9 sm:$0xff] %v2903_v58  ;;  %v2521_v48 = vmax.f32 %v2468_v20, 0.0 }
 0x42c   : > { %3336 = vst [vmem:[#allocation1 + $0x1] ss:$9 sm:$0xff] %v2904_v7 }
 0x42d   : > { %3337 = vst [vmem:[#allocation1 + $0x2] ss:$9 sm:$0xff] %v2905_v52  ;;  %v2911_v46 = vperm.slane %v2521_v48, 0  ;;  %v2912_v4 = vperm.slane %v2521_v48, 1  ;;  %v2913_v57 = vperm.slane %v2521_v48, 2  ;;  %v2914_v25 = vperm.slane %v2521_v48, 3 }
 0x42e   : > { %3338 = vst [vmem:[#allocation1 + $0x3] ss:$9 sm:$0xff] %v2906_v59  ;;  %v2915_v41 = vperm.slane %v2521_v48, 4  ;;  %v2916_v60 = vperm.slane %v2521_v48, 5  ;;  %v2918_v12 = vperm.slane %v2521_v48, 7 }
 0x42f   : > { %3339 = vst [vmem:[#allocation1 + $0x4] ss:$9 sm:$0xff] %v2907_v39  ;;  %v3472_v51 = vpop.permute.xlu1 %3471 }
 0x430   : > { %3340 = vst [vmem:[#allocation1 + $0x5] ss:$9 sm:$0xff] %v2908_v31  ;;  %v3620_v6 = vperm.slane %v3472_v51, %v5757_v56 }
 0x431   : > { %3341 = vst [vmem:[#allocation1 + $0x6] ss:$9 sm:$0xff] %v2909_v24 }
 0x432   : > { %3342 = vst [vmem:[#allocation1 + $0x7] ss:$9 sm:$0xff] %v2910_v0  ;;  %v3621_v43 = vsel %vm3575_vm9, %v3620_v6, %v3619_v29  ;;  %v3484_v15 = vpop.permute.xlu0 %3483 }
 0x433   : > { %v3623_v11 = vsel %vm3579_vm10, %v3622_v23, %v3621_v43  ;;  %v3628_v37 = vperm.slane %v3484_v15, %v5801_v49 }
 0x439   : > { %v3343_v50 = vld [vmem:[#allocation1] sm:$0xff] }
 0x43a   : > { %3344 = vst [vmem:[#allocation1] ss:$9 sm:$0xff] %v2911_v46 }
 0x43b   : > { %3345 = vst [vmem:[#allocation1 + $0x1] ss:$9 sm:$0xff] %v2912_v4 }
 0x43c   : > { %3346 = vst [vmem:[#allocation1 + $0x2] ss:$9 sm:$0xff] %v2913_v57 }
 0x43d   : > { %3347 = vst [vmem:[#allocation1 + $0x3] ss:$9 sm:$0xff] %v2914_v25 }
 0x43e   : > { %3348 = vst [vmem:[#allocation1 + $0x4] ss:$9 sm:$0xff] %v2915_v41 }
 0x43f   : > { %3495 = vperm.xlu2 %4109, %v5846_v38   ;;  %v2917_v38 = vperm.slane %v2521_v48, 6  ;;  %3349 = vst [vmem:[#allocation1 + $0x5] ss:$9 sm:$0xff] %v2916_v60 }
 0x440   : > { %3351 = vst [vmem:[#allocation1 + $0x7] ss:$9 sm:$0xff] %v2918_v12 }
 0x441   : > { %3350 = vst [vmem:[#allocation1 + $0x6] ss:$9 sm:$0xff] %v2917_v38 }
 0x443   : > { %3489 = vperm.xlu1 %4108, %v5815_v17  }
 0x445   : > { %v2474_v24 = vpop.xlane.xlu0 %2473 }
 0x446   : > { %v2524_v6 = vmax.f32 %v2474_v24, 0.0 }
 0x447   : > { %3504 = vperm.xlu2 %4109, %v5869_v27  }
 0x448   : > { %v3352_v10 = vld [vmem:[#allocation1] sm:$0xff]  ;;  %v2935_v23 = vperm.slane %v2524_v6, 0  ;;  %v2936_v43 = vperm.slane %v2524_v6, 1  ;;  %v2937_v20 = vperm.slane %v2524_v6, 2  ;;  %v2938_v48 = vperm.slane %v2524_v6, 3 }
 0x449   : > { %v2939_v46 = vperm.slane %v2524_v6, 4  ;;  %v2940_v4 = vperm.slane %v2524_v6, 5  ;;  %v2942_v57 = vperm.slane %v2524_v6, 7 }
 0x44b   : > { %3498 = vperm.xlu1 %4108, %v5850_v2   ;;  %v3478_v2 = vpop.permute.xlu2 %3477 }
 0x44c   : > { %v3624_v55 = vperm.slane %v3478_v2, %v5766_v54 }
 0x44f   : > { %3513 = vperm.xlu2 %4109, %v5892_v14  }
 0x453   : > { %3507 = vperm.xlu1 %4108, %v5876_v61  }
 0x457   : > { %3522 = vperm.xlu2 %4109, %v3343_v50   ;;  %v2941_v50 = vperm.slane %v2524_v6, 6 }
 0x458   : > { %v3493_v15 = vpop.permute.xlu0 %3492 }
 0x459   : > { %v2472_v13 = vpop.xlane.xlu2 %2471 }
 0x45a   : > { %v2470_v17 = vpop.xlane.xlu1 %2469  ;;  %v2523_v19 = vmax.f32 %v2472_v13, 0.0 }
 0x45b   : > { %v2522_v27 = vmax.f32 %v2470_v17, 0.0  ;;  %3516 = vperm.xlu1 %4108, %v5896_v53   ;;  %v3625_v53 = vsel %vm3583_vm11, %v3624_v55, %v3623_v11 }
 0x45c   : > { %v2927_v30 = vperm.slane %v2523_v19, 0  ;;  %v2928_v28 = vperm.slane %v2523_v19, 1  ;;  %v2929_v58 = vperm.slane %v2523_v19, 2  ;;  %v2930_v7 = vperm.slane %v2523_v19, 3 }
 0x45d   : > { %v2919_v63 = vperm.slane %v2522_v27, 0  ;;  %v2920_v18 = vperm.slane %v2522_v27, 1  ;;  %v2921_v8 = vperm.slane %v2522_v27, 2  ;;  %v2922_v62 = vperm.slane %v2522_v27, 3 }
 0x45e   : > { %v2923_v42 = vperm.slane %v2522_v27, 4  ;;  %v2924_v9 = vperm.slane %v2522_v27, 5  ;;  %v2925_v14 = vperm.slane %v2522_v27, 6  ;;  %v2926_v61 = vperm.slane %v2522_v27, 7 }
 0x45f   : > { %3353 = vst [vmem:[#allocation1] ss:$9 sm:$0xff] %v2919_v63  ;;  %v2931_v45 = vperm.slane %v2523_v19, 4  ;;  %v2932_v29 = vperm.slane %v2523_v19, 5  ;;  %v2933_v59 = vperm.slane %v2523_v19, 6  ;;  %v2934_v31 = vperm.slane %v2523_v19, 7 }
 0x460   : > { %3354 = vst [vmem:[#allocation1 + $0x1] ss:$9 sm:$0xff] %v2920_v18  ;;  %v3502_v6 = vpop.permute.xlu0 %3501 }
 0x461   : > { %3355 = vst [vmem:[#allocation1 + $0x2] ss:$9 sm:$0xff] %v2921_v8  ;;  %v3487_v60 = vpop.permute.xlu2 %3486 }
 0x462   : > { %3356 = vst [vmem:[#allocation1 + $0x3] ss:$9 sm:$0xff] %v2922_v62  ;;  %v3630_v12 = vperm.slane %v3487_v60, %v5797_v21 }
 0x463   : > { %3525 = vperm.xlu1 %4108, %v3352_v10   ;;  %3357 = vst [vmem:[#allocation1 + $0x4] ss:$9 sm:$0xff] %v2923_v42 }
 0x464   : > { %3358 = vst [vmem:[#allocation1 + $0x5] ss:$9 sm:$0xff] %v2924_v9 }
 0x465   : > { %3359 = vst [vmem:[#allocation1 + $0x6] ss:$9 sm:$0xff] %v2925_v14 }
 0x466   : > { %3360 = vst [vmem:[#allocation1 + $0x7] ss:$9 sm:$0xff] %v2926_v61 }
 0x46d   : > { %v3361_v34 = vld [vmem:[#allocation1] sm:$0xff] }
 0x46e   : > { %3528 = vperm.xlu0 %4107, %v3361_v34   ;;  %3362 = vst [vmem:[#allocation1] ss:$9 sm:$0xff] %v2927_v30 }
 0x46f   : > { %3363 = vst [vmem:[#allocation1 + $0x1] ss:$9 sm:$0xff] %v2928_v28 }
 0x470   : > { %3364 = vst [vmem:[#allocation1 + $0x2] ss:$9 sm:$0xff] %v2929_v58 }
 0x471   : > { %3365 = vst [vmem:[#allocation1 + $0x3] ss:$9 sm:$0xff] %v2930_v7 }
 0x472   : > { %v3481_v52 = vpop.permute.xlu1 %3480  ;;  %3366 = vst [vmem:[#allocation1 + $0x4] ss:$9 sm:$0xff] %v2931_v45  ;;  %v3634_v45 = vperm.slane %v3493_v15, %v5833_v22 }
 0x473   : > { %v3626_v39 = vperm.slane %v3481_v52, %v5793_v40  ;;  %3367 = vst [vmem:[#allocation1 + $0x5] ss:$9 sm:$0xff] %v2932_v29 }
 0x474   : > { %3368 = vst [vmem:[#allocation1 + $0x6] ss:$9 sm:$0xff] %v2933_v59 }
 0x475   : > { %v3627_v51 = vsel %vm3587_vm12, %v3626_v39, %v3625_v53  ;;  %3369 = vst [vmem:[#allocation1 + $0x7] ss:$9 sm:$0xff] %v2934_v31 }
 0x476   : > { %v3629_v0 = vsel %vm3591_vm13, %v3628_v37, %v3627_v51 }
 0x477   : > { %v3631_v8 = vsel %vm3595_vm14, %v3630_v12, %v3629_v0 }
 0x47c   : > { %v3370_v11 = vld [vmem:[#allocation1] sm:$0xff] }
 0x47d   : > { %3531 = vperm.xlu2 %4109, %v3370_v11   ;;  %3371 = vst [vmem:[#allocation1] ss:$9 sm:$0xff] %v2935_v23 }
 0x47e   : > { %3372 = vst [vmem:[#allocation1 + $0x1] ss:$9 sm:$0xff] %v2936_v43 }
 0x47f   : > { %3373 = vst [vmem:[#allocation1 + $0x2] ss:$9 sm:$0xff] %v2937_v20 }
 0x480   : > { %3374 = vst [vmem:[#allocation1 + $0x3] ss:$9 sm:$0xff] %v2938_v48  ;;  %v3511_v48 = vpop.permute.xlu0 %3510 }
 0x481   : > { %3375 = vst [vmem:[#allocation1 + $0x4] ss:$9 sm:$0xff] %v2939_v46 }
 0x482   : > { %3376 = vst [vmem:[#allocation1 + $0x5] ss:$9 sm:$0xff] %v2940_v4  ;;  %v3639_v4 = vperm.slane %v3502_v6, %v6137_v26 }
 0x483   : > { %3377 = vst [vmem:[#allocation1 + $0x6] ss:$9 sm:$0xff] %v2941_v50 }
 0x484   : > { %3378 = vst [vmem:[#allocation1 + $0x7] ss:$9 sm:$0xff] %v2942_v57 }
 0x48b   : > { %v3379_v25 = vld [vmem:[#allocation1] sm:$0xff] }
 0x48c   : > { %3534 = vperm.xlu1 %4108, %v3379_v25  }
 0x49a   : > { %v2478_v9 = vpop.xlane.xlu2 %2477 }
 0x49b   : > { %v2526_v14 = vmax.f32 %v2478_v9, 0.0 }
 0x49d   : > { %v2476_v41 = vpop.xlane.xlu1 %2475  ;;  %v2951_v55 = vperm.slane %v2526_v14, 0  ;;  %v2952_v61 = vperm.slane %v2526_v14, 1  ;;  %v2953_v13 = vperm.slane %v2526_v14, 2  ;;  %v2954_v19 = vperm.slane %v2526_v14, 3  ;;  %v3520_v60 = vpop.permute.xlu0 %3519 }
 0x49e   : > { %v2525_v38 = vmax.f32 %v2476_v41, 0.0  ;;  %v2955_v30 = vperm.slane %v2526_v14, 4  ;;  %v2956_v28 = vperm.slane %v2526_v14, 5  ;;  %v2957_v58 = vperm.slane %v2526_v14, 6 }
 0x49f   : > { %v2958_v29 = vperm.slane %v2526_v14, 7 }
 0x4a0   : > { %v2943_v17 = vperm.slane %v2525_v38, 0  ;;  %v2944_v27 = vperm.slane %v2525_v38, 1  ;;  %v2945_v2 = vperm.slane %v2525_v38, 2  ;;  %v2946_v63 = vperm.slane %v2525_v38, 3 }
 0x4a1   : > { %v2947_v18 = vperm.slane %v2525_v38, 4  ;;  %v2948_v62 = vperm.slane %v2525_v38, 5  ;;  %v2949_v10 = vperm.slane %v2525_v38, 6  ;;  %v2950_v42 = vperm.slane %v2525_v38, 7 }
 0x4a2   : > { %3380 = vst [vmem:[#allocation1] ss:$9 sm:$0xff] %v2943_v17  ;;  %v3496_v24 = vpop.permute.xlu2 %3495 }
 0x4a3   : > { %3381 = vst [vmem:[#allocation1 + $0x1] ss:$9 sm:$0xff] %v2944_v27  ;;  %v3636_v20 = vperm.slane %v3496_v24, %v5412_v36  ;;  %v3645_v36 = vperm.slane %v3511_v48, %v6141_v47 }
 0x4a4   : > { %3382 = vst [vmem:[#allocation1 + $0x2] ss:$9 sm:$0xff] %v2945_v2 }
 0x4a5   : > { %3383 = vst [vmem:[#allocation1 + $0x3] ss:$9 sm:$0xff] %v2946_v63 }
 0x4a6   : > { %3384 = vst [vmem:[#allocation1 + $0x4] ss:$9 sm:$0xff] %v2947_v18 }
 0x4a7   : > { %3385 = vst [vmem:[#allocation1 + $0x5] ss:$9 sm:$0xff] %v2948_v62 }
 0x4a8   : > { %3386 = vst [vmem:[#allocation1 + $0x6] ss:$9 sm:$0xff] %v2949_v10 }
 0x4a9   : > { %3387 = vst [vmem:[#allocation1 + $0x7] ss:$9 sm:$0xff] %v2950_v42 }
 0x4aa   : > { %v3505_v0 = vpop.permute.xlu2 %3504 }
 0x4ab   : > { %v3641_v25 = vperm.slane %v3505_v0, %v6138_v35  ;;  %v3651_v35 = vperm.slane %v3520_v60, %v5757_v56 }
 0x4b0   : > { %v3388_v53 = vld [vmem:[#allocation1] sm:$0xff] }
 0x4b1   : > { %3537 = vperm.xlu0 %4107, %v3388_v53   ;;  %3389 = vst [vmem:[#allocation1] ss:$9 sm:$0xff] %v2951_v55 }
 0x4b2   : > { %3390 = vst [vmem:[#allocation1 + $0x1] ss:$9 sm:$0xff] %v2952_v61  ;;  %v3514_v11 = vpop.permute.xlu2 %3513 }
 0x4b3   : > { %3391 = vst [vmem:[#allocation1 + $0x2] ss:$9 sm:$0xff] %v2953_v13  ;;  %v3647_v26 = vperm.slane %v3514_v11, %v5721_v1 }
 0x4b4   : > { %3392 = vst [vmem:[#allocation1 + $0x3] ss:$9 sm:$0xff] %v2954_v19 }
 0x4b5   : > { %v3490_v34 = vpop.permute.xlu1 %3489  ;;  %3393 = vst [vmem:[#allocation1 + $0x4] ss:$9 sm:$0xff] %v2955_v30 }
 0x4b6   : > { %v3632_v7 = vperm.slane %v3490_v34, %v5821_v33  ;;  %3394 = vst [vmem:[#allocation1 + $0x5] ss:$9 sm:$0xff] %v2956_v28 }
 0x4b7   : > { %3395 = vst [vmem:[#allocation1 + $0x6] ss:$9 sm:$0xff] %v2957_v58 }
 0x4b8   : > { %v3633_v52 = vsel %vm3599_vm15, %v3632_v7, %v3631_v8  ;;  %3396 = vst [vmem:[#allocation1 + $0x7] ss:$9 sm:$0xff] %v2958_v29 }
 0x4b9   : > { %v3635_v59 = vsel %vm3603_vm0, %v3634_v45, %v3633_v52 }
 0x4ba   : > { %v3667_v39 = vrot.slane %v3635_v59, 7  ;;  %v3523_v38 = vpop.permute.xlu2 %3522 }
 0x4bb   : > { %v3653_v62 = vperm.slane %v3523_v38, %v5769_v3 }
 0x4bc   : > { %v3670_v37 = vsel %vm3669_vm1, %v5843_v16, %v3667_v39 }
 0x4bd   : > { %v3499_v51 = vpop.permute.xlu1 %3498 }
 0x4be   : > { %v3637_v43 = vperm.slane %v3499_v51, %v6128_v32 }
 0x4bf   : > { %v3397_v31 = vld [vmem:[#allocation1] sm:$0xff] }
 0x4c0   : > { %3540 = vperm.xlu2 %4109, %v3397_v31   ;;  %v3638_v46 = vsel %vm3547_vm2, %v3637_v43, %v3636_v20  ;;  %vm3671_vm2 = vcmask 1041408  }
 0x4c1   : > { %v3640_v16 = vsel %vm3551_vm3, %v3639_v4, %v3638_v46 }
 0x4c2   : > { %v3642_v41 = vsel %vm3555_vm4, %v3641_v25, %v3640_v16 }
 0x4c5   : > { %v3508_v23 = vpop.permute.xlu1 %3507 }
 0x4c6   : > { %v3643_v57 = vperm.slane %v3508_v23, %v6139_v44 }
 0x4c8   : > { %v3644_v32 = vsel %vm3559_vm5, %v3643_v57, %v3642_v41 }
 0x4c9   : > { %v3646_v12 = vsel %vm3563_vm6, %v3645_v36, %v3644_v32 }
 0x4ca   : > { %v3648_v2 = vsel %vm3567_vm7, %v3647_v26, %v3646_v12 }
 0x4cd   : > { %v3517_v50 = vpop.permute.xlu1 %3516 }
 0x4ce   : > { %v3649_v17 = vperm.slane %v3517_v50, %v5711_v5 }
 0x4d0   : > { %v3650_v44 = vsel %vm3571_vm8, %v3649_v17, %v3648_v2 }
 0x4d1   : > { %v3652_v8 = vsel %vm3575_vm9, %v3651_v35, %v3650_v44 }
 0x4d2   : > { %v3654_v1 = vsel %vm3579_vm10, %v3653_v62, %v3652_v8 }
 0x4d5   : > { %v3526_v27 = vpop.permute.xlu1 %3525 }
 0x4d6   : > { %v3655_v47 = vperm.slane %v3526_v27, %v5766_v54 }
 0x4d7   : > { %v3532_v63 = vpop.permute.xlu2 %3531 }
 0x4d8   : > { %v3656_v42 = vsel %vm3583_vm11, %v3655_v47, %v3654_v1  ;;  %v3659_v14 = vperm.slane %v3532_v63, %v5801_v49 }
 0x4e0   : > { %v3529_v18 = vpop.permute.xlu0 %3528 }
 0x4e1   : > { %v3657_v5 = vperm.slane %v3529_v18, %v5793_v40 }
 0x4e3   : > { %v3658_v9 = vsel %vm3587_vm12, %v3657_v5, %v3656_v42 }
 0x4e4   : > { %v3660_v53 = vsel %vm3591_vm13, %v3659_v14, %v3658_v9 }
 0x4fe   : > { %v3535_v10 = vpop.permute.xlu1 %3534 }
 0x4ff   : > { %v3661_v56 = vperm.slane %v3535_v10, %v5797_v21  ;;  %v6142_v21 = vlaneseq }
 0x501   : > { %v3662_v3 = vsel %vm3595_vm14, %v3661_v56, %v3660_v53  ;;  %vm3674_vm3 = vcmp.lt.s32.totalorder %v6142_v21, 384 }
 0x51a   : > { %v3541_v55 = vpop.permute.xlu2 %3540 }
 0x51b   : > { %v3665_v40 = vperm.slane %v3541_v55, %v5833_v22 }
 0x523   : > { %v3538_v61 = vpop.permute.xlu0 %3537 }
 0x524   : > { %v3663_v54 = vperm.slane %v3538_v61, %v5821_v33 }
 0x526   : > { %v3664_v13 = vsel %vm3599_vm15, %v3663_v54, %v3662_v3 }
 0x527   : > { %v3666_v19 = vsel %vm3603_vm0, %v3665_v40, %v3664_v13 }
 0x528   : > { %v3668_v49 = vrot.slane %v3666_v19, 6 }
 0x52a   : > { %v3672_v15 = vsel %vm3671_vm2, %v3670_v37, %v3668_v49 }
 0x52b   : > { %3676 = vst.msk [vmem:[%s265_s4] sm:$0x7] %vm3674_vm3, %v3672_v15 }
 0x52c PF: > { %s14_s14 = sadd.s32 1, %s4146_s14   ;;  %s6143_s12 = smov %s4142_s13 }
 0x52d   : > { %p11_p5 = scmp.ge.s32.totalorder %s14_s14, 4   ;;  %s6144_s13 = smov %s6146_s15 }
 0x52f   :  { %13 = sbr.rel (!%p11_p5) target bundleno = 2 (0x2), region = 88 }

</bundles_post_ra>
